<compile_context>
chip_gen: v6e
topology: v6e:2x2x1
jax: 0.10.0
libtpu: 0.0.40
codegen_flags: <defaults>
</compile_context>

<pallas_src>
import functools

import numpy as np

import jax
import jax.numpy as jnp
from jax.experimental import pallas as pl
from jax.experimental.pallas import tpu as pltpu

KW = 4            # Conv1d kernel width
PAD = 1           # Conv1d padding
NEG_SLOPE = 0.2   # LeakyReLU slope
BN_EPS = 1e-5     # BatchNorm1d eps


# ----------------------------------------------------------------------------
# Fused Pallas kernel: the entire discriminator forward pass
# ----------------------------------------------------------------------------
def _fused_discriminator_kernel(*refs, layer_meta):
    """refs = [x_ref] + per-layer [P_ref, W_ref, (bias,) (gamma, beta,)] + [out_ref].

    Activation layout: (C, N*L).  Statically unrolled over layers and conv taps.
    """
    out_ref = refs[-1]
    idx = 0
    h = refs[idx][...].astype(jnp.float32)          # (C_in, N*L_in)
    idx += 1

    for meta in layer_meta:
        p_ref = refs[idx]; idx += 1                 # (KW, N*L_in, N*L_out)
        w_ref = refs[idx]; idx += 1                 # (KW, C_out, C_in)

        o = None
        for j in range(KW):
            # Gather matmul: shifted / strided / zero-padded copy of h for tap j.
            a_j = jnp.dot(h, p_ref[j], preferred_element_type=jnp.float32)    # (C_in, N*L_out)
            t_j = jnp.dot(w_ref[j], a_j, preferred_element_type=jnp.float32)  # (C_out, N*L_out)
            o = t_j if o is None else o + t_j

        if meta["has_bias"]:
            b_ref = refs[idx]; idx += 1
            o = o + b_ref[...]                      # (C_out, 1) broadcasts over lanes

        if meta["has_bn"]:
            g_ref = refs[idx]; idx += 1
            be_ref = refs[idx]; idx += 1
            mean = jnp.mean(o, axis=-1, keepdims=True)                          # per-channel batch mean
            var = jnp.mean((o - mean) * (o - mean), axis=-1, keepdims=True)     # biased var (PyTorch BN)
            o = (o - mean) * jax.lax.rsqrt(var + BN_EPS) * g_ref[...] + be_ref[...]

        if meta["act"]:
            o = jnp.where(o >= 0, o, NEG_SLOPE * o)  # LeakyReLU(0.2)

        h = o

    out_ref[...] = h.astype(out_ref.dtype)           # (1, N*L_final)


# ----------------------------------------------------------------------------
# Host-side helpers
# ----------------------------------------------------------------------------
def _build_tap_gather(n, l_in, l_out, stride):
    """P of shape (KW, N*L_in, N*L_out) with
       P[j, b*l_in + src, b*l_out + q] = 1  where  src = stride*q + j - PAD
    (left as 0 when src falls in the zero padding)."""
    p = np.zeros((KW, n * l_in, n * l_out), np.float32)
    for j in range(KW):
        for b in range(n):
            for q in range(l_out):
                src = stride * q + j - PAD
                if 0 <= src < l_in:
                    p[j, b * l_in + src, b * l_out + q] = 1.0
    return jnp.asarray(p)


def discriminator_forward(params, x):
    """x: (N, input_nc, L) float32 -> (N, 1, L_final).  Single fused Pallas kernel."""
    n, c_in0, l = x.shape

    inputs = [x.transpose(1, 0, 2).reshape(c_in0, n * l)]     # (C_in, N*L) slab
    layer_meta = []
    l_cur = l
    for layer in params:
        w = layer["w"]                                        # (C_out, C_in, KW)
        c_out, _, _ = w.shape
        stride = layer["stride"]
        l_out = (l_cur + 2 * PAD - KW) // stride + 1

        inputs.append(_build_tap_gather(n, l_cur, l_out, stride))     # (KW, N*L_in, N*L_out)
        inputs.append(w.transpose(2, 0, 1))                            # (KW, C_out, C_in)

        meta = dict(c_out=c_out, nl_out=n * l_out,
                    has_bias=layer["b"] is not None,
                    has_bn=layer["bn"] is not None,
                    act=layer["act"])
        if meta["has_bias"]:
            inputs.append(layer["b"].reshape(c_out, 1))
        if meta["has_bn"]:
            inputs.append(layer["bn"]["gamma"].reshape(c_out, 1))
            inputs.append(layer["bn"]["beta"].reshape(c_out, 1))
        layer_meta.append(meta)
        l_cur = l_out

    c_final = params[-1]["w"].shape[0]                        # 1
    kernel = functools.partial(_fused_discriminator_kernel, layer_meta=tuple(layer_meta))
    vmem = pl.BlockSpec(memory_space=pltpu.MemorySpace.VMEM)

    out2d = pl.pallas_call(
        kernel,
        out_shape=jax.ShapeDtypeStruct((c_final, n * l_cur), jnp.float32),
        in_specs=[vmem] * len(inputs),
        out_specs=vmem,
    )(*inputs)

    # (1, N*L_final) -> (N, 1, L_final)
    return out2d.reshape(c_final, n, l_cur).transpose(1, 0, 2)


# ----------------------------------------------------------------------------
# Pure-JAX reference (for correctness checking only)
# ----------------------------------------------------------------------------
def discriminator_reference(params, x):
    h = x
    for layer in params:
        w = layer["w"]                                        # (C_out, C_in, KW)
        out = jax.lax.conv_general_dilated(
            h, w, window_strides=(layer["stride"],), padding=[(PAD, PAD)],
            dimension_numbers=("NCH", "OIH", "NCH"),
            precision=jax.lax.Precision.HIGHEST)
        if layer["b"] is not None:
            out = out + layer["b"][None, :, None]
        if layer["bn"] is not None:
            mean = jnp.mean(out, axis=(0, 2), keepdims=True)
            var = jnp.mean((out - mean) ** 2, axis=(0, 2), keepdims=True)
            out = (out - mean) * jax.lax.rsqrt(var + BN_EPS)
            out = out * layer["bn"]["gamma"][None, :, None] + layer["bn"]["beta"][None, :, None]
        if layer["act"]:
            out = jnp.where(out >= 0, out, NEG_SLOPE * out)
        h = out
    return h


# ----------------------------------------------------------------------------
# Parameter construction (deterministic synthetic init, PyTorch layer structure)
# ----------------------------------------------------------------------------
def init_discriminator_params(key, input_nc=3, ndf=16, n_layers=3):
    """Conv weights ~ N(0, 0.05); BN gamma=1, beta=0.  Matches the PyTorch
    Discriminator topology: kw=4, pad=1, use_bias=False on BatchNorm'd convs."""
    params = []

    def conv_params(k, c_out, c_in, with_bias):
        kw_, kb_ = jax.random.split(k)
        w = 0.05 * jax.random.normal(kw_, (c_out, c_in, KW), dtype=jnp.float32)
        b = 0.05 * jax.random.normal(kb_, (c_out,), dtype=jnp.float32) if with_bias else None
        return w, b

    keys = jax.random.split(key, n_layers + 2)

    # layer 0: Conv(input_nc -> ndf, stride 2, bias) + LeakyReLU
    w, b = conv_params(keys[0], ndf, input_nc, True)
    params.append(dict(w=w, b=b, stride=2, bn=None, act=True))

    nf_mult = 1
    for i in range(1, n_layers):
        nf_mult_prev, nf_mult = nf_mult, min(2 ** i, 8)
        w, _ = conv_params(keys[i], ndf * nf_mult, ndf * nf_mult_prev, False)
        bn = dict(gamma=jnp.ones((ndf * nf_mult,), jnp.float32),
                  beta=jnp.zeros((ndf * nf_mult,), jnp.float32))
        params.append(dict(w=w, b=None, stride=2, bn=bn, act=True))

    nf_mult_prev, nf_mult = nf_mult, min(2 ** n_layers, 8)
    w, _ = conv_params(keys[n_layers], ndf * nf_mult, ndf * nf_mult_prev, False)
    bn = dict(gamma=jnp.ones((ndf * nf_mult,), jnp.float32),
              beta=jnp.zeros((ndf * nf_mult,), jnp.float32))
    params.append(dict(w=w, b=None, stride=1, bn=bn, act=True))

    # final: Conv(ndf*nf_mult -> 1, stride 1, bias), no activation
    w, b = conv_params(keys[n_layers + 1], 1, ndf * nf_mult, True)
    params.append(dict(w=w, b=b, stride=1, bn=None, act=False))
    return params


# ----------------------------------------------------------------------------
if __name__ == "__main__":
    key = jax.random.PRNGKey(0)
    k_param, k_input = jax.random.split(key)

    input_nc, ndf, n_layers = 3, 16, 3
    N, L = 2, 64

    params = init_discriminator_params(k_param, input_nc=input_nc, ndf=ndf, n_layers=n_layers)
    x = jax.random.normal(k_input, (N, input_nc, L), dtype=jnp.float32)

    fwd = jax.jit(lambda inp: discriminator_forward(params, inp))
    out = jax.block_until_ready(fwd(x))

    # Expected PatchGAN output length for L=64: 64->32->16->8->7->6, single channel.
    assert out.shape == (N, 1, 6), out.shape
    assert bool(jnp.all(jnp.isfinite(out)))

    ref = jax.block_until_ready(discriminator_reference(params, x))
    err = float(jnp.max(jnp.abs(out - ref)))
    assert err < 1e-2, f"max abs error vs reference: {err}"

    print("KERNEL_OK")
</pallas_src>

<mosaic_0001>
module attributes {stable_mosaic.version = 11 : i64} {
  func.func @_fused_discriminator_kernel(%arg0: memref<3x128xf32, #tpu.memory_space<vmem>>, %arg1: memref<4x128x64xf32, #tpu.memory_space<vmem>>, %arg2: memref<4x16x3xf32, #tpu.memory_space<vmem>>, %arg3: memref<16x1xf32, #tpu.memory_space<vmem>>, %arg4: memref<4x64x32xf32, #tpu.memory_space<vmem>>, %arg5: memref<4x32x16xf32, #tpu.memory_space<vmem>>, %arg6: memref<32x1xf32, #tpu.memory_space<vmem>>, %arg7: memref<32x1xf32, #tpu.memory_space<vmem>>, %arg8: memref<4x32x16xf32, #tpu.memory_space<vmem>>, %arg9: memref<4x64x32xf32, #tpu.memory_space<vmem>>, %arg10: memref<64x1xf32, #tpu.memory_space<vmem>>, %arg11: memref<64x1xf32, #tpu.memory_space<vmem>>, %arg12: memref<4x16x14xf32, #tpu.memory_space<vmem>>, %arg13: memref<4x128x64xf32, #tpu.memory_space<vmem>>, %arg14: memref<128x1xf32, #tpu.memory_space<vmem>>, %arg15: memref<128x1xf32, #tpu.memory_space<vmem>>, %arg16: memref<4x14x12xf32, #tpu.memory_space<vmem>>, %arg17: memref<4x1x128xf32, #tpu.memory_space<vmem>>, %arg18: memref<1x1xf32, #tpu.memory_space<vmem>>, %arg19: memref<1x12xf32, #tpu.memory_space<vmem>>) attributes {dimension_semantics = [], scalar_prefetch = 0 : i64, scratch_operands = 0 : i64, tpu.core_type = #tpu.core_type<tc>} {
    %c0 = arith.constant 0 : index
    %c0_0 = arith.constant 0 : index
    %0 = vector.load %arg0[%c0, %c0_0] : memref<3x128xf32, #tpu.memory_space<vmem>>, vector<3x128xf32>
    %c0_1 = arith.constant 0 : index
    %c0_2 = arith.constant 0 : index
    %c0_3 = arith.constant 0 : index
    %1 = vector.load %arg1[%c0_1, %c0_2, %c0_3] : memref<4x128x64xf32, #tpu.memory_space<vmem>>, vector<1x128x64xf32>
    %2 = vector.shape_cast %1 : vector<1x128x64xf32> to vector<128x64xf32>
    %cst = arith.constant dense<0.000000e+00> : vector<3x64xf32>
    %3 = tpu.matmul %0, %2, %cst {dimension_numbers = #tpu.dot_dimension_numbers<[1], [0], [0], [1], [0, 0, 1, 1], [], []>} : vector<3x128xf32>, vector<128x64xf32>, vector<3x64xf32> -> vector<3x64xf32>
    %c0_4 = arith.constant 0 : index
    %c0_5 = arith.constant 0 : index
    %c0_6 = arith.constant 0 : index
    %4 = vector.load %arg2[%c0_4, %c0_5, %c0_6] : memref<4x16x3xf32, #tpu.memory_space<vmem>>, vector<1x16x3xf32>
    %5 = vector.shape_cast %4 : vector<1x16x3xf32> to vector<16x3xf32>
    %cst_7 = arith.constant dense<0.000000e+00> : vector<16x64xf32>
    %6 = tpu.matmul %5, %3, %cst_7 {dimension_numbers = #tpu.dot_dimension_numbers<[1], [0], [0], [1], [0, 0, 1, 1], [], []>} : vector<16x3xf32>, vector<3x64xf32>, vector<16x64xf32> -> vector<16x64xf32>
    %c1 = arith.constant 1 : index
    %c0_8 = arith.constant 0 : index
    %c0_9 = arith.constant 0 : index
    %7 = vector.load %arg1[%c1, %c0_8, %c0_9] : memref<4x128x64xf32, #tpu.memory_space<vmem>>, vector<1x128x64xf32>
    %8 = vector.shape_cast %7 : vector<1x128x64xf32> to vector<128x64xf32>
    %cst_10 = arith.constant dense<0.000000e+00> : vector<3x64xf32>
    %9 = tpu.matmul %0, %8, %cst_10 {dimension_numbers = #tpu.dot_dimension_numbers<[1], [0], [0], [1], [0, 0, 1, 1], [], []>} : vector<3x128xf32>, vector<128x64xf32>, vector<3x64xf32> -> vector<3x64xf32>
    %c1_11 = arith.constant 1 : index
    %c0_12 = arith.constant 0 : index
    %c0_13 = arith.constant 0 : index
    %10 = vector.load %arg2[%c1_11, %c0_12, %c0_13] : memref<4x16x3xf32, #tpu.memory_space<vmem>>, vector<1x16x3xf32>
    %11 = vector.shape_cast %10 : vector<1x16x3xf32> to vector<16x3xf32>
    %cst_14 = arith.constant dense<0.000000e+00> : vector<16x64xf32>
    %12 = tpu.matmul %11, %9, %cst_14 {dimension_numbers = #tpu.dot_dimension_numbers<[1], [0], [0], [1], [0, 0, 1, 1], [], []>} : vector<16x3xf32>, vector<3x64xf32>, vector<16x64xf32> -> vector<16x64xf32>
    %13 = arith.addf %6, %12 : vector<16x64xf32>
    %c2 = arith.constant 2 : index
    %c0_15 = arith.constant 0 : index
    %c0_16 = arith.constant 0 : index
    %14 = vector.load %arg1[%c2, %c0_15, %c0_16] : memref<4x128x64xf32, #tpu.memory_space<vmem>>, vector<1x128x64xf32>
    %15 = vector.shape_cast %14 : vector<1x128x64xf32> to vector<128x64xf32>
    %cst_17 = arith.constant dense<0.000000e+00> : vector<3x64xf32>
    %16 = tpu.matmul %0, %15, %cst_17 {dimension_numbers = #tpu.dot_dimension_numbers<[1], [0], [0], [1], [0, 0, 1, 1], [], []>} : vector<3x128xf32>, vector<128x64xf32>, vector<3x64xf32> -> vector<3x64xf32>
    %c2_18 = arith.constant 2 : index
    %c0_19 = arith.constant 0 : index
    %c0_20 = arith.constant 0 : index
    %17 = vector.load %arg2[%c2_18, %c0_19, %c0_20] : memref<4x16x3xf32, #tpu.memory_space<vmem>>, vector<1x16x3xf32>
    %18 = vector.shape_cast %17 : vector<1x16x3xf32> to vector<16x3xf32>
    %cst_21 = arith.constant dense<0.000000e+00> : vector<16x64xf32>
    %19 = tpu.matmul %18, %16, %cst_21 {dimension_numbers = #tpu.dot_dimension_numbers<[1], [0], [0], [1], [0, 0, 1, 1], [], []>} : vector<16x3xf32>, vector<3x64xf32>, vector<16x64xf32> -> vector<16x64xf32>
    %20 = arith.addf %13, %19 : vector<16x64xf32>
    %c3 = arith.constant 3 : index
    %c0_22 = arith.constant 0 : index
    %c0_23 = arith.constant 0 : index
    %21 = vector.load %arg1[%c3, %c0_22, %c0_23] : memref<4x128x64xf32, #tpu.memory_space<vmem>>, vector<1x128x64xf32>
    %22 = vector.shape_cast %21 : vector<1x128x64xf32> to vector<128x64xf32>
    %cst_24 = arith.constant dense<0.000000e+00> : vector<3x64xf32>
    %23 = tpu.matmul %0, %22, %cst_24 {dimension_numbers = #tpu.dot_dimension_numbers<[1], [0], [0], [1], [0, 0, 1, 1], [], []>} : vector<3x128xf32>, vector<128x64xf32>, vector<3x64xf32> -> vector<3x64xf32>
    %c3_25 = arith.constant 3 : index
    %c0_26 = arith.constant 0 : index
    %c0_27 = arith.constant 0 : index
    %24 = vector.load %arg2[%c3_25, %c0_26, %c0_27] : memref<4x16x3xf32, #tpu.memory_space<vmem>>, vector<1x16x3xf32>
    %25 = vector.shape_cast %24 : vector<1x16x3xf32> to vector<16x3xf32>
    %cst_28 = arith.constant dense<0.000000e+00> : vector<16x64xf32>
    %26 = tpu.matmul %25, %23, %cst_28 {dimension_numbers = #tpu.dot_dimension_numbers<[1], [0], [0], [1], [0, 0, 1, 1], [], []>} : vector<16x3xf32>, vector<3x64xf32>, vector<16x64xf32> -> vector<16x64xf32>
    %27 = arith.addf %20, %26 : vector<16x64xf32>
    %c0_29 = arith.constant 0 : index
    %c0_30 = arith.constant 0 : index
    %28 = vector.load %arg3[%c0_29, %c0_30] : memref<16x1xf32, #tpu.memory_space<vmem>>, vector<16x1xf32>
    %29 = vector.broadcast %28 : vector<16x1xf32> to vector<16x64xf32>
    %30 = arith.addf %27, %29 : vector<16x64xf32>
    %cst_31 = arith.constant 0.000000e+00 : f32
    %31 = vector.broadcast %cst_31 : f32 to vector<16x64xf32>
    %32 = arith.cmpf oge, %30, %31 : vector<16x64xf32>
    %cst_32 = arith.constant 2.000000e-01 : f32
    %33 = vector.broadcast %cst_32 : f32 to vector<16x64xf32>
    %34 = arith.mulf %33, %30 : vector<16x64xf32>
    %35 = arith.select %32, %30, %34 : vector<16x64xi1>, vector<16x64xf32>
    %c0_33 = arith.constant 0 : index
    %c0_34 = arith.constant 0 : index
    %c0_35 = arith.constant 0 : index
    %36 = vector.load %arg4[%c0_33, %c0_34, %c0_35] : memref<4x64x32xf32, #tpu.memory_space<vmem>>, vector<1x64x32xf32>
    %37 = vector.shape_cast %36 : vector<1x64x32xf32> to vector<64x32xf32>
    %cst_36 = arith.constant dense<0.000000e+00> : vector<16x32xf32>
    %38 = tpu.matmul %35, %37, %cst_36 {dimension_numbers = #tpu.dot_dimension_numbers<[1], [0], [0], [1], [0, 0, 1, 1], [], []>} : vector<16x64xf32>, vector<64x32xf32>, vector<16x32xf32> -> vector<16x32xf32>
    %c0_37 = arith.constant 0 : index
    %c0_38 = arith.constant 0 : index
    %c0_39 = arith.constant 0 : index
    %39 = vector.load %arg5[%c0_37, %c0_38, %c0_39] : memref<4x32x16xf32, #tpu.memory_space<vmem>>, vector<1x32x16xf32>
    %40 = vector.shape_cast %39 : vector<1x32x16xf32> to vector<32x16xf32>
    %cst_40 = arith.constant dense<0.000000e+00> : vector<32x32xf32>
    %41 = tpu.matmul %40, %38, %cst_40 {dimension_numbers = #tpu.dot_dimension_numbers<[1], [0], [0], [1], [0, 0, 1, 1], [], []>} : vector<32x16xf32>, vector<16x32xf32>, vector<32x32xf32> -> vector<32x32xf32>
    %c1_41 = arith.constant 1 : index
    %c0_42 = arith.constant 0 : index
    %c0_43 = arith.constant 0 : index
    %42 = vector.load %arg4[%c1_41, %c0_42, %c0_43] : memref<4x64x32xf32, #tpu.memory_space<vmem>>, vector<1x64x32xf32>
    %43 = vector.shape_cast %42 : vector<1x64x32xf32> to vector<64x32xf32>
    %cst_44 = arith.constant dense<0.000000e+00> : vector<16x32xf32>
    %44 = tpu.matmul %35, %43, %cst_44 {dimension_numbers = #tpu.dot_dimension_numbers<[1], [0], [0], [1], [0, 0, 1, 1], [], []>} : vector<16x64xf32>, vector<64x32xf32>, vector<16x32xf32> -> vector<16x32xf32>
    %c1_45 = arith.constant 1 : index
    %c0_46 = arith.constant 0 : index
    %c0_47 = arith.constant 0 : index
    %45 = vector.load %arg5[%c1_45, %c0_46, %c0_47] : memref<4x32x16xf32, #tpu.memory_space<vmem>>, vector<1x32x16xf32>
    %46 = vector.shape_cast %45 : vector<1x32x16xf32> to vector<32x16xf32>
    %cst_48 = arith.constant dense<0.000000e+00> : vector<32x32xf32>
    %47 = tpu.matmul %46, %44, %cst_48 {dimension_numbers = #tpu.dot_dimension_numbers<[1], [0], [0], [1], [0, 0, 1, 1], [], []>} : vector<32x16xf32>, vector<16x32xf32>, vector<32x32xf32> -> vector<32x32xf32>
    %48 = arith.addf %41, %47 : vector<32x32xf32>
    %c2_49 = arith.constant 2 : index
    %c0_50 = arith.constant 0 : index
    %c0_51 = arith.constant 0 : index
    %49 = vector.load %arg4[%c2_49, %c0_50, %c0_51] : memref<4x64x32xf32, #tpu.memory_space<vmem>>, vector<1x64x32xf32>
    %50 = vector.shape_cast %49 : vector<1x64x32xf32> to vector<64x32xf32>
    %cst_52 = arith.constant dense<0.000000e+00> : vector<16x32xf32>
    %51 = tpu.matmul %35, %50, %cst_52 {dimension_numbers = #tpu.dot_dimension_numbers<[1], [0], [0], [1], [0, 0, 1, 1], [], []>} : vector<16x64xf32>, vector<64x32xf32>, vector<16x32xf32> -> vector<16x32xf32>
    %c2_53 = arith.constant 2 : index
    %c0_54 = arith.constant 0 : index
    %c0_55 = arith.constant 0 : index
    %52 = vector.load %arg5[%c2_53, %c0_54, %c0_55] : memref<4x32x16xf32, #tpu.memory_space<vmem>>, vector<1x32x16xf32>
    %53 = vector.shape_cast %52 : vector<1x32x16xf32> to vector<32x16xf32>
    %cst_56 = arith.constant dense<0.000000e+00> : vector<32x32xf32>
    %54 = tpu.matmul %53, %51, %cst_56 {dimension_numbers = #tpu.dot_dimension_numbers<[1], [0], [0], [1], [0, 0, 1, 1], [], []>} : vector<32x16xf32>, vector<16x32xf32>, vector<32x32xf32> -> vector<32x32xf32>
    %55 = arith.addf %48, %54 : vector<32x32xf32>
    %c3_57 = arith.constant 3 : index
    %c0_58 = arith.constant 0 : index
    %c0_59 = arith.constant 0 : index
    %56 = vector.load %arg4[%c3_57, %c0_58, %c0_59] : memref<4x64x32xf32, #tpu.memory_space<vmem>>, vector<1x64x32xf32>
    %57 = vector.shape_cast %56 : vector<1x64x32xf32> to vector<64x32xf32>
    %cst_60 = arith.constant dense<0.000000e+00> : vector<16x32xf32>
    %58 = tpu.matmul %35, %57, %cst_60 {dimension_numbers = #tpu.dot_dimension_numbers<[1], [0], [0], [1], [0, 0, 1, 1], [], []>} : vector<16x64xf32>, vector<64x32xf32>, vector<16x32xf32> -> vector<16x32xf32>
    %c3_61 = arith.constant 3 : index
    %c0_62 = arith.constant 0 : index
    %c0_63 = arith.constant 0 : index
    %59 = vector.load %arg5[%c3_61, %c0_62, %c0_63] : memref<4x32x16xf32, #tpu.memory_space<vmem>>, vector<1x32x16xf32>
    %60 = vector.shape_cast %59 : vector<1x32x16xf32> to vector<32x16xf32>
    %cst_64 = arith.constant dense<0.000000e+00> : vector<32x32xf32>
    %61 = tpu.matmul %60, %58, %cst_64 {dimension_numbers = #tpu.dot_dimension_numbers<[1], [0], [0], [1], [0, 0, 1, 1], [], []>} : vector<32x16xf32>, vector<16x32xf32>, vector<32x32xf32> -> vector<32x32xf32>
    %62 = arith.addf %55, %61 : vector<32x32xf32>
    %cst_65 = arith.constant dense<0.000000e+00> : vector<32xf32>
    %63 = vector.multi_reduction <add>, %62, %cst_65 [1] : vector<32x32xf32> to vector<32xf32>
    %64 = vector.shape_cast %63 : vector<32xf32> to vector<32x1xf32>
    %cst_66 = arith.constant 3.200000e+01 : f32
    %65 = vector.broadcast %cst_66 : f32 to vector<32x1xf32>
    %66 = arith.divf %64, %65 : vector<32x1xf32>
    %67 = vector.broadcast %66 : vector<32x1xf32> to vector<32x32xf32>
    %68 = arith.subf %62, %67 : vector<32x32xf32>
    %69 = vector.broadcast %66 : vector<32x1xf32> to vector<32x32xf32>
    %70 = arith.subf %62, %69 : vector<32x32xf32>
    %71 = arith.mulf %68, %70 : vector<32x32xf32>
    %cst_67 = arith.constant dense<0.000000e+00> : vector<32xf32>
    %72 = vector.multi_reduction <add>, %71, %cst_67 [1] : vector<32x32xf32> to vector<32xf32>
    %73 = vector.shape_cast %72 : vector<32xf32> to vector<32x1xf32>
    %cst_68 = arith.constant 3.200000e+01 : f32
    %74 = vector.broadcast %cst_68 : f32 to vector<32x1xf32>
    %75 = arith.divf %73, %74 : vector<32x1xf32>
    %76 = vector.broadcast %66 : vector<32x1xf32> to vector<32x32xf32>
    %77 = arith.subf %62, %76 : vector<32x32xf32>
    %cst_69 = arith.constant 9.99999974E-6 : f32
    %78 = vector.broadcast %cst_69 : f32 to vector<32x1xf32>
    %79 = arith.addf %75, %78 : vector<32x1xf32>
    %80 = math.rsqrt %79 : vector<32x1xf32>
    %81 = vector.broadcast %80 : vector<32x1xf32> to vector<32x32xf32>
    %82 = arith.mulf %77, %81 : vector<32x32xf32>
    %c0_70 = arith.constant 0 : index
    %c0_71 = arith.constant 0 : index
    %83 = vector.load %arg6[%c0_70, %c0_71] : memref<32x1xf32, #tpu.memory_space<vmem>>, vector<32x1xf32>
    %84 = vector.broadcast %83 : vector<32x1xf32> to vector<32x32xf32>
    %85 = arith.mulf %82, %84 : vector<32x32xf32>
    %c0_72 = arith.constant 0 : index
    %c0_73 = arith.constant 0 : index
    %86 = vector.load %arg7[%c0_72, %c0_73] : memref<32x1xf32, #tpu.memory_space<vmem>>, vector<32x1xf32>
    %87 = vector.broadcast %86 : vector<32x1xf32> to vector<32x32xf32>
    %88 = arith.addf %85, %87 : vector<32x32xf32>
    %cst_74 = arith.constant 0.000000e+00 : f32
    %89 = vector.broadcast %cst_74 : f32 to vector<32x32xf32>
    %90 = arith.cmpf oge, %88, %89 : vector<32x32xf32>
    %cst_75 = arith.constant 2.000000e-01 : f32
    %91 = vector.broadcast %cst_75 : f32 to vector<32x32xf32>
    %92 = arith.mulf %91, %88 : vector<32x32xf32>
    %93 = arith.select %90, %88, %92 : vector<32x32xi1>, vector<32x32xf32>
    %c0_76 = arith.constant 0 : index
    %c0_77 = arith.constant 0 : index
    %c0_78 = arith.constant 0 : index
    %94 = vector.load %arg8[%c0_76, %c0_77, %c0_78] : memref<4x32x16xf32, #tpu.memory_space<vmem>>, vector<1x32x16xf32>
    %95 = vector.shape_cast %94 : vector<1x32x16xf32> to vector<32x16xf32>
    %cst_79 = arith.constant dense<0.000000e+00> : vector<32x16xf32>
    %96 = tpu.matmul %93, %95, %cst_79 {dimension_numbers = #tpu.dot_dimension_numbers<[1], [0], [0], [1], [0, 0, 1, 1], [], []>} : vector<32x32xf32>, vector<32x16xf32>, vector<32x16xf32> -> vector<32x16xf32>
    %c0_80 = arith.constant 0 : index
    %c0_81 = arith.constant 0 : index
    %c0_82 = arith.constant 0 : index
    %97 = vector.load %arg9[%c0_80, %c0_81, %c0_82] : memref<4x64x32xf32, #tpu.memory_space<vmem>>, vector<1x64x32xf32>
    %98 = vector.shape_cast %97 : vector<1x64x32xf32> to vector<64x32xf32>
    %cst_83 = arith.constant dense<0.000000e+00> : vector<64x16xf32>
    %99 = tpu.matmul %98, %96, %cst_83 {dimension_numbers = #tpu.dot_dimension_numbers<[1], [0], [0], [1], [0, 0, 1, 1], [], []>} : vector<64x32xf32>, vector<32x16xf32>, vector<64x16xf32> -> vector<64x16xf32>
    %c1_84 = arith.constant 1 : index
    %c0_85 = arith.constant 0 : index
    %c0_86 = arith.constant 0 : index
    %100 = vector.load %arg8[%c1_84, %c0_85, %c0_86] : memref<4x32x16xf32, #tpu.memory_space<vmem>>, vector<1x32x16xf32>
    %101 = vector.shape_cast %100 : vector<1x32x16xf32> to vector<32x16xf32>
    %cst_87 = arith.constant dense<0.000000e+00> : vector<32x16xf32>
    %102 = tpu.matmul %93, %101, %cst_87 {dimension_numbers = #tpu.dot_dimension_numbers<[1], [0], [0], [1], [0, 0, 1, 1], [], []>} : vector<32x32xf32>, vector<32x16xf32>, vector<32x16xf32> -> vector<32x16xf32>
    %c1_88 = arith.constant 1 : index
    %c0_89 = arith.constant 0 : index
    %c0_90 = arith.constant 0 : index
    %103 = vector.load %arg9[%c1_88, %c0_89, %c0_90] : memref<4x64x32xf32, #tpu.memory_space<vmem>>, vector<1x64x32xf32>
    %104 = vector.shape_cast %103 : vector<1x64x32xf32> to vector<64x32xf32>
    %cst_91 = arith.constant dense<0.000000e+00> : vector<64x16xf32>
    %105 = tpu.matmul %104, %102, %cst_91 {dimension_numbers = #tpu.dot_dimension_numbers<[1], [0], [0], [1], [0, 0, 1, 1], [], []>} : vector<64x32xf32>, vector<32x16xf32>, vector<64x16xf32> -> vector<64x16xf32>
    %106 = arith.addf %99, %105 : vector<64x16xf32>
    %c2_92 = arith.constant 2 : index
    %c0_93 = arith.constant 0 : index
    %c0_94 = arith.constant 0 : index
    %107 = vector.load %arg8[%c2_92, %c0_93, %c0_94] : memref<4x32x16xf32, #tpu.memory_space<vmem>>, vector<1x32x16xf32>
    %108 = vector.shape_cast %107 : vector<1x32x16xf32> to vector<32x16xf32>
    %cst_95 = arith.constant dense<0.000000e+00> : vector<32x16xf32>
    %109 = tpu.matmul %93, %108, %cst_95 {dimension_numbers = #tpu.dot_dimension_numbers<[1], [0], [0], [1], [0, 0, 1, 1], [], []>} : vector<32x32xf32>, vector<32x16xf32>, vector<32x16xf32> -> vector<32x16xf32>
    %c2_96 = arith.constant 2 : index
    %c0_97 = arith.constant 0 : index
    %c0_98 = arith.constant 0 : index
    %110 = vector.load %arg9[%c2_96, %c0_97, %c0_98] : memref<4x64x32xf32, #tpu.memory_space<vmem>>, vector<1x64x32xf32>
    %111 = vector.shape_cast %110 : vector<1x64x32xf32> to vector<64x32xf32>
    %cst_99 = arith.constant dense<0.000000e+00> : vector<64x16xf32>
    %112 = tpu.matmul %111, %109, %cst_99 {dimension_numbers = #tpu.dot_dimension_numbers<[1], [0], [0], [1], [0, 0, 1, 1], [], []>} : vector<64x32xf32>, vector<32x16xf32>, vector<64x16xf32> -> vector<64x16xf32>
    %113 = arith.addf %106, %112 : vector<64x16xf32>
    %c3_100 = arith.constant 3 : index
    %c0_101 = arith.constant 0 : index
    %c0_102 = arith.constant 0 : index
    %114 = vector.load %arg8[%c3_100, %c0_101, %c0_102] : memref<4x32x16xf32, #tpu.memory_space<vmem>>, vector<1x32x16xf32>
    %115 = vector.shape_cast %114 : vector<1x32x16xf32> to vector<32x16xf32>
    %cst_103 = arith.constant dense<0.000000e+00> : vector<32x16xf32>
    %116 = tpu.matmul %93, %115, %cst_103 {dimension_numbers = #tpu.dot_dimension_numbers<[1], [0], [0], [1], [0, 0, 1, 1], [], []>} : vector<32x32xf32>, vector<32x16xf32>, vector<32x16xf32> -> vector<32x16xf32>
    %c3_104 = arith.constant 3 : index
    %c0_105 = arith.constant 0 : index
    %c0_106 = arith.constant 0 : index
    %117 = vector.load %arg9[%c3_104, %c0_105, %c0_106] : memref<4x64x32xf32, #tpu.memory_space<vmem>>, vector<1x64x32xf32>
    %118 = vector.shape_cast %117 : vector<1x64x32xf32> to vector<64x32xf32>
    %cst_107 = arith.constant dense<0.000000e+00> : vector<64x16xf32>
    %119 = tpu.matmul %118, %116, %cst_107 {dimension_numbers = #tpu.dot_dimension_numbers<[1], [0], [0], [1], [0, 0, 1, 1], [], []>} : vector<64x32xf32>, vector<32x16xf32>, vector<64x16xf32> -> vector<64x16xf32>
    %120 = arith.addf %113, %119 : vector<64x16xf32>
    %cst_108 = arith.constant dense<0.000000e+00> : vector<64xf32>
    %121 = vector.multi_reduction <add>, %120, %cst_108 [1] : vector<64x16xf32> to vector<64xf32>
    %122 = vector.shape_cast %121 : vector<64xf32> to vector<64x1xf32>
    %cst_109 = arith.constant 1.600000e+01 : f32
    %123 = vector.broadcast %cst_109 : f32 to vector<64x1xf32>
    %124 = arith.divf %122, %123 : vector<64x1xf32>
    %125 = vector.broadcast %124 : vector<64x1xf32> to vector<64x16xf32>
    %126 = arith.subf %120, %125 : vector<64x16xf32>
    %127 = vector.broadcast %124 : vector<64x1xf32> to vector<64x16xf32>
    %128 = arith.subf %120, %127 : vector<64x16xf32>
    %129 = arith.mulf %126, %128 : vector<64x16xf32>
    %cst_110 = arith.constant dense<0.000000e+00> : vector<64xf32>
    %130 = vector.multi_reduction <add>, %129, %cst_110 [1] : vector<64x16xf32> to vector<64xf32>
    %131 = vector.shape_cast %130 : vector<64xf32> to vector<64x1xf32>
    %cst_111 = arith.constant 1.600000e+01 : f32
    %132 = vector.broadcast %cst_111 : f32 to vector<64x1xf32>
    %133 = arith.divf %131, %132 : vector<64x1xf32>
    %134 = vector.broadcast %124 : vector<64x1xf32> to vector<64x16xf32>
    %135 = arith.subf %120, %134 : vector<64x16xf32>
    %cst_112 = arith.constant 9.99999974E-6 : f32
    %136 = vector.broadcast %cst_112 : f32 to vector<64x1xf32>
    %137 = arith.addf %133, %136 : vector<64x1xf32>
    %138 = math.rsqrt %137 : vector<64x1xf32>
    %139 = vector.broadcast %138 : vector<64x1xf32> to vector<64x16xf32>
    %140 = arith.mulf %135, %139 : vector<64x16xf32>
    %c0_113 = arith.constant 0 : index
    %c0_114 = arith.constant 0 : index
    %141 = vector.load %arg10[%c0_113, %c0_114] : memref<64x1xf32, #tpu.memory_space<vmem>>, vector<64x1xf32>
    %142 = vector.broadcast %141 : vector<64x1xf32> to vector<64x16xf32>
    %143 = arith.mulf %140, %142 : vector<64x16xf32>
    %c0_115 = arith.constant 0 : index
    %c0_116 = arith.constant 0 : index
    %144 = vector.load %arg11[%c0_115, %c0_116] : memref<64x1xf32, #tpu.memory_space<vmem>>, vector<64x1xf32>
    %145 = vector.broadcast %144 : vector<64x1xf32> to vector<64x16xf32>
    %146 = arith.addf %143, %145 : vector<64x16xf32>
    %cst_117 = arith.constant 0.000000e+00 : f32
    %147 = vector.broadcast %cst_117 : f32 to vector<64x16xf32>
    %148 = arith.cmpf oge, %146, %147 : vector<64x16xf32>
    %cst_118 = arith.constant 2.000000e-01 : f32
    %149 = vector.broadcast %cst_118 : f32 to vector<64x16xf32>
    %150 = arith.mulf %149, %146 : vector<64x16xf32>
    %151 = arith.select %148, %146, %150 : vector<64x16xi1>, vector<64x16xf32>
    %c0_119 = arith.constant 0 : index
    %c0_120 = arith.constant 0 : index
    %c0_121 = arith.constant 0 : index
    %152 = vector.load %arg12[%c0_119, %c0_120, %c0_121] : memref<4x16x14xf32, #tpu.memory_space<vmem>>, vector<1x16x14xf32>
    %153 = vector.shape_cast %152 : vector<1x16x14xf32> to vector<16x14xf32>
    %cst_122 = arith.constant dense<0.000000e+00> : vector<64x14xf32>
    %154 = tpu.matmul %151, %153, %cst_122 {dimension_numbers = #tpu.dot_dimension_numbers<[1], [0], [0], [1], [0, 0, 1, 1], [], []>} : vector<64x16xf32>, vector<16x14xf32>, vector<64x14xf32> -> vector<64x14xf32>
    %c0_123 = arith.constant 0 : index
    %c0_124 = arith.constant 0 : index
    %c0_125 = arith.constant 0 : index
    %155 = vector.load %arg13[%c0_123, %c0_124, %c0_125] : memref<4x128x64xf32, #tpu.memory_space<vmem>>, vector<1x128x64xf32>
    %156 = vector.shape_cast %155 : vector<1x128x64xf32> to vector<128x64xf32>
    %cst_126 = arith.constant dense<0.000000e+00> : vector<128x14xf32>
    %157 = tpu.matmul %156, %154, %cst_126 {dimension_numbers = #tpu.dot_dimension_numbers<[1], [0], [0], [1], [0, 0, 1, 1], [], []>} : vector<128x64xf32>, vector<64x14xf32>, vector<128x14xf32> -> vector<128x14xf32>
    %c1_127 = arith.constant 1 : index
    %c0_128 = arith.constant 0 : index
    %c0_129 = arith.constant 0 : index
    %158 = vector.load %arg12[%c1_127, %c0_128, %c0_129] : memref<4x16x14xf32, #tpu.memory_space<vmem>>, vector<1x16x14xf32>
    %159 = vector.shape_cast %158 : vector<1x16x14xf32> to vector<16x14xf32>
    %cst_130 = arith.constant dense<0.000000e+00> : vector<64x14xf32>
    %160 = tpu.matmul %151, %159, %cst_130 {dimension_numbers = #tpu.dot_dimension_numbers<[1], [0], [0], [1], [0, 0, 1, 1], [], []>} : vector<64x16xf32>, vector<16x14xf32>, vector<64x14xf32> -> vector<64x14xf32>
    %c1_131 = arith.constant 1 : index
    %c0_132 = arith.constant 0 : index
    %c0_133 = arith.constant 0 : index
    %161 = vector.load %arg13[%c1_131, %c0_132, %c0_133] : memref<4x128x64xf32, #tpu.memory_space<vmem>>, vector<1x128x64xf32>
    %162 = vector.shape_cast %161 : vector<1x128x64xf32> to vector<128x64xf32>
    %cst_134 = arith.constant dense<0.000000e+00> : vector<128x14xf32>
    %163 = tpu.matmul %162, %160, %cst_134 {dimension_numbers = #tpu.dot_dimension_numbers<[1], [0], [0], [1], [0, 0, 1, 1], [], []>} : vector<128x64xf32>, vector<64x14xf32>, vector<128x14xf32> -> vector<128x14xf32>
    %164 = arith.addf %157, %163 : vector<128x14xf32>
    %c2_135 = arith.constant 2 : index
    %c0_136 = arith.constant 0 : index
    %c0_137 = arith.constant 0 : index
    %165 = vector.load %arg12[%c2_135, %c0_136, %c0_137] : memref<4x16x14xf32, #tpu.memory_space<vmem>>, vector<1x16x14xf32>
    %166 = vector.shape_cast %165 : vector<1x16x14xf32> to vector<16x14xf32>
    %cst_138 = arith.constant dense<0.000000e+00> : vector<64x14xf32>
    %167 = tpu.matmul %151, %166, %cst_138 {dimension_numbers = #tpu.dot_dimension_numbers<[1], [0], [0], [1], [0, 0, 1, 1], [], []>} : vector<64x16xf32>, vector<16x14xf32>, vector<64x14xf32> -> vector<64x14xf32>
    %c2_139 = arith.constant 2 : index
    %c0_140 = arith.constant 0 : index
    %c0_141 = arith.constant 0 : index
    %168 = vector.load %arg13[%c2_139, %c0_140, %c0_141] : memref<4x128x64xf32, #tpu.memory_space<vmem>>, vector<1x128x64xf32>
    %169 = vector.shape_cast %168 : vector<1x128x64xf32> to vector<128x64xf32>
    %cst_142 = arith.constant dense<0.000000e+00> : vector<128x14xf32>
    %170 = tpu.matmul %169, %167, %cst_142 {dimension_numbers = #tpu.dot_dimension_numbers<[1], [0], [0], [1], [0, 0, 1, 1], [], []>} : vector<128x64xf32>, vector<64x14xf32>, vector<128x14xf32> -> vector<128x14xf32>
    %171 = arith.addf %164, %170 : vector<128x14xf32>
    %c3_143 = arith.constant 3 : index
    %c0_144 = arith.constant 0 : index
    %c0_145 = arith.constant 0 : index
    %172 = vector.load %arg12[%c3_143, %c0_144, %c0_145] : memref<4x16x14xf32, #tpu.memory_space<vmem>>, vector<1x16x14xf32>
    %173 = vector.shape_cast %172 : vector<1x16x14xf32> to vector<16x14xf32>
    %cst_146 = arith.constant dense<0.000000e+00> : vector<64x14xf32>
    %174 = tpu.matmul %151, %173, %cst_146 {dimension_numbers = #tpu.dot_dimension_numbers<[1], [0], [0], [1], [0, 0, 1, 1], [], []>} : vector<64x16xf32>, vector<16x14xf32>, vector<64x14xf32> -> vector<64x14xf32>
    %c3_147 = arith.constant 3 : index
    %c0_148 = arith.constant 0 : index
    %c0_149 = arith.constant 0 : index
    %175 = vector.load %arg13[%c3_147, %c0_148, %c0_149] : memref<4x128x64xf32, #tpu.memory_space<vmem>>, vector<1x128x64xf32>
    %176 = vector.shape_cast %175 : vector<1x128x64xf32> to vector<128x64xf32>
    %cst_150 = arith.constant dense<0.000000e+00> : vector<128x14xf32>
    %177 = tpu.matmul %176, %174, %cst_150 {dimension_numbers = #tpu.dot_dimension_numbers<[1], [0], [0], [1], [0, 0, 1, 1], [], []>} : vector<128x64xf32>, vector<64x14xf32>, vector<128x14xf32> -> vector<128x14xf32>
    %178 = arith.addf %171, %177 : vector<128x14xf32>
    %cst_151 = arith.constant dense<0.000000e+00> : vector<128xf32>
    %179 = vector.multi_reduction <add>, %178, %cst_151 [1] : vector<128x14xf32> to vector<128xf32>
    %180 = vector.shape_cast %179 : vector<128xf32> to vector<128x1xf32>
    %cst_152 = arith.constant 1.400000e+01 : f32
    %181 = vector.broadcast %cst_152 : f32 to vector<128x1xf32>
    %182 = arith.divf %180, %181 : vector<128x1xf32>
    %183 = vector.broadcast %182 : vector<128x1xf32> to vector<128x14xf32>
    %184 = arith.subf %178, %183 : vector<128x14xf32>
    %185 = vector.broadcast %182 : vector<128x1xf32> to vector<128x14xf32>
    %186 = arith.subf %178, %185 : vector<128x14xf32>
    %187 = arith.mulf %184, %186 : vector<128x14xf32>
    %cst_153 = arith.constant dense<0.000000e+00> : vector<128xf32>
    %188 = vector.multi_reduction <add>, %187, %cst_153 [1] : vector<128x14xf32> to vector<128xf32>
    %189 = vector.shape_cast %188 : vector<128xf32> to vector<128x1xf32>
    %cst_154 = arith.constant 1.400000e+01 : f32
    %190 = vector.broadcast %cst_154 : f32 to vector<128x1xf32>
    %191 = arith.divf %189, %190 : vector<128x1xf32>
    %192 = vector.broadcast %182 : vector<128x1xf32> to vector<128x14xf32>
    %193 = arith.subf %178, %192 : vector<128x14xf32>
    %cst_155 = arith.constant 9.99999974E-6 : f32
    %194 = vector.broadcast %cst_155 : f32 to vector<128x1xf32>
    %195 = arith.addf %191, %194 : vector<128x1xf32>
    %196 = math.rsqrt %195 : vector<128x1xf32>
    %197 = vector.broadcast %196 : vector<128x1xf32> to vector<128x14xf32>
    %198 = arith.mulf %193, %197 : vector<128x14xf32>
    %c0_156 = arith.constant 0 : index
    %c0_157 = arith.constant 0 : index
    %199 = vector.load %arg14[%c0_156, %c0_157] : memref<128x1xf32, #tpu.memory_space<vmem>>, vector<128x1xf32>
    %200 = vector.broadcast %199 : vector<128x1xf32> to vector<128x14xf32>
    %201 = arith.mulf %198, %200 : vector<128x14xf32>
    %c0_158 = arith.constant 0 : index
    %c0_159 = arith.constant 0 : index
    %202 = vector.load %arg15[%c0_158, %c0_159] : memref<128x1xf32, #tpu.memory_space<vmem>>, vector<128x1xf32>
    %203 = vector.broadcast %202 : vector<128x1xf32> to vector<128x14xf32>
    %204 = arith.addf %201, %203 : vector<128x14xf32>
    %cst_160 = arith.constant 0.000000e+00 : f32
    %205 = vector.broadcast %cst_160 : f32 to vector<128x14xf32>
    %206 = arith.cmpf oge, %204, %205 : vector<128x14xf32>
    %cst_161 = arith.constant 2.000000e-01 : f32
    %207 = vector.broadcast %cst_161 : f32 to vector<128x14xf32>
    %208 = arith.mulf %207, %204 : vector<128x14xf32>
    %209 = arith.select %206, %204, %208 : vector<128x14xi1>, vector<128x14xf32>
    %c0_162 = arith.constant 0 : index
    %c0_163 = arith.constant 0 : index
    %c0_164 = arith.constant 0 : index
    %210 = vector.load %arg16[%c0_162, %c0_163, %c0_164] : memref<4x14x12xf32, #tpu.memory_space<vmem>>, vector<1x14x12xf32>
    %211 = vector.shape_cast %210 : vector<1x14x12xf32> to vector<14x12xf32>
    %cst_165 = arith.constant dense<0.000000e+00> : vector<128x12xf32>
    %212 = tpu.matmul %209, %211, %cst_165 {dimension_numbers = #tpu.dot_dimension_numbers<[1], [0], [0], [1], [0, 0, 1, 1], [], []>} : vector<128x14xf32>, vector<14x12xf32>, vector<128x12xf32> -> vector<128x12xf32>
    %c0_166 = arith.constant 0 : index
    %c0_167 = arith.constant 0 : index
    %c0_168 = arith.constant 0 : index
    %213 = vector.load %arg17[%c0_166, %c0_167, %c0_168] : memref<4x1x128xf32, #tpu.memory_space<vmem>>, vector<1x1x128xf32>
    %214 = vector.shape_cast %213 : vector<1x1x128xf32> to vector<1x128xf32>
    %cst_169 = arith.constant dense<0.000000e+00> : vector<1x12xf32>
    %215 = tpu.matmul %214, %212, %cst_169 {dimension_numbers = #tpu.dot_dimension_numbers<[1], [0], [0], [1], [0, 0, 1, 1], [], []>} : vector<1x128xf32>, vector<128x12xf32>, vector<1x12xf32> -> vector<1x12xf32>
    %c1_170 = arith.constant 1 : index
    %c0_171 = arith.constant 0 : index
    %c0_172 = arith.constant 0 : index
    %216 = vector.load %arg16[%c1_170, %c0_171, %c0_172] : memref<4x14x12xf32, #tpu.memory_space<vmem>>, vector<1x14x12xf32>
    %217 = vector.shape_cast %216 : vector<1x14x12xf32> to vector<14x12xf32>
    %cst_173 = arith.constant dense<0.000000e+00> : vector<128x12xf32>
    %218 = tpu.matmul %209, %217, %cst_173 {dimension_numbers = #tpu.dot_dimension_numbers<[1], [0], [0], [1], [0, 0, 1, 1], [], []>} : vector<128x14xf32>, vector<14x12xf32>, vector<128x12xf32> -> vector<128x12xf32>
    %c1_174 = arith.constant 1 : index
    %c0_175 = arith.constant 0 : index
    %c0_176 = arith.constant 0 : index
    %219 = vector.load %arg17[%c1_174, %c0_175, %c0_176] : memref<4x1x128xf32, #tpu.memory_space<vmem>>, vector<1x1x128xf32>
    %220 = vector.shape_cast %219 : vector<1x1x128xf32> to vector<1x128xf32>
    %cst_177 = arith.constant dense<0.000000e+00> : vector<1x12xf32>
    %221 = tpu.matmul %220, %218, %cst_177 {dimension_numbers = #tpu.dot_dimension_numbers<[1], [0], [0], [1], [0, 0, 1, 1], [], []>} : vector<1x128xf32>, vector<128x12xf32>, vector<1x12xf32> -> vector<1x12xf32>
    %222 = arith.addf %215, %221 : vector<1x12xf32>
    %c2_178 = arith.constant 2 : index
    %c0_179 = arith.constant 0 : index
    %c0_180 = arith.constant 0 : index
    %223 = vector.load %arg16[%c2_178, %c0_179, %c0_180] : memref<4x14x12xf32, #tpu.memory_space<vmem>>, vector<1x14x12xf32>
    %224 = vector.shape_cast %223 : vector<1x14x12xf32> to vector<14x12xf32>
    %cst_181 = arith.constant dense<0.000000e+00> : vector<128x12xf32>
    %225 = tpu.matmul %209, %224, %cst_181 {dimension_numbers = #tpu.dot_dimension_numbers<[1], [0], [0], [1], [0, 0, 1, 1], [], []>} : vector<128x14xf32>, vector<14x12xf32>, vector<128x12xf32> -> vector<128x12xf32>
    %c2_182 = arith.constant 2 : index
    %c0_183 = arith.constant 0 : index
    %c0_184 = arith.constant 0 : index
    %226 = vector.load %arg17[%c2_182, %c0_183, %c0_184] : memref<4x1x128xf32, #tpu.memory_space<vmem>>, vector<1x1x128xf32>
    %227 = vector.shape_cast %226 : vector<1x1x128xf32> to vector<1x128xf32>
    %cst_185 = arith.constant dense<0.000000e+00> : vector<1x12xf32>
    %228 = tpu.matmul %227, %225, %cst_185 {dimension_numbers = #tpu.dot_dimension_numbers<[1], [0], [0], [1], [0, 0, 1, 1], [], []>} : vector<1x128xf32>, vector<128x12xf32>, vector<1x12xf32> -> vector<1x12xf32>
    %229 = arith.addf %222, %228 : vector<1x12xf32>
    %c3_186 = arith.constant 3 : index
    %c0_187 = arith.constant 0 : index
    %c0_188 = arith.constant 0 : index
    %230 = vector.load %arg16[%c3_186, %c0_187, %c0_188] : memref<4x14x12xf32, #tpu.memory_space<vmem>>, vector<1x14x12xf32>
    %231 = vector.shape_cast %230 : vector<1x14x12xf32> to vector<14x12xf32>
    %cst_189 = arith.constant dense<0.000000e+00> : vector<128x12xf32>
    %232 = tpu.matmul %209, %231, %cst_189 {dimension_numbers = #tpu.dot_dimension_numbers<[1], [0], [0], [1], [0, 0, 1, 1], [], []>} : vector<128x14xf32>, vector<14x12xf32>, vector<128x12xf32> -> vector<128x12xf32>
    %c3_190 = arith.constant 3 : index
    %c0_191 = arith.constant 0 : index
    %c0_192 = arith.constant 0 : index
    %233 = vector.load %arg17[%c3_190, %c0_191, %c0_192] : memref<4x1x128xf32, #tpu.memory_space<vmem>>, vector<1x1x128xf32>
    %234 = vector.shape_cast %233 : vector<1x1x128xf32> to vector<1x128xf32>
    %cst_193 = arith.constant dense<0.000000e+00> : vector<1x12xf32>
    %235 = tpu.matmul %234, %232, %cst_193 {dimension_numbers = #tpu.dot_dimension_numbers<[1], [0], [0], [1], [0, 0, 1, 1], [], []>} : vector<1x128xf32>, vector<128x12xf32>, vector<1x12xf32> -> vector<1x12xf32>
    %236 = arith.addf %229, %235 : vector<1x12xf32>
    %c0_194 = arith.constant 0 : index
    %c0_195 = arith.constant 0 : index
    %237 = vector.load %arg18[%c0_194, %c0_195] : memref<1x1xf32, #tpu.memory_space<vmem>>, vector<1x1xf32>
    %238 = vector.broadcast %237 : vector<1x1xf32> to vector<1x12xf32>
    %239 = arith.addf %236, %238 : vector<1x12xf32>
    %c0_196 = arith.constant 0 : index
    %c0_197 = arith.constant 0 : index
    %240 = vector.load %arg19[%c0_196, %c0_197] : memref<1x12xf32, #tpu.memory_space<vmem>>, vector<1x12xf32>
    tpu.vector_store %arg19[%c0_196, %c0_197], %239 {strides = array<i32>} : memref<1x12xf32, #tpu.memory_space<vmem>>, vector<1x12xf32>,
    return
  }
}

</mosaic_0001>

<bundles_post_ra>
// kernel: _lambda_.1
= control target key start
LH: loop header
LB: loop body
LE: loop exit
PB: predicated region body
PF: predicated region fallthrough
CT: control target
= control target key end

     0   :  { %s9273_s0 = inlined_call_operand.vmem [shape: f32[3,128], index: 0, kind: input, shape index: {}]   ;;  %s9274_s1 = inlined_call_operand.hbm [shape: f32[4,128,64], index: 1, kind: input, shape index: {}]   ;;  %s9275_s2 = inlined_call_operand.vmem [shape: f32[4,16,3], index: 2, kind: input, shape index: {}]   ;;  %s9276_s3 = inlined_call_operand.vmem [shape: f32[16,1], index: 3, kind: input, shape index: {}]   ;;  %s9277_s4 = inlined_call_operand.hbm [shape: f32[4,64,32], index: 4, kind: input, shape index: {}]   ;;  %s9278_s5 = inlined_call_operand.vmem [shape: f32[4,32,16], index: 5, kind: input, shape index: {}]   ;;  %s9279_s6 = inlined_call_operand.vmem [shape: f32[32,1], index: 6, kind: input, shape index: {}]   ;;  %s9280_s7 = inlined_call_operand.vmem [shape: f32[32,1], index: 7, kind: input, shape index: {}]   ;;  %s9281_s8 = inlined_call_operand.hbm [shape: f32[4,32,16], index: 8, kind: input, shape index: {}]   ;;  %s9282_s9 = inlined_call_operand.vmem [shape: f32[4,64,32], index: 9, kind: input, shape index: {}]   ;;  %s9283_s10 = inlined_call_operand.vmem [shape: f32[64,1], index: 10, kind: input, shape index: {}]   ;;  %s9284_s11 = inlined_call_operand.vmem [shape: f32[64,1], index: 11, kind: input, shape index: {}]   ;;  %s9285_s12 = inlined_call_operand.hbm [shape: f32[4,16,14], index: 12, kind: input, shape index: {}]   ;;  %s9286_s13 = inlined_call_operand.hbm [shape: f32[4,128,64], index: 13, kind: input, shape index: {}]   ;;  %s9287_s14 = inlined_call_operand.vmem [shape: f32[128,1], index: 14, kind: input, shape index: {}]   ;;  %s9288_s15 = inlined_call_operand.vmem [shape: f32[128,1], index: 15, kind: input, shape index: {}]   ;;  %s9289_s16 = inlined_call_operand.hbm [shape: f32[4,14,12], index: 16, kind: input, shape index: {}]   ;;  %s9290_s17 = inlined_call_operand.vmem [shape: f32[4,1,128], index: 17, kind: input, shape index: {}]   ;;  %s9291_s18 = inlined_call_operand.<no memory space> [shape: f32[1,1], index: 18, kind: input, shape index: {}]   ;;  %s9292_s19 = inlined_call_operand.vmem [shape: f32[1,12], index: 19, kind: output, shape index: {}]  }
   0x1   :  { %9297 = sst [smem:[#allocation18_spill]] %s9273_s0  ;;  %v24_v0 = vstv %s9291_s18 }
   0x2   :  { %9298 = sst [smem:[#allocation19_spill]] %s9274_s1  ;;  %25 = vst [vmem:[#allocation2] sm:$0x1] %v24_v0 }
   0x3   :  { %9299 = sst [smem:[#allocation20_spill]] %s9275_s2 }
   0x4   :  { %9300 = sst [smem:[#allocation21_spill]] %s9276_s3 }
   0x5   :  { %26 = vsyncpa [#allocation4], 0 }
   0x6   :  { %27 = vsyncpa [#allocation6], 0 }
   0x7   :  { %28 = vsyncpa [#allocation9], 0 }
   0x8   :  { %29 = vsyncpa [#allocation12], 0  ;;  %s7574_s20 = smov [#allocation5]   ;;  %s7575_s1 = smov [#allocation8]  }
   0x9   :  { %s53_s21 = sshll.u32 %s7574_s20, 4  ;;  %s89_s22 = sshll.u32 %s7575_s1, 4  ;;  %s54_s21 = int_to_ptr.vmem [resolvable:$true] %s53_s21  ;;  %s90_s22 = int_to_ptr.vmem [resolvable:$true] %s89_s22 }
   0xa   :  { %s7454_s2 = scalar_lea.vmem %s54_s21, 4096  ;;  %p7459_p1 = scmp.lt.s32.totalorder %s54_s21, %s54_s21 }
   0xb   :  { %p7455_p0 = scmp.ne.s32.totalorder %s54_s21, %s7454_s2  ;;  %p7460_p2 = scmp.lt.s32.totalorder %s7454_s2, %s7454_s2 }
   0xd   :  { %p7461_p3 = por %p7460_p2, %p7459_p1 }
   0xf   :  { %p7462_p4 = pnand %p7461_p3, %p7455_p0 }
  0x11   :  { %7465 = shalt.err (!%p7462_p4)
}
  0x12   :  { %s7576_s23 = smov 128   ;;  %s7577_s18 = smov 8  }
  0x13   :  { %59 = dma.hbm_to_vmem [thread:$0]  %s9277_s4, 4096, %s54_s21, [#allocation6], %s7576_s23, %s7576_s23, %s7577_s18  }
  0x14   :  { %s7474_s3 = scalar_lea.vmem %s90_s22, 1024  ;;  %p7479_p6 = scmp.lt.s32.totalorder %s90_s22, %s90_s22 }
  0x15   :  { %p7475_p5 = scmp.ne.s32.totalorder %s90_s22, %s7474_s3  ;;  %p7480_p7 = scmp.lt.s32.totalorder %s7474_s3, %s7474_s3 }
  0x17   :  { %p7481_p8 = por %p7480_p7, %p7479_p6 }
  0x19   :  { %p7482_p9 = pnand %p7481_p8, %p7475_p5 }
  0x1b   :  { %7485 = shalt.err (!%p7482_p9)
}
  0x1c   :  { %95 = dma.hbm_to_vmem [thread:$0]  %s9285_s12, 1024, %s90_s22, [#allocation9], %s7576_s23, %s7576_s23, %s7577_s18  }
  0x1d   :  { %s7578_s28 = smov [#allocation3]   ;;  %s7579_s0 = smov [#allocation7]  }
  0x1e   :  { %s37_s29 = sshll.u32 %s7578_s28, 4  ;;  %s71_s30 = sshll.u32 %s7579_s0, 4  ;;  %s38_s29 = int_to_ptr.vmem [resolvable:$true] %s37_s29  ;;  %s72_s30 = int_to_ptr.vmem [resolvable:$true] %s71_s30 }
  0x1f   :  { %s7494_s4 = scalar_lea.vmem %s38_s29, 8192  ;;  %p7499_p11 = scmp.lt.s32.totalorder %s38_s29, %s38_s29 }
  0x20   :  { %p7495_p10 = scmp.ne.s32.totalorder %s38_s29, %s7494_s4  ;;  %p7500_p12 = scmp.lt.s32.totalorder %s7494_s4, %s7494_s4 }
  0x22   :  { %p7501_p13 = por %p7500_p12, %p7499_p11 }
  0x24   :  { %p7502_p0 = pnand %p7501_p13, %p7495_p10 }
  0x26   :  { %7505 = shalt.err (!%p7502_p0)
}
  0x27   :  { %s9301_s1 = sld [smem:[#allocation19_spill]]  ;;  %s7514_s12 = scalar_lea.vmem %s72_s30, 2048 }
  0x28   :  { %p7515_p1 = scmp.ne.s32.totalorder %s72_s30, %s7514_s12  ;;  %p7519_p2 = scmp.lt.s32.totalorder %s72_s30, %s72_s30 }
  0x29   :  { %p7520_p3 = scmp.lt.s32.totalorder %s7514_s12, %s7514_s12 }
  0x2b   :  { %p7521_p4 = por %p7520_p3, %p7519_p2 }
  0x2d   :  { %43 = dma.hbm_to_vmem [thread:$0]  %s9301_s1, 8192, %s38_s29, [#allocation4], %s7576_s23, %s7576_s23, %s7577_s18  }
  0x2e   :  { %p7522_p5 = pnand %p7521_p4, %p7515_p1 }
  0x30   :  { %7525 = shalt.err (!%p7522_p5)
}
  0x31   :  { %77 = dma.hbm_to_vmem [thread:$0]  %s9281_s8, 2048, %s72_s30, [#allocation6], %s7576_s23, %s7576_s23, %s7577_s18  }
  0x32   :  { %s7580_s24 = smov [#allocation10]   ;;  %s7581_s3 = smov [#allocation11]  }
  0x33   :  { %s101_s25 = sshll.u32 %s7580_s24, 4  ;;  %s117_s26 = sshll.u32 %s7581_s3, 4  ;;  %s102_s25 = int_to_ptr.vmem [resolvable:$true] %s101_s25  ;;  %s118_s26 = int_to_ptr.vmem [resolvable:$true] %s117_s26 }
  0x34   :  { %s7534_s27 = scalar_lea.vmem %s102_s25, 8192  ;;  %p7539_p7 = scmp.lt.s32.totalorder %s102_s25, %s102_s25 }
  0x35   :  { %p7535_p6 = scmp.ne.s32.totalorder %s102_s25, %s7534_s27  ;;  %p7540_p8 = scmp.lt.s32.totalorder %s7534_s27, %s7534_s27 }
  0x37   :  { %p7541_p9 = por %p7540_p8, %p7539_p7 }
  0x39   :  { %p7542_p10 = pnand %p7541_p9, %p7535_p6 }
  0x3b   :  { %7545 = shalt.err (!%p7542_p10)
}
  0x3c   :  { %107 = dma.hbm_to_vmem [thread:$0]  %s9286_s13, 8192, %s102_s25, [#allocation9], %s7576_s23, %s7576_s23, %s7577_s18  }
  0x3d   :  { %s7554_s8 = scalar_lea.vmem %s118_s26, 1024  ;;  %p7559_p12 = scmp.lt.s32.totalorder %s118_s26, %s118_s26 }
  0x3e   :  { %p7555_p11 = scmp.ne.s32.totalorder %s118_s26, %s7554_s8  ;;  %p7560_p13 = scmp.lt.s32.totalorder %s7554_s8, %s7554_s8 }
  0x40   :  { %p7561_p0 = por %p7560_p13, %p7559_p12 }
  0x42   :  { %p7562_p1 = pnand %p7561_p0, %p7555_p11 }
  0x44   :  { %7565 = shalt.err (!%p7562_p1)
}
  0x45   :  { %123 = dma.hbm_to_vmem [thread:$0]  %s9289_s16, 1024, %s118_s26, [#allocation12], %s7576_s23, %s7576_s23, %s7577_s18  }
  0x46   :  { %7566 = dma.done.wait [#allocation4], 8192  }
  0x47   :  { %7567 = vsyncadd [#allocation4], 4294959104 }
  0x48   :  { %7568 = dma.done.wait [#allocation6], 6144  }
  0x49   :  { %7569 = vsyncadd [#allocation6], 4294961152 }
  0x4a   :  { %7570 = dma.done.wait [#allocation9], 9216  }
  0x4b   :  { %7571 = vsyncadd [#allocation9], 4294958080 }
  0x4c   :  { %7572 = dma.done.wait [#allocation12], 1024  }
  0x4d   :  { %7573 = vsyncadd [#allocation12], 4294966272  ;;  %v9295_v1 = vmov 0.0   ;;  %vm7583_vm0 = vmmov 0   ;;  %v162_v2 = vld [vmem:[#allocation3 + $0x78] sm:$0xff]  ;;  %v161_v4 = vld [vmem:[#allocation3 + $0x70] sm:$0xff] }
  0x4e   :  { %6489 = vmatprep.subr.mxu0 %v9295_v1  ;;  %6524 = vmatprep.subr.mxu1 %v9295_v1  ;;  %v251_v3 = vld [vmem:[#allocation3 + $0xf8] sm:$0xff]  ;;  %v250_v5 = vld [vmem:[#allocation3 + $0xf0] sm:$0xff]  ;;  %v160_v6 = vld [vmem:[#allocation3 + $0x68] sm:$0xff]  ;;  %s9302_s23 = sld [smem:[#allocation18_spill]]  ;;  %vm325_vm1 = vcmask 23552   ;;  %vm332_vm2 = vcmask 1042432  }
  0x4f   :  { %6521 = vmatprep.mubr.msk.f32.mxu0 %vm7583_vm0, %v9295_v1  ;;  %6556 = vmatprep.mubr.msk.f32.mxu1 %vm7583_vm0, %v9295_v1  ;;  %v249_v7 = vld [vmem:[#allocation3 + $0xe8] sm:$0xff]  ;;  %v159_v8 = vld [vmem:[#allocation3 + $0x60] sm:$0xff]  ;;  %v158_v10 = vld [vmem:[#allocation3 + $0x58] sm:$0xff]  ;;  %s9303_s20 = sld [smem:[#allocation20_spill]]  ;;  %vm875_vm5 = vcmask 523264   ;;  %vm1050_vm6 = vcmask 130048  }
  0x50   :  { %6490 = vmatpush3.msra.mxu0 %v162_v2  ;;  %6525 = vmatpush3.msra.mxu1 %v251_v3  ;;  %v248_v9 = vld [vmem:[#allocation3 + $0xe0] sm:$0xff]  ;;  %v247_v11 = vld [vmem:[#allocation3 + $0xd8] sm:$0xff]  ;;  %v157_v12 = vld [vmem:[#allocation3 + $0x50] sm:$0xff]  ;;  %s9304_s30 = sld [smem:[#allocation21_spill]]  ;;  %vm1625_vm7 = vcmask 261120  }
  0x51   :  { %6491 = vmatprep.subr.mxu0 %v9295_v1  ;;  %6526 = vmatprep.subr.mxu1 %v9295_v1  ;;  %v246_v13 = vld [vmem:[#allocation3 + $0xd0] sm:$0xff]  ;;  %v156_v14 = vld [vmem:[#allocation3 + $0x48] sm:$0xff]  ;;  %v155_v16 = vld [vmem:[#allocation3 + $0x40] sm:$0xff] }
  0x52   :  { %6492 = vmatpush3.msra.mxu0 %v161_v4  ;;  %6527 = vmatpush3.msra.mxu1 %v250_v5  ;;  %v245_v15 = vld [vmem:[#allocation3 + $0xc8] sm:$0xff]  ;;  %v244_v17 = vld [vmem:[#allocation3 + $0xc0] sm:$0xff]  ;;  %v154_v18 = vld [vmem:[#allocation3 + $0x38] sm:$0xff] }
  0x53   :  { %6493 = vmatprep.subr.mxu0 %v9295_v1  ;;  %6528 = vmatprep.subr.mxu1 %v9295_v1  ;;  %v243_v19 = vld [vmem:[#allocation3 + $0xb8] sm:$0xff]  ;;  %v153_v20 = vld [vmem:[#allocation3 + $0x30] sm:$0xff]  ;;  %v152_v22 = vld [vmem:[#allocation3 + $0x28] sm:$0xff] }
  0x54   :  { %6494 = vmatpush3.msra.mxu0 %v160_v6  ;;  %6529 = vmatpush3.msra.mxu1 %v249_v7  ;;  %v242_v21 = vld [vmem:[#allocation3 + $0xb0] sm:$0xff]  ;;  %v241_v23 = vld [vmem:[#allocation3 + $0xa8] sm:$0xff]  ;;  %v151_v24 = vld [vmem:[#allocation3 + $0x20] sm:$0xff] }
  0x55   :  { %6495 = vmatprep.subr.mxu0 %v9295_v1  ;;  %6530 = vmatprep.subr.mxu1 %v9295_v1  ;;  %v240_v25 = vld [vmem:[#allocation3 + $0xa0] sm:$0xff]  ;;  %v150_v26 = vld [vmem:[#allocation3 + $0x18] sm:$0xff]  ;;  %v149_v28 = vld [vmem:[#allocation3 + $0x10] sm:$0xff] }
  0x56   :  { %6496 = vmatpush3.msra.mxu0 %v159_v8  ;;  %6531 = vmatpush3.msra.mxu1 %v248_v9  ;;  %v239_v27 = vld [vmem:[#allocation3 + $0x98] sm:$0xff]  ;;  %v238_v29 = vld [vmem:[#allocation3 + $0x90] sm:$0xff]  ;;  %v148_v30 = vld [vmem:[#allocation3 + $0x8] sm:$0xff] }
  0x57   :  { %6497 = vmatprep.subr.mxu0 %v9295_v1  ;;  %6532 = vmatprep.subr.mxu1 %v9295_v1  ;;  %v237_v31 = vld [vmem:[#allocation3 + $0x88] sm:$0xff]  ;;  %v147_v32 = vld [vmem:[#allocation3] sm:$0xff]  ;;  %v5697_v39 = vld [vmem:[%s9303_s20 + $0x18] sm:$0xff] }
  0x58   :  { %6498 = vmatpush3.msra.mxu0 %v158_v10  ;;  %6533 = vmatpush3.msra.mxu1 %v247_v11  ;;  %v236_v33 = vld [vmem:[#allocation3 + $0x80] sm:$0xff]  ;;  %v5696_v35 = vld [vmem:[%s9303_s20 + $0x10] sm:$0xff]  ;;  %v511_v42 = vld [vmem:[#allocation3 + $0x178] sm:$0xff] }
  0x59   :  { %6499 = vmatprep.subr.mxu0 %v9295_v1  ;;  %6534 = vmatprep.subr.mxu1 %v9295_v1  ;;  %v7761_v34 = vld [vmem:[%s9302_s23] sm:$0x7]  ;;  %v234_v40 = vld [vmem:[%s9303_s20 + $0x8] sm:$0xff]  ;;  %v510_v44 = vld [vmem:[#allocation3 + $0x170] sm:$0xff] }
  0x5a   :  { %6500 = vmatpush3.msra.mxu0 %v157_v12  ;;  %6535 = vmatpush3.msra.mxu1 %v246_v13  ;;  %v233_v36 = vld [vmem:[%s9303_s20] sm:$0xff]  ;;  %v509_v45 = vld [vmem:[#allocation3 + $0x168] sm:$0xff]  ;;  %v506_v48 = vld [vmem:[#allocation3 + $0x150] sm:$0xff] }
  0x5b   :  { %6501 = vmatprep.subr.mxu0 %v9295_v1  ;;  %6536 = vmatprep.subr.mxu1 %v9295_v1  ;;  %v508_v46 = vld [vmem:[#allocation3 + $0x160] sm:$0xff]  ;;  %v507_v47 = vld [vmem:[#allocation3 + $0x158] sm:$0xff]  ;;  %v505_v49 = vld [vmem:[#allocation3 + $0x148] sm:$0xff] }
  0x5c   :  { %6502 = vmatpush3.msra.mxu0 %v156_v14  ;;  %6537 = vmatpush3.msra.mxu1 %v245_v15  ;;  %v504_v50 = vld [vmem:[#allocation3 + $0x140] sm:$0xff]  ;;  %v503_v51 = vld [vmem:[#allocation3 + $0x138] sm:$0xff]  ;;  %v502_v52 = vld [vmem:[#allocation3 + $0x130] sm:$0xff] }
  0x5d   :  { %6503 = vmatprep.subr.mxu0 %v9295_v1  ;;  %6538 = vmatprep.subr.mxu1 %v9295_v1  ;;  %v501_v53 = vld [vmem:[#allocation3 + $0x128] sm:$0xff]  ;;  %v500_v54 = vld [vmem:[#allocation3 + $0x120] sm:$0xff]  ;;  %v499_v55 = vld [vmem:[#allocation3 + $0x118] sm:$0xff] }
  0x5e   :  { %6504 = vmatpush3.msra.mxu0 %v155_v16  ;;  %6539 = vmatpush3.msra.mxu1 %v244_v17  ;;  %v498_v56 = vld [vmem:[#allocation3 + $0x110] sm:$0xff]  ;;  %v497_v57 = vld [vmem:[#allocation3 + $0x108] sm:$0xff]  ;;  %v496_v58 = vld [vmem:[#allocation3 + $0x100] sm:$0xff] }
  0x5f   :  { %6505 = vmatprep.subr.mxu0 %v9295_v1  ;;  %6540 = vmatprep.subr.mxu1 %v9295_v1  ;;  %v5704_v59 = vld [vmem:[%s9303_s20 + $0x20] sm:$0xff]  ;;  %v5705_v2 = vld [vmem:[%s9303_s20 + $0x28] sm:$0xff]  ;;  %v686_v5 = vld [vmem:[#allocation3 + $0x1f0] sm:$0xff] }
  0x60   :  { %6506 = vmatpush3.msra.mxu0 %v154_v18  ;;  %6541 = vmatpush3.msra.mxu1 %v243_v19  ;;  %v687_v3 = vld [vmem:[#allocation3 + $0x1f8] sm:$0xff]  ;;  %v685_v6 = vld [vmem:[#allocation3 + $0x1e8] sm:$0xff]  ;;  %v684_v7 = vld [vmem:[#allocation3 + $0x1e0] sm:$0xff] }
  0x61   :  { %6507 = vmatprep.subr.mxu0 %v9295_v1  ;;  %6542 = vmatprep.subr.mxu1 %v9295_v1  ;;  %v683_v8 = vld [vmem:[#allocation3 + $0x1d8] sm:$0xff]  ;;  %v682_v9 = vld [vmem:[#allocation3 + $0x1d0] sm:$0xff]  ;;  %v681_v10 = vld [vmem:[#allocation3 + $0x1c8] sm:$0xff] }
  0x62   :  { %6508 = vmatpush3.msra.mxu0 %v153_v20  ;;  %6543 = vmatpush3.msra.mxu1 %v242_v21  ;;  %v680_v11 = vld [vmem:[#allocation3 + $0x1c0] sm:$0xff]  ;;  %v679_v12 = vld [vmem:[#allocation3 + $0x1b8] sm:$0xff]  ;;  %v678_v13 = vld [vmem:[#allocation3 + $0x1b0] sm:$0xff] }
  0x63   :  { %6509 = vmatprep.subr.mxu0 %v9295_v1  ;;  %6544 = vmatprep.subr.mxu1 %v9295_v1  ;;  %v677_v14 = vld [vmem:[#allocation3 + $0x1a8] sm:$0xff]  ;;  %v676_v15 = vld [vmem:[#allocation3 + $0x1a0] sm:$0xff]  ;;  %v675_v16 = vld [vmem:[#allocation3 + $0x198] sm:$0xff] }
  0x64   :  { %6510 = vmatpush3.msra.mxu0 %v152_v22  ;;  %6545 = vmatpush3.msra.mxu1 %v241_v23  ;;  %v674_v17 = vld [vmem:[#allocation3 + $0x190] sm:$0xff]  ;;  %v673_v18 = vld [vmem:[#allocation3 + $0x188] sm:$0xff]  ;;  %v672_v19 = vld [vmem:[#allocation3 + $0x180] sm:$0xff]  ;;  %v7584_v22 = vmov 0  }
  0x65   :  { %6511 = vmatprep.subr.mxu0 %v9295_v1  ;;  %6546 = vmatprep.subr.mxu1 %v9295_v1  ;;  %v5709_v20 = vld [vmem:[%s9303_s20 + $0x30] sm:$0xff]  ;;  %v847_v21 = vld [vmem:[%s9304_s30] sm:$0xff] }
  0x66   :  { %6512 = vmatpush3.msra.mxu0 %v151_v24  ;;  %6547 = vmatpush3.msra.mxu1 %v240_v25  ;;  %v969_v23 = vld [vmem:[#allocation5 + $0x78] sm:$0xff]  ;;  %v968_v24 = vld [vmem:[#allocation5 + $0x70] sm:$0xff]  ;;  %v848_v25 = vld [vmem:[%s9304_s30 + $0x8] sm:$0xff] }
  0x67   :  { %6513 = vmatprep.subr.mxu0 %v9295_v1  ;;  %6548 = vmatprep.subr.mxu1 %v9295_v1 }
  0x68   :  { %6514 = vmatpush3.msra.mxu0 %v150_v26  ;;  %6549 = vmatpush3.msra.mxu1 %v239_v27  ;;  %v967_v26 = vld [vmem:[#allocation5 + $0x68] sm:$0xff] }
  0x69   :  { %6515 = vmatprep.subr.mxu0 %v9295_v1  ;;  %6550 = vmatprep.subr.mxu1 %v9295_v1 }
  0x6a   :  { %6516 = vmatpush3.msra.mxu0 %v149_v28  ;;  %6551 = vmatpush3.msra.mxu1 %v238_v29 }
  0x6b   :  { %6517 = vmatprep.subr.mxu0 %v9295_v1  ;;  %6552 = vmatprep.subr.mxu1 %v9295_v1 }
  0x6c   :  { %6518 = vmatpush3.msra.mxu0 %v148_v30  ;;  %6553 = vmatpush3.msra.mxu1 %v237_v31 }
  0x6d   :  { %6519 = vmatprep.subr.mxu0 %v9295_v1  ;;  %6554 = vmatprep.subr.mxu1 %v9295_v1 }
  0x6e   :  { %6520 = vmatpush3.msra.mxu0 %v147_v32  ;;  %6555 = vmatpush3.msra.mxu1 %v236_v33  ;;  %v5710_v32 = vld [vmem:[%s9303_s20 + $0x38] sm:$0xff] }
  0x6f   :  { %6522 = vmatmul.mubr.f32.vlgmr.msra.gmra.mxu0 %v7761_v34  ;;  %6557 = vmatmul.mubr.f32.vlgmr.msra.gmra.mxu1 %v7761_v34  ;;  %v874_v33 = vld [vmem:[#allocation5 + $0x38] sm:$0xff] }
  0x70   :  { %6561 = vmatprep.mubr.msk.f32.mxu0 %vm325_vm1, %v5696_v35  ;;  %6566 = vmatprep.mubr.msk.f32.mxu1 %vm325_vm1, %v233_v36  ;;  %v873_v35 = vld [vmem:[#allocation5 + $0x30] sm:$0xff]  ;;  %v872_v36 = vld [vmem:[#allocation5 + $0x28] sm:$0xff] }
  0x71   :  { %7388 = vset.pattern.permute.xlu0 %v7584_v22  ;;  %7389 = vset.pattern.permute.xlu1 %v7584_v22 }
  0x72   :  { %851 = vperm.xlu0 %7388, %v847_v21  }
  0x76   :  { %856 = vperm.xlu0 %7388, %v848_v25  }
 0x12f   :  { %v229_v37 = vpop.f32.mrf.mxu0  ;;  %v318_v38 = vpop.f32.mrf.mxu1 }
 0x130   :  { %6559 = vmatprep.subr.msk.mxu0 %vm332_vm2, %v318_v38  ;;  %6564 = vmatprep.subr.msk.mxu1 %vm332_vm2, %v229_v37 }
 0x131   :  { %v6558_v41 = vpop.f32.mrf.mxu1  ;;  %6560 = vmatpush3.msk.msra.mxu0 %vm332_vm2, %v318_v38  ;;  %6565 = vmatpush3.msk.msra.mxu1 %vm332_vm2, %v229_v37  ;;  %v6523_v43 = vpop.f32.mrf.mxu0  ;;  %v871_v37 = vld [vmem:[#allocation5 + $0x20] sm:$0xff] }
 0x132   :  { %6562 = vmatmul.mubr.msk.f32.vlgmr.msra.gmra.mxu0 %vm325_vm1, %v5697_v39  ;;  %6567 = vmatmul.mubr.msk.f32.vlgmr.msra.gmra.mxu1 %vm325_vm1, %v234_v40  ;;  %v966_v38 = vld [vmem:[#allocation5 + $0x60] sm:$0xff]  ;;  %v870_v39 = vld [vmem:[#allocation5 + $0x18] sm:$0xff]  ;;  %v869_v41 = vld [vmem:[#allocation5 + $0x10] sm:$0xff] }
 0x133   :  { %6569 = vmatprep.subr.mxu0 %v9295_v1  ;;  %6601 = vmatprep.mubr.msk.f32.mxu0 %vm7583_vm0, %v9295_v1  ;;  %v965_v40 = vld [vmem:[#allocation5 + $0x58] sm:$0xff]  ;;  %v868_v43 = vld [vmem:[#allocation5 + $0x8] sm:$0xff] }
 0x134   :  { %6570 = vmatpush3.msra.mxu0 %v511_v42  ;;  %6606 = vmatprep.mubr.msk.f32.mxu1 %vm325_vm1, %v5704_v59  ;;  %v964_v42 = vld [vmem:[#allocation5 + $0x50] sm:$0xff] }
 0x135   :  { %6571 = vmatprep.subr.mxu0 %v9295_v1 }
 0x136   :  { %6572 = vmatpush3.msra.mxu0 %v510_v44  ;;  %v963_v44 = vld [vmem:[#allocation5 + $0x48] sm:$0xff] }
 0x137   :  { %6573 = vmatprep.subr.mxu0 %v9295_v1 }
 0x138   :  { %6574 = vmatpush3.msra.mxu0 %v509_v45  ;;  %v867_v45 = vld [vmem:[#allocation5] sm:$0xff] }
 0x139   :  { %6575 = vmatprep.subr.mxu0 %v9295_v1 }
 0x13a   :  { %6576 = vmatpush3.msra.mxu0 %v508_v46  ;;  %v962_v46 = vld [vmem:[#allocation5 + $0x40] sm:$0xff] }
 0x13b   :  { %6577 = vmatprep.subr.mxu0 %v9295_v1 }
 0x13c   :  { %6578 = vmatpush3.msra.mxu0 %v507_v47  ;;  %v852_v47 = vpop.permute.xlu0 %851 }
 0x13d   :  { %6579 = vmatprep.subr.mxu0 %v9295_v1 }
 0x13e   :  { %6580 = vmatpush3.msra.mxu0 %v506_v48 }
 0x13f   :  { %6581 = vmatprep.subr.mxu0 %v9295_v1 }
 0x140   :  { %6582 = vmatpush3.msra.mxu0 %v505_v49 }
 0x141   :  { %6583 = vmatprep.subr.mxu0 %v9295_v1 }
 0x142   :  { %6584 = vmatpush3.msra.mxu0 %v504_v50  ;;  %v857_v50 = vpop.permute.xlu0 %856 }
 0x143   :  { %6585 = vmatprep.subr.mxu0 %v9295_v1 }
 0x144   :  { %6586 = vmatpush3.msra.mxu0 %v503_v51 }
 0x145   :  { %6587 = vmatprep.subr.mxu0 %v9295_v1 }
 0x146   :  { %6588 = vmatpush3.msra.mxu0 %v502_v52 }
 0x147   :  { %6589 = vmatprep.subr.mxu0 %v9295_v1 }
 0x148   :  { %6590 = vmatpush3.msra.mxu0 %v501_v53 }
 0x149   :  { %6591 = vmatprep.subr.mxu0 %v9295_v1 }
 0x14a   :  { %6592 = vmatpush3.msra.mxu0 %v500_v54 }
 0x14b   :  { %6593 = vmatprep.subr.mxu0 %v9295_v1 }
 0x14c   :  { %6594 = vmatpush3.msra.mxu0 %v499_v55 }
 0x14d   :  { %6595 = vmatprep.subr.mxu0 %v9295_v1 }
 0x14e   :  { %6596 = vmatpush3.msra.mxu0 %v498_v56 }
 0x14f   :  { %6597 = vmatprep.subr.mxu0 %v9295_v1 }
 0x150   :  { %6598 = vmatpush3.msra.mxu0 %v497_v57 }
 0x151   :  { %6599 = vmatprep.subr.mxu0 %v9295_v1 }
 0x152   :  { %6600 = vmatpush3.msra.mxu0 %v496_v58 }
 0x153   :  { %6602 = vmatmul.mubr.f32.vlgmr.msra.gmra.mxu0 %v7761_v34 }
 0x154   :  { %6646 = vmatprep.mubr.msk.f32.mxu0 %vm325_vm1, %v5709_v20 }
 0x1f2   :  { %v6563_v60 = vpop.f32.mrf.mxu0  ;;  %v6568_v61 = vpop.f32.mrf.mxu1 }
 0x1f3   :  { %v7810_v62 = vadd.f32 %v6568_v61, %v6563_v60  ;;  %v5718_v61 = vld [vmem:[%s9278_s5 + $0x20] sm:$0xff] }
 0x1f4   :  { %v7812_v63 = vpop.f32.mrf.mxu0  ;;  %v486_v27 = vpop.f32.mrf.mxu1 }
 0x1f5   :  { %v487_v48 = vadd.f32 %v486_v27, %v7812_v63 }
 0x213   :  { %v578_v0 = vpop.f32.mrf.mxu0 }
 0x214   :  { %6604 = vmatprep.subr.msk.mxu1 %vm332_vm2, %v578_v0 }
 0x215   :  { %v6603_v4 = vpop.f32.mrf.mxu0  ;;  %6605 = vmatpush3.msk.msra.mxu1 %vm332_vm2, %v578_v0 }
 0x216   :  { %6607 = vmatmul.mubr.msk.f32.vlgmr.msra.gmra.mxu1 %vm325_vm1, %v5705_v2  ;;  %6609 = vmatprep.subr.mxu1 %v9295_v1  ;;  %v5719_v2 = vld [vmem:[%s9278_s5 + $0x28] sm:$0xff] }
 0x217   :  { %6610 = vmatpush3.msra.mxu1 %v687_v3  ;;  %6641 = vmatprep.mubr.msk.f32.mxu1 %vm7583_vm0, %v9295_v1  ;;  %v5720_v3 = vld [vmem:[%s9278_s5 + $0x30] sm:$0xff] }
 0x218   :  { %6611 = vmatprep.subr.mxu1 %v9295_v1 }
 0x219   :  { %6612 = vmatpush3.msra.mxu1 %v686_v5  ;;  %v5721_v5 = vld [vmem:[%s9278_s5 + $0x38] sm:$0xff] }
 0x21a   :  { %6613 = vmatprep.subr.mxu1 %v9295_v1 }
 0x21b   :  { %6614 = vmatpush3.msra.mxu1 %v685_v6  ;;  %v1253_v6 = vld [vmem:[#allocation5 + $0xb8] sm:$0xff] }
 0x21c   :  { %6615 = vmatprep.subr.mxu1 %v9295_v1 }
 0x21d   :  { %6616 = vmatpush3.msra.mxu1 %v684_v7  ;;  %v957_v7 = vld [vmem:[%s9278_s5] sm:$0xff] }
 0x21e   :  { %6617 = vmatprep.subr.mxu1 %v9295_v1 }
 0x21f   :  { %6618 = vmatpush3.msra.mxu1 %v683_v8  ;;  %v958_v8 = vld [vmem:[%s9278_s5 + $0x8] sm:$0xff] }
 0x220   :  { %6619 = vmatprep.subr.mxu1 %v9295_v1 }
 0x221   :  { %6620 = vmatpush3.msra.mxu1 %v682_v9  ;;  %v959_v9 = vld [vmem:[%s9278_s5 + $0x10] sm:$0xff] }
 0x222   :  { %6621 = vmatprep.subr.mxu1 %v9295_v1 }
 0x223   :  { %6622 = vmatpush3.msra.mxu1 %v681_v10  ;;  %v1252_v10 = vld [vmem:[#allocation5 + $0xb0] sm:$0xff] }
 0x224   :  { %6623 = vmatprep.subr.mxu1 %v9295_v1 }
 0x225   :  { %6624 = vmatpush3.msra.mxu1 %v680_v11  ;;  %v1251_v11 = vld [vmem:[#allocation5 + $0xa8] sm:$0xff] }
 0x226   :  { %6625 = vmatprep.subr.mxu1 %v9295_v1 }
 0x227   :  { %6626 = vmatpush3.msra.mxu1 %v679_v12  ;;  %v960_v12 = vld [vmem:[%s9278_s5 + $0x18] sm:$0xff] }
 0x228   :  { %6627 = vmatprep.subr.mxu1 %v9295_v1 }
 0x229   :  { %6628 = vmatpush3.msra.mxu1 %v678_v13  ;;  %v1250_v13 = vld [vmem:[#allocation5 + $0xa0] sm:$0xff] }
 0x22a   :  { %6629 = vmatprep.subr.mxu1 %v9295_v1 }
 0x22b   :  { %6630 = vmatpush3.msra.mxu1 %v677_v14  ;;  %v1249_v14 = vld [vmem:[#allocation5 + $0x98] sm:$0xff] }
 0x22c   :  { %6631 = vmatprep.subr.mxu1 %v9295_v1 }
 0x22d   :  { %6632 = vmatpush3.msra.mxu1 %v676_v15  ;;  %v1248_v15 = vld [vmem:[#allocation5 + $0x90] sm:$0xff] }
 0x22e   :  { %6633 = vmatprep.subr.mxu1 %v9295_v1 }
 0x22f   :  { %6634 = vmatpush3.msra.mxu1 %v675_v16  ;;  %v1247_v16 = vld [vmem:[#allocation5 + $0x88] sm:$0xff] }
 0x230   :  { %6635 = vmatprep.subr.mxu1 %v9295_v1 }
 0x231   :  { %6636 = vmatpush3.msra.mxu1 %v674_v17  ;;  %v1246_v17 = vld [vmem:[#allocation5 + $0x80] sm:$0xff] }
 0x232   :  { %6637 = vmatprep.subr.mxu1 %v9295_v1 }
 0x233   :  { %6638 = vmatpush3.msra.mxu1 %v673_v18  ;;  %v5732_v18 = vld [vmem:[%s9278_s5 + $0x40] sm:$0xff] }
 0x234   :  { %6639 = vmatprep.subr.mxu1 %v9295_v1 }
 0x235   :  { %6640 = vmatpush3.msra.mxu1 %v672_v19 }
 0x236   :  { %6642 = vmatmul.mubr.f32.vlgmr.msra.gmra.mxu1 %v7761_v34  ;;  %6668 = vmatprep.subr.mxu1 %v969_v23 }
 0x237   :  { %6669 = vmatpush3.msra.mxu1 %v969_v23 }
 0x238   :  { %6670 = vmatprep.subr.mxu1 %v968_v24 }
 0x239   :  { %6671 = vmatpush3.msra.mxu1 %v968_v24 }
 0x23a   :  { %6672 = vmatprep.subr.mxu1 %v967_v26 }
 0x23b   :  { %6673 = vmatpush3.msra.mxu1 %v967_v26 }
 0x23c   :  { %6674 = vmatprep.subr.mxu1 %v966_v38 }
 0x23d   :  { %6675 = vmatpush3.msra.mxu1 %v966_v38  ;;  %v1439_v38 = vld [vmem:[#allocation5 + $0xd8] sm:$0xff] }
 0x23e   :  { %6676 = vmatprep.subr.mxu1 %v965_v40 }
 0x23f   :  { %6677 = vmatpush3.msra.mxu1 %v965_v40  ;;  %v1437_v40 = vld [vmem:[#allocation5 + $0xc8] sm:$0xff] }
 0x240   :  { %6678 = vmatprep.subr.mxu1 %v964_v42 }
 0x241   :  { %6679 = vmatpush3.msra.mxu1 %v964_v42  ;;  %v5742_v42 = vld [vmem:[%s9278_s5 + $0x60] sm:$0xff] }
 0x242   :  { %6680 = vmatprep.subr.mxu1 %v963_v44 }
 0x243   :  { %6681 = vmatpush3.msra.mxu1 %v963_v44 }
 0x244   :  { %6682 = vmatprep.subr.mxu1 %v962_v46 }
 0x245   :  { %6683 = vmatpush3.msra.mxu1 %v962_v46 }
 0x2d6   :  { %v6608_v28 = vpop.f32.mrf.mxu1 }
 0x2d7   :  { %v670_v29 = vadd.f32 %v6608_v28, %v7810_v62 }
 0x2d8   :  { %v660_v30 = vpop.f32.mrf.mxu1 }
 0x2d9   :  { %v669_v51 = vadd.f32 %v660_v30, %v487_v48 }
 0x2f6   :  { %v754_v31 = vpop.f32.mrf.mxu1 }
 0x2f7   :  { %6644 = vmatprep.subr.msk.mxu0 %vm332_vm2, %v754_v31 }
 0x2f8   :  { %v6643_v34 = vpop.f32.mrf.mxu1  ;;  %6645 = vmatpush3.msk.msra.mxu0 %vm332_vm2, %v754_v31  ;;  %v5733_v31 = vld [vmem:[%s9278_s5 + $0x48] sm:$0xff] }
 0x2f9   :  { %6647 = vmatmul.mubr.msk.f32.vlgmr.msra.gmra.mxu0 %vm325_vm1, %v5710_v32  ;;  %6649 = vmatprep.subr.mxu0 %v874_v33  ;;  %v1443_v32 = vld [vmem:[#allocation5 + $0xf8] sm:$0xff]  ;;  %v1442_v34 = vld [vmem:[#allocation5 + $0xf0] sm:$0xff] }
 0x2fa   :  { %6650 = vmatpush3.msra.mxu0 %v874_v33  ;;  %v5734_v33 = vld [vmem:[%s9278_s5 + $0x50] sm:$0xff] }
 0x2fb   :  { %6651 = vmatprep.subr.mxu0 %v873_v35 }
 0x2fc   :  { %6652 = vmatpush3.msra.mxu0 %v873_v35  ;;  %v5735_v35 = vld [vmem:[%s9278_s5 + $0x58] sm:$0xff] }
 0x2fd   :  { %6653 = vmatprep.subr.mxu0 %v872_v36 }
 0x2fe   :  { %6654 = vmatpush3.msra.mxu0 %v872_v36  ;;  %v1441_v36 = vld [vmem:[#allocation5 + $0xe8] sm:$0xff] }
 0x2ff   :  { %6655 = vmatprep.subr.mxu0 %v871_v37 }
 0x300   :  { %6656 = vmatpush3.msra.mxu0 %v871_v37  ;;  %v1440_v37 = vld [vmem:[#allocation5 + $0xe0] sm:$0xff] }
 0x301   :  { %6657 = vmatprep.subr.mxu0 %v870_v39 }
 0x302   :  { %6658 = vmatpush3.msra.mxu0 %v870_v39  ;;  %v1438_v39 = vld [vmem:[#allocation5 + $0xd0] sm:$0xff] }
 0x303   :  { %6659 = vmatprep.subr.mxu0 %v869_v41 }
 0x304   :  { %6660 = vmatpush3.msra.mxu0 %v869_v41  ;;  %v1436_v41 = vld [vmem:[#allocation5 + $0xc0] sm:$0xff] }
 0x305   :  { %6661 = vmatprep.subr.mxu0 %v868_v43 }
 0x306   :  { %6662 = vmatpush3.msra.mxu0 %v868_v43 }
 0x307   :  { %6663 = vmatprep.subr.mxu0 %v867_v45 }
 0x308   :  { %6664 = vmatpush3.msra.mxu0 %v867_v45 }
 0x3b9   :  { %v6648_v49 = vpop.f32.mrf.mxu0 }
 0x3ba   :  { %v846_v52 = vadd.f32 %v6648_v49, %v670_v29 }
 0x3bb   :  { %v836_v53 = vpop.f32.mrf.mxu0 }
 0x3bc   :  { %v860_v54 = vadd.f32 %v857_v50, %v846_v52  ;;  %v845_v55 = vadd.f32 %v836_v53, %v669_v51  ;;  %v5743_v51 = vld [vmem:[%s9278_s5 + $0x68] sm:$0xff]  ;;  %v5744_v52 = vld [vmem:[%s9278_s5 + $0x70] sm:$0xff]  ;;  %v5745_v53 = vld [vmem:[%s9278_s5 + $0x78] sm:$0xff] }
 0x3be   :  { %v859_v56 = vadd.f32 %v852_v47, %v845_v55  ;;  %v864_v57 = vmul.f32 0.2, %v860_v54  ;;  %vm862_vm3 = vcmp.ge.f32.partialorder %v860_v54, 0.0 }
 0x3c0   :  { %vm861_vm4 = vcmp.ge.f32.partialorder %v859_v56, 0.0  ;;  %v863_v58 = vmul.f32 0.2, %v859_v56  ;;  %v7863_v60 = vsel %vm862_vm3, %v860_v54, %v864_v57 }
 0x3c2   :  { %v7857_v59 = vsel %vm861_vm4, %v859_v56, %v863_v58 }
 0x3c3   :  { %6665 = vmatprep.mubr.msk.f32.mxu0 %vm875_vm5, %v7857_v59  ;;  %6684 = vmatprep.mubr.msk.f32.mxu1 %vm875_vm5, %v7857_v59 }
 0x3c4   :  { %6666 = vmatmul.mubr.msk.f32.vlgmr.msra.gmra.mxu0 %vm875_vm5, %v7863_v60  ;;  %6685 = vmatmul.mubr.msk.f32.vlgmr.msra.gmra.mxu1 %vm875_vm5, %v7863_v60 }
 0x3c5   :  { %6691 = vmatprep.mubr.msk.f32.mxu0 %vm1050_vm6, %v5718_v61  ;;  %6730 = vmatprep.mubr.msk.f32.mxu1 %vm1050_vm6, %v5732_v18 }
 0x484   :  { %v6686_v62 = vpop.f32.mrf.mxu1  ;;  %v6667_v63 = vpop.f32.mrf.mxu0 }
 0x485   :  { %6687 = vmatprep.subr.mxu0 %v6686_v62 }
 0x486   :  { %v1036_v0 = vpop.f32.mrf.mxu1  ;;  %6688 = vmatpush3.msra.mxu0 %v6686_v62  ;;  %v948_v4 = vpop.f32.mrf.mxu0 }
 0x487   :  { %6689 = vmatprep.subr.mxu0 %v1036_v0 }
 0x488   :  { %6690 = vmatpush3.msra.mxu0 %v1036_v0 }
 0x489   :  { %6692 = vmatmul.mubr.msk.f32.vlgmr.msra.gmra.mxu0 %vm1050_vm6, %v5719_v2  ;;  %6697 = vmatprep.subr.mxu0 %v6667_v63 }
 0x48a   :  { %6698 = vmatpush3.msra.mxu0 %v6667_v63  ;;  %6694 = vmatprep.mubr.msk.f32.mxu0 %vm1050_vm6, %v5720_v3 }
 0x48b   :  { %6699 = vmatprep.subr.mxu0 %v948_v4 }
 0x48c   :  { %6700 = vmatpush3.msra.mxu0 %v948_v4 }
 0x48d   :  { %6695 = vmatmul.mubr.msk.f32.gmra.mxu0 %vm1050_vm6, %v5721_v5  ;;  %6707 = vmatprep.subr.mxu0 %v1253_v6 }
 0x48e   :  { %6701 = vmatprep.mubr.msk.f32.mxu0 %vm1050_vm6, %v957_v7  ;;  %v1679_v7 = vld [vmem:[%s9279_s6] sm:$0xff] }
 0x491   :  { %6702 = vmatmul.mubr.msk.f32.vlgmr.msra.gmra.mxu0 %vm1050_vm6, %v958_v8  ;;  %v1680_v8 = vld [vmem:[%s9279_s6 + $0x8] sm:$0xff] }
 0x492   :  { %6708 = vmatpush3.msra.mxu0 %v1253_v6  ;;  %6704 = vmatprep.mubr.msk.f32.mxu0 %vm1050_vm6, %v959_v9  ;;  %v1707_v9 = vld [vmem:[%s9280_s7] sm:$0xff] }
 0x493   :  { %6709 = vmatprep.subr.mxu0 %v1252_v10 }
 0x494   :  { %6710 = vmatpush3.msra.mxu0 %v1252_v10  ;;  %v1709_v10 = vld [vmem:[%s9280_s7 + $0x10] sm:$0xff] }
 0x495   :  { %6711 = vmatprep.subr.mxu0 %v1251_v11  ;;  %6705 = vmatmul.mubr.msk.f32.gmra.mxu0 %vm1050_vm6, %v960_v12  ;;  %v2791_v12 = vld [vmem:[%s9283_s10 + $0x8] sm:$0xff] }
 0x496   :  { %6712 = vmatpush3.msra.mxu0 %v1251_v11  ;;  %6723 = vmatprep.mubr.msk.f32.mxu0 %vm875_vm5, %v7857_v59  ;;  %v1708_v11 = vld [vmem:[%s9280_s7 + $0x8] sm:$0xff] }
 0x497   :  { %6713 = vmatprep.subr.mxu0 %v1250_v13 }
 0x498   :  { %6714 = vmatpush3.msra.mxu0 %v1250_v13  ;;  %v1681_v13 = vld [vmem:[%s9279_s6 + $0x10] sm:$0xff] }
 0x499   :  { %6715 = vmatprep.subr.mxu0 %v1249_v14 }
 0x49a   :  { %6716 = vmatpush3.msra.mxu0 %v1249_v14  ;;  %v2792_v14 = vld [vmem:[%s9283_s10 + $0x10] sm:$0xff] }
 0x49b   :  { %6717 = vmatprep.subr.mxu0 %v1248_v15 }
 0x49c   :  { %6718 = vmatpush3.msra.mxu0 %v1248_v15  ;;  %v1682_v15 = vld [vmem:[%s9279_s6 + $0x18] sm:$0xff] }
 0x49d   :  { %6719 = vmatprep.subr.mxu0 %v1247_v16 }
 0x49e   :  { %6720 = vmatpush3.msra.mxu0 %v1247_v16 }
 0x49f   :  { %6721 = vmatprep.subr.mxu0 %v1246_v17 }
 0x4a0   :  { %6722 = vmatpush3.msra.mxu0 %v1246_v17 }
 0x4a1   :  { %6724 = vmatmul.mubr.msk.f32.vlgmr.msra.gmra.mxu0 %vm875_vm5, %v7863_v60 }
 0x4a2   :  { %6759 = vmatprep.mubr.msk.f32.mxu0 %vm1050_vm6, %v5742_v42  ;;  %v1859_v42 = vld [vmem:[#allocation7 + $0x30] sm:$0xff] }
 0x549   :  { %v6693_v19 = vpop.f32.mrf.mxu0 }
 0x54b   :  { %v7909_v20 = vpop.f32.mrf.mxu0 }
 0x54d   :  { %v6696_v21 = vpop.f32.mrf.mxu0 }
 0x54f   :  { %v7911_v22 = vpop.f32.mrf.mxu0 }
 0x551   :  { %v6703_v23 = vpop.f32.mrf.mxu0 }
 0x552   :  { %v1232_v24 = vadd.f32 %v6703_v23, %v6693_v19 }
 0x553   :  { %v1226_v25 = vpop.f32.mrf.mxu0 }
 0x554   :  { %v1227_v54 = vadd.f32 %v1226_v25, %v7909_v20 }
 0x555   :  { %v6706_v26 = vpop.f32.mrf.mxu0 }
 0x556   :  { %v1242_v27 = vadd.f32 %v6706_v26, %v6696_v21 }
 0x557   :  { %v7913_v28 = vpop.f32.mrf.mxu0 }
 0x561   :  { %v6725_v29 = vpop.f32.mrf.mxu0 }
 0x562   :  { %6726 = vmatprep.subr.mxu1 %v6725_v29 }
 0x563   :  { %v1320_v30 = vpop.f32.mrf.mxu0  ;;  %6727 = vmatpush3.msra.mxu1 %v6725_v29 }
 0x564   :  { %6728 = vmatprep.subr.mxu1 %v1320_v30 }
 0x565   :  { %6729 = vmatpush3.msra.mxu1 %v1320_v30 }
 0x566   :  { %6731 = vmatmul.mubr.msk.f32.vlgmr.msra.gmra.mxu1 %vm1050_vm6, %v5733_v31  ;;  %6736 = vmatprep.subr.mxu1 %v1443_v32 }
 0x567   :  { %6737 = vmatpush3.msra.mxu1 %v1443_v32  ;;  %6733 = vmatprep.mubr.msk.f32.mxu1 %vm1050_vm6, %v5734_v33 }
 0x568   :  { %6738 = vmatprep.subr.mxu1 %v1442_v34 }
 0x569   :  { %6739 = vmatpush3.msra.mxu1 %v1442_v34 }
 0x56a   :  { %6734 = vmatmul.mubr.msk.f32.gmra.mxu1 %vm1050_vm6, %v5735_v35  ;;  %6740 = vmatprep.subr.mxu1 %v1441_v36 }
 0x56b   :  { %6741 = vmatpush3.msra.mxu1 %v1441_v36  ;;  %6752 = vmatprep.mubr.msk.f32.mxu1 %vm875_vm5, %v7857_v59  ;;  %v1237_v59 = vadd.f32 %v7913_v28, %v7911_v22  ;;  %v1710_v36 = vld [vmem:[%s9280_s7 + $0x18] sm:$0xff] }
 0x56c   :  { %6742 = vmatprep.subr.mxu1 %v1440_v37 }
 0x56d   :  { %6743 = vmatpush3.msra.mxu1 %v1440_v37  ;;  %v2790_v37 = vld [vmem:[%s9283_s10] sm:$0xff] }
 0x56e   :  { %6744 = vmatprep.subr.mxu1 %v1439_v38 }
 0x56f   :  { %6745 = vmatpush3.msra.mxu1 %v1439_v38  ;;  %v1750_v38 = vld [vmem:[#allocation7 + $0x18] sm:$0xff] }
 0x570   :  { %6746 = vmatprep.subr.mxu1 %v1438_v39 }
 0x571   :  { %6747 = vmatpush3.msra.mxu1 %v1438_v39  ;;  %v1860_v39 = vld [vmem:[#allocation7 + $0x38] sm:$0xff] }
 0x572   :  { %6748 = vmatprep.subr.mxu1 %v1437_v40 }
 0x573   :  { %6749 = vmatpush3.msra.mxu1 %v1437_v40  ;;  %v2846_v40 = vld [vmem:[%s9284_s11] sm:$0xff] }
 0x574   :  { %6750 = vmatprep.subr.mxu1 %v1436_v41 }
 0x575   :  { %6751 = vmatpush3.msra.mxu1 %v1436_v41  ;;  %v1749_v41 = vld [vmem:[#allocation7 + $0x10] sm:$0xff] }
 0x576   :  { %6753 = vmatmul.mubr.msk.f32.vlgmr.msra.gmra.mxu1 %vm875_vm5, %v7863_v60  ;;  %6779 = vmatprep.subr.mxu1 %v1860_v39 }
 0x577   :  { %6780 = vmatpush3.msra.mxu1 %v1860_v39 }
 0x578   :  { %6781 = vmatprep.subr.mxu1 %v1859_v42 }
 0x579   :  { %6782 = vmatpush3.msra.mxu1 %v1859_v42  ;;  %v2217_v42 = vld [vmem:[#allocation7 + $0x58] sm:$0xff] }
 0x626   :  { %v6732_v43 = vpop.f32.mrf.mxu1 }
 0x627   :  { %v1432_v44 = vadd.f32 %v6732_v43, %v1232_v24  ;;  %v1748_v43 = vld [vmem:[#allocation7 + $0x8] sm:$0xff] }
 0x628   :  { %v1412_v45 = vpop.f32.mrf.mxu1 }
 0x629   :  { %v1431_v56 = vadd.f32 %v1412_v45, %v1227_v54  ;;  %v2847_v45 = vld [vmem:[%s9284_s11 + $0x8] sm:$0xff] }
 0x62a   :  { %v6735_v46 = vpop.f32.mrf.mxu1 }
 0x62b   :  { %v1434_v47 = vadd.f32 %v6735_v46, %v1242_v27  ;;  %v1747_v46 = vld [vmem:[#allocation7] sm:$0xff] }
 0x62c   :  { %v1422_v48 = vpop.f32.mrf.mxu1 }
 0x62d   :  { %v1433_v63 = vadd.f32 %v1422_v48, %v1237_v59  ;;  %v2793_v48 = vld [vmem:[%s9283_s10 + $0x18] sm:$0xff] }
 0x636   :  { %v6754_v49 = vpop.f32.mrf.mxu1 }
 0x637   :  { %6755 = vmatprep.subr.mxu0 %v6754_v49 }
 0x638   :  { %v1510_v50 = vpop.f32.mrf.mxu1  ;;  %6756 = vmatpush3.msra.mxu0 %v6754_v49 }
 0x639   :  { %6757 = vmatprep.subr.mxu0 %v1510_v50 }
 0x63a   :  { %6758 = vmatpush3.msra.mxu0 %v1510_v50 }
 0x63b   :  { %6760 = vmatmul.mubr.msk.f32.vlgmr.msra.gmra.mxu0 %vm1050_vm6, %v5743_v51  ;;  %6765 = vmatprep.subr.mxu0 %v1750_v38 }
 0x63c   :  { %6762 = vmatprep.mubr.msk.f32.mxu0 %vm1050_vm6, %v5744_v52  ;;  %6766 = vmatpush3.msra.mxu0 %v1750_v38 }
 0x63d   :  { %6767 = vmatprep.subr.mxu0 %v1749_v41 }
 0x63e   :  { %6768 = vmatpush3.msra.mxu0 %v1749_v41  ;;  %v1849_v41 = vld [vmem:[%s9282_s9 + $0x8] sm:$0xff] }
 0x63f   :  { %6763 = vmatmul.mubr.msk.f32.gmra.mxu0 %vm1050_vm6, %v5745_v53  ;;  %6769 = vmatprep.subr.mxu0 %v1748_v43 }
 0x640   :  { %6770 = vmatpush3.msra.mxu0 %v1748_v43  ;;  %v5760_v43 = vld [vmem:[%s9282_s9 + $0x50] sm:$0xff] }
 0x641   :  { %6771 = vmatprep.subr.mxu0 %v1747_v46 }
 0x642   :  { %6772 = vmatpush3.msra.mxu0 %v1747_v46  ;;  %v5761_v46 = vld [vmem:[%s9282_s9 + $0x58] sm:$0xff] }
 0x6fb   :  { %v6761_v55 = vpop.f32.mrf.mxu0 }
 0x6fc   :  { %v1622_v57 = vadd.f32 %v6761_v55, %v1432_v44  ;;  %v1858_v44 = vld [vmem:[#allocation7 + $0x28] sm:$0xff] }
 0x6fd   :  { %v1602_v58 = vpop.f32.mrf.mxu0  ;;  %6783 = vmatprep.subr.mxu1 %v1858_v44 }
 0x6fe   :  { %v1621_v60 = vadd.f32 %v1602_v58, %v1431_v56  ;;  %v1629_v61 = vsel %vm1625_vm7, %v1622_v57, 0.0  ;;  %6784 = vmatpush3.msra.mxu1 %v1858_v44  ;;  %v1850_v44 = vld [vmem:[%s9282_s9 + $0x10] sm:$0xff] }
 0x6ff   :  { %1630 = vadd.xlane.f32.xlu1 %v1629_v61  ;;  %v6764_v62 = vpop.f32.mrf.mxu0 }
 0x700   :  { %v1624_v2 = vadd.f32 %v6764_v62, %v1434_v47  ;;  %v1626_v4 = vsel %vm1625_vm7, %v1621_v60, 0.0  ;;  %v1857_v47 = vld [vmem:[#allocation7 + $0x20] sm:$0xff] }
 0x701   :  { %v1612_v0 = vpop.f32.mrf.mxu0  ;;  %6785 = vmatprep.subr.mxu1 %v1857_v47 }
 0x702   :  { %v1623_v3 = vadd.f32 %v1612_v0, %v1433_v63  ;;  %v1635_v6 = vsel %vm1625_vm7, %v1624_v2, 0.0  ;;  %6786 = vmatpush3.msra.mxu1 %v1857_v47  ;;  %v1851_v47 = vld [vmem:[%s9282_s9 + $0x18] sm:$0xff] }
 0x703   :  { %1627 = vadd.xlane.f32.xlu1 %v1626_v4 }
 0x704   :  { %v1632_v5 = vsel %vm1625_vm7, %v1623_v3, 0.0 }
 0x705   :  { %1633 = vadd.xlane.f32.xlu0 %v1632_v5 }
 0x707   :  { %1636 = vadd.xlane.f32.xlu1 %v1635_v6 }
 0x718   :  { %1685 = vperm.xlu1 %7389, %v1679_v7  }
 0x71b   :  { %1690 = vperm.xlu0 %7388, %v1680_v8  }
 0x71c   :  { %1713 = vperm.xlu1 %7389, %v1707_v9  }
 0x71f   :  { %1723 = vperm.xlu0 %7388, %v1709_v10  }
 0x720   :  { %1718 = vperm.xlu1 %7389, %v1708_v11  }
 0x723   :  { %2805 = vperm.xlu0 %7388, %v2791_v12  }
 0x724   :  { %1695 = vperm.xlu1 %7389, %v1681_v13  }
 0x727   :  { %2810 = vperm.xlu0 %7388, %v2792_v14  }
 0x728   :  { %1700 = vperm.xlu1 %7389, %v1682_v15  }
 0x788   :  { %v1631_v16 = vpop.xlane.xlu1 %1630 }
 0x789   :  { %v1640_v17 = vmul.f32 0.03125, %v1631_v16 }
 0x78b   :  { %v7981_v18 = vsub.f32 %v1622_v57, %v1640_v17 }
 0x78c   :  { %v1628_v19 = vpop.xlane.xlu1 %1627 }
 0x78d   :  { %v1639_v20 = vmul.f32 0.03125, %v1628_v19  ;;  %v1648_v21 = vmul.f32 %v7981_v18, %v7981_v18 }
 0x78e   :  { %v1634_v22 = vpop.xlane.xlu0 %1633 }
 0x78f   :  { %v7985_v23 = vsub.f32 %v1621_v60, %v1639_v20  ;;  %v1641_v24 = vmul.f32 0.03125, %v1634_v22  ;;  %v1654_v25 = vsel %vm1625_vm7, %v1648_v21, 0.0 }
 0x790   :  { %1655 = vadd.xlane.f32.xlu1 %v1654_v25  ;;  %v1637_v26 = vpop.xlane.xlu1 %1636 }
 0x791   :  { %v1642_v27 = vmul.f32 0.03125, %v1637_v26  ;;  %v1647_v28 = vmul.f32 %v7985_v23, %v7985_v23  ;;  %v7990_v29 = vsub.f32 %v1623_v3, %v1641_v24 }
 0x793   :  { %v7992_v30 = vsub.f32 %v1624_v2, %v1642_v27  ;;  %v1651_v31 = vsel %vm1625_vm7, %v1647_v28, 0.0  ;;  %v1649_v34 = vmul.f32 %v7990_v29, %v7990_v29 }
 0x794   :  { %1652 = vadd.xlane.f32.xlu1 %v1651_v31  ;;  %v1686_v49 = vpop.permute.xlu1 %1685  ;;  %v1848_v31 = vld [vmem:[%s9282_s9] sm:$0xff] }
 0x795   :  { %v1650_v32 = vmul.f32 %v7992_v30, %v7992_v30  ;;  %v1657_v35 = vsel %vm1625_vm7, %v1649_v34, 0.0 }
 0x796   :  { %v1691_v5 = vpop.permute.xlu0 %1690 }
 0x797   :  { %v1660_v33 = vsel %vm1625_vm7, %v1650_v32, 0.0 }
 0x798   :  { %1661 = vadd.xlane.f32.xlu1 %v1660_v33  ;;  %v1714_v50 = vpop.permute.xlu1 %1713 }
 0x79a   :  { %v1724_v24 = vpop.permute.xlu0 %1723 }
 0x79c   :  { %1658 = vadd.xlane.f32.xlu1 %v1657_v35  ;;  %v1719_v51 = vpop.permute.xlu1 %1718 }
 0x7a0   :  { %v1696_v52 = vpop.permute.xlu1 %1695 }
 0x7a4   :  { %v1701_v53 = vpop.permute.xlu1 %1700 }
 0x7ad   :  { %1728 = vperm.xlu1 %7389, %v1710_v36  }
 0x7b1   :  { %2800 = vperm.xlu1 %7389, %v2790_v37  }
 0x7b5   :  { %2856 = vperm.xlu1 %7389, %v2846_v40   ;;  %v5759_v40 = vld [vmem:[%s9282_s9 + $0x48] sm:$0xff] }
 0x7b9   :  { %2861 = vperm.xlu1 %7389, %v2847_v45   ;;  %v2216_v45 = vld [vmem:[#allocation7 + $0x50] sm:$0xff] }
 0x7bd   :  { %2815 = vperm.xlu1 %7389, %v2793_v48   ;;  %v5762_v48 = vld [vmem:[%s9282_s9 + $0x60] sm:$0xff] }
 0x819   :  { %v1656_v54 = vpop.xlane.xlu1 %1655 }
 0x81a   :  { %v1664_v55 = vmul.f32 0.03125, %v1656_v54  ;;  %v1854_v54 = vld [vmem:[%s9282_s9 + $0x30] sm:$0xff] }
 0x81c   :  { %v1668_v56 = vadd.f32 1e-05, %v1664_v55  ;;  %v2214_v55 = vld [vmem:[#allocation7 + $0x40] sm:$0xff] }
 0x81d   :  { %v1653_v57 = vpop.xlane.xlu1 %1652 }
 0x81e   :  { %7390 = vrsqrt.f32 %v1668_v56  ;;  %v1663_v58 = vmul.f32 0.03125, %v1653_v57  ;;  %v5765_v56 = vld [vmem:[%s9282_s9 + $0x78] sm:$0xff] }
 0x81f   :  { %v1855_v57 = vld [vmem:[%s9282_s9 + $0x38] sm:$0xff] }
 0x820   :  { %v1667_v59 = vadd.f32 1e-05, %v1663_v58  ;;  %v2453_v58 = vld [vmem:[#allocation7 + $0x78] sm:$0xff] }
 0x821   :  { %v1662_v60 = vpop.xlane.xlu1 %1661 }
 0x822   :  { %7392 = vrsqrt.f32 %v1667_v59  ;;  %v1666_v61 = vmul.f32 0.03125, %v1662_v60  ;;  %v2452_v59 = vld [vmem:[#allocation7 + $0x70] sm:$0xff]  ;;  %v2451_v60 = vld [vmem:[#allocation7 + $0x68] sm:$0xff] }
 0x824   :  { %v1670_v62 = vadd.f32 1e-05, %v1666_v61  ;;  %v2450_v61 = vld [vmem:[#allocation7 + $0x60] sm:$0xff] }
 0x825   :  { %v1659_v63 = vpop.xlane.xlu1 %1658 }
 0x826   :  { %7394 = vrsqrt.f32 %v1670_v62  ;;  %v1665_v0 = vmul.f32 0.03125, %v1659_v63  ;;  %v5786_v62 = vld [vmem:[%s9282_s9 + $0x80] sm:$0xff] }
 0x827   :  { %v5806_v63 = vld [vmem:[%s9282_s9 + $0xc0] sm:$0xff] }
 0x828   :  { %v1669_v2 = vadd.f32 1e-05, %v1665_v0 }
 0x829   :  { %v1729_v19 = vpop.permute.xlu1 %1728 }
 0x82a   :  { %7396 = vrsqrt.f32 %v1669_v2 }
 0x82b   :  { %v7391_v3 = vpop.eup %7390 }
 0x82c   :  { %v1676_v4 = vmul.f32 %v7391_v3, %v7981_v18 }
 0x82e   :  { %v1704_v6 = vmul.f32 %v1691_v5, %v1676_v4 }
 0x82f   :  { %v7393_v7 = vpop.eup %7392 }
 0x830   :  { %v1675_v8 = vmul.f32 %v7393_v7, %v7985_v23  ;;  %v1732_v9 = vadd.f32 %v1719_v51, %v1704_v6  ;;  %v5763_v51 = vld [vmem:[%s9282_s9 + $0x68] sm:$0xff] }
 0x832   :  { %v1703_v10 = vmul.f32 %v1686_v49, %v1675_v8  ;;  %v1740_v14 = vmul.f32 0.2, %v1732_v9  ;;  %vm1736_vm9 = vcmp.ge.f32.partialorder %v1732_v9, 0.0  ;;  %v1852_v49 = vld [vmem:[%s9282_s9 + $0x20] sm:$0xff] }
 0x833   :  { %v7395_v11 = vpop.eup %7394 }
 0x834   :  { %v1678_v12 = vmul.f32 %v7395_v11, %v7992_v30  ;;  %v1731_v13 = vadd.f32 %v1714_v50, %v1703_v10  ;;  %v8026_v22 = vsel %vm1736_vm9, %v1732_v9, %v1740_v14  ;;  %v5758_v30 = vld [vmem:[%s9282_s9 + $0x40] sm:$0xff]  ;;  %v2215_v50 = vld [vmem:[#allocation7 + $0x48] sm:$0xff] }
 0x836   :  { %v1706_v15 = vmul.f32 %v1701_v53, %v1678_v12  ;;  %vm1735_vm8 = vcmp.ge.f32.partialorder %v1731_v13, 0.0  ;;  %v1739_v16 = vmul.f32 0.2, %v1731_v13  ;;  %v5764_v53 = vld [vmem:[%s9282_s9 + $0x70] sm:$0xff] }
 0x837   :  { %v7397_v17 = vpop.eup %7396 }
 0x838   :  { %v8019_v20 = vsel %vm1735_vm8, %v1731_v13, %v1739_v16  ;;  %v1677_v18 = vmul.f32 %v7397_v17, %v7990_v29  ;;  %v1734_v21 = vadd.f32 %v1729_v19, %v1706_v15  ;;  %v5787_v15 = vld [vmem:[%s9282_s9 + $0x88] sm:$0xff]  ;;  %v5788_v16 = vld [vmem:[%s9282_s9 + $0x90] sm:$0xff] }
 0x839   :  { %6773 = vmatprep.mubr.msk.f32.mxu0 %vm1625_vm7, %v8019_v20  ;;  %6787 = vmatprep.mubr.msk.f32.mxu1 %vm1625_vm7, %v8019_v20 }
 0x83a   :  { %6774 = vmatmul.mubr.msk.f32.vlgmr.msra.gmra.mxu0 %vm1625_vm7, %v8026_v22  ;;  %6788 = vmatmul.mubr.msk.f32.vlgmr.msra.gmra.mxu1 %vm1625_vm7, %v8026_v22  ;;  %v1705_v23 = vmul.f32 %v1696_v52, %v1677_v18  ;;  %v1742_v26 = vmul.f32 0.2, %v1734_v21  ;;  %vm1738_vm10 = vcmp.ge.f32.partialorder %v1734_v21, 0.0  ;;  %v1853_v52 = vld [vmem:[%s9282_s9 + $0x28] sm:$0xff]  ;;  %v5790_v18 = vld [vmem:[%s9282_s9 + $0xa0] sm:$0xff] }
 0x83c   :  { %v1733_v25 = vadd.f32 %v1724_v24, %v1705_v23  ;;  %v8038_v29 = vsel %vm1738_vm10, %v1734_v21, %v1742_v26  ;;  %v5791_v21 = vld [vmem:[%s9282_s9 + $0xa8] sm:$0xff]  ;;  %v5792_v23 = vld [vmem:[%s9282_s9 + $0xb0] sm:$0xff]  ;;  %v5809_v26 = vld [vmem:[%s9282_s9 + $0xd8] sm:$0xff] }
 0x83d   :  { %v5808_v24 = vld [vmem:[%s9282_s9 + $0xd0] sm:$0xff] }
 0x83e   :  { %vm1737_vm11 = vcmp.ge.f32.partialorder %v1733_v25, 0.0  ;;  %v1741_v27 = vmul.f32 0.2, %v1733_v25 }
 0x840   :  { %v8032_v28 = vsel %vm1737_vm11, %v1733_v25, %v1741_v27  ;;  %v5793_v25 = vld [vmem:[%s9282_s9 + $0xb8] sm:$0xff]  ;;  %v5810_v27 = vld [vmem:[%s9282_s9 + $0xe0] sm:$0xff] }
 0x841   :  { %6776 = vmatprep.mubr.msk.f32.mxu0 %vm1625_vm7, %v8032_v28  ;;  %6790 = vmatprep.mubr.msk.f32.mxu1 %vm1625_vm7, %v8032_v28 }
 0x842   :  { %6777 = vmatmul.mubr.msk.f32.gmra.mxu0 %vm1625_vm7, %v8038_v29  ;;  %6791 = vmatmul.mubr.msk.f32.gmra.mxu1 %vm1625_vm7, %v8038_v29 }
 0x843   :  { %6801 = vmatprep.mubr.msk.f32.mxu0 %vm1625_vm7, %v5758_v30  ;;  %6821 = vmatprep.mubr.msk.f32.mxu1 %vm1625_vm7, %v1848_v31  ;;  %v5813_v30 = vld [vmem:[%s9282_s9 + $0xf8] sm:$0xff] }
 0x8fa   :  { %v6775_v32 = vpop.f32.mrf.mxu0  ;;  %v6789_v33 = vpop.f32.mrf.mxu1 }
 0x8fc   :  { %v1829_v34 = vpop.f32.mrf.mxu0  ;;  %v1927_v35 = vpop.f32.mrf.mxu1 }
 0x902   :  { %v6778_v36 = vpop.f32.mrf.mxu0  ;;  %v6792_v37 = vpop.f32.mrf.mxu1 }
 0x903   :  { %6793 = vmatprep.subr.mxu0 %v6792_v37  ;;  %6813 = vmatprep.subr.mxu1 %v6778_v36 }
 0x904   :  { %v1839_v38 = vpop.f32.mrf.mxu0  ;;  %v1937_v39 = vpop.f32.mrf.mxu1  ;;  %6794 = vmatpush3.msra.mxu0 %v6792_v37  ;;  %6814 = vmatpush3.msra.mxu1 %v6778_v36 }
 0x905   :  { %6795 = vmatprep.subr.mxu0 %v1937_v39  ;;  %6815 = vmatprep.subr.mxu1 %v1839_v38 }
 0x906   :  { %6796 = vmatpush3.msra.mxu0 %v1937_v39  ;;  %6816 = vmatpush3.msra.mxu1 %v1839_v38 }
 0x907   :  { %6797 = vmatprep.subr.mxu0 %v6789_v33  ;;  %6817 = vmatprep.subr.mxu1 %v6775_v32 }
 0x908   :  { %6798 = vmatpush3.msra.mxu0 %v6789_v33  ;;  %6818 = vmatpush3.msra.mxu1 %v6775_v32 }
 0x909   :  { %6799 = vmatprep.subr.mxu0 %v1927_v35  ;;  %6819 = vmatprep.subr.mxu1 %v1829_v34 }
 0x90a   :  { %6800 = vmatpush3.msra.mxu0 %v1927_v35  ;;  %6820 = vmatpush3.msra.mxu1 %v1829_v34 }
 0x90b   :  { %6802 = vmatmul.mubr.msk.f32.vlgmr.msra.gmra.mxu0 %vm1625_vm7, %v5759_v40  ;;  %6822 = vmatmul.mubr.msk.f32.vlgmr.msra.gmra.mxu1 %vm1625_vm7, %v1849_v41 }
 0x90c   :  { %6833 = vmatprep.subr.mxu0 %v2217_v42  ;;  %6804 = vmatprep.mubr.msk.f32.mxu0 %vm1625_vm7, %v5760_v43 }
 0x90d   :  { %6824 = vmatprep.mubr.msk.f32.mxu1 %vm1625_vm7, %v1850_v44  ;;  %6834 = vmatpush3.msra.mxu0 %v2217_v42 }
 0x90e   :  { %6835 = vmatprep.subr.mxu0 %v2216_v45 }
 0x90f   :  { %6805 = vmatmul.mubr.msk.f32.gmra.mxu0 %vm1625_vm7, %v5761_v46  ;;  %6825 = vmatmul.mubr.msk.f32.gmra.mxu1 %vm1625_vm7, %v1851_v47 }
 0x910   :  { %6807 = vmatprep.mubr.msk.f32.mxu0 %vm1625_vm7, %v5762_v48  ;;  %6827 = vmatprep.mubr.msk.f32.mxu1 %vm1625_vm7, %v1852_v49 }
 0x911   :  { %6836 = vmatpush3.msra.mxu0 %v2216_v45 }
 0x912   :  { %6837 = vmatprep.subr.mxu0 %v2215_v50 }
 0x913   :  { %6808 = vmatmul.mubr.msk.f32.gmra.mxu0 %vm1625_vm7, %v5763_v51  ;;  %6828 = vmatmul.mubr.msk.f32.gmra.mxu1 %vm1625_vm7, %v1853_v52 }
 0x914   :  { %6810 = vmatprep.mubr.msk.f32.mxu0 %vm1625_vm7, %v5764_v53  ;;  %6830 = vmatprep.mubr.msk.f32.mxu1 %vm1625_vm7, %v1854_v54 }
 0x915   :  { %6838 = vmatpush3.msra.mxu0 %v2215_v50 }
 0x916   :  { %6839 = vmatprep.subr.mxu0 %v2214_v55 }
 0x917   :  { %6811 = vmatmul.mubr.msk.f32.gmra.mxu0 %vm1625_vm7, %v5765_v56  ;;  %6831 = vmatmul.mubr.msk.f32.gmra.mxu1 %vm1625_vm7, %v1855_v57 }
 0x918   :  { %6841 = vmatprep.mubr.msk.f32.mxu0 %vm1625_vm7, %v8019_v20  ;;  %6840 = vmatpush3.msra.mxu0 %v2214_v55 }
 0x919   :  { %6867 = vmatprep.subr.mxu0 %v2453_v58  ;;  %6855 = vmatprep.mubr.msk.f32.mxu1 %vm1625_vm7, %v5786_v62 }
 0x91b   :  { %6842 = vmatmul.mubr.msk.f32.vlgmr.msra.gmra.mxu0 %vm1625_vm7, %v8026_v22 }
 0x91c   :  { %6844 = vmatprep.mubr.msk.f32.mxu0 %vm1625_vm7, %v8032_v28  ;;  %6868 = vmatpush3.msra.mxu0 %v2453_v58 }
 0x91d   :  { %6869 = vmatprep.subr.mxu0 %v2452_v59 }
 0x91e   :  { %6870 = vmatpush3.msra.mxu0 %v2452_v59 }
 0x91f   :  { %6845 = vmatmul.mubr.msk.f32.gmra.mxu0 %vm1625_vm7, %v8038_v29  ;;  %6871 = vmatprep.subr.mxu0 %v2451_v60 }
 0x920   :  { %6872 = vmatpush3.msra.mxu0 %v2451_v60  ;;  %6875 = vmatprep.mubr.msk.f32.mxu0 %vm1625_vm7, %v8019_v20  ;;  %v5789_v20 = vld [vmem:[%s9282_s9 + $0x98] sm:$0xff] }
 0x921   :  { %6873 = vmatprep.subr.mxu0 %v2450_v61 }
 0x922   :  { %6874 = vmatpush3.msra.mxu0 %v2450_v61 }
 0x923   :  { %6876 = vmatmul.mubr.msk.f32.vlgmr.msra.gmra.mxu0 %vm1625_vm7, %v8026_v22  ;;  %v5807_v22 = vld [vmem:[%s9282_s9 + $0xc8] sm:$0xff] }
 0x924   :  { %6878 = vmatprep.mubr.msk.f32.mxu0 %vm1625_vm7, %v8032_v28  ;;  %v5811_v28 = vld [vmem:[%s9282_s9 + $0xe8] sm:$0xff] }
 0x927   :  { %6879 = vmatmul.mubr.msk.f32.gmra.mxu0 %vm1625_vm7, %v8038_v29  ;;  %v5812_v29 = vld [vmem:[%s9282_s9 + $0xf0] sm:$0xff] }
 0x928   :  { %6889 = vmatprep.mubr.msk.f32.mxu0 %vm1625_vm7, %v5806_v63 }
 0x9cb   :  { %v8132_v0 = vpop.f32.mrf.mxu0  ;;  %v6823_v31 = vpop.f32.mrf.mxu1 }
 0x9cc   :  { %v2180_v42 = vadd.f32 %v6823_v31, %v8132_v0  ;;  %v2851_v31 = vld [vmem:[%s9284_s11 + $0x28] sm:$0xff] }
 0x9cd   :  { %v8134_v2 = vpop.f32.mrf.mxu0  ;;  %v2174_v32 = vpop.f32.mrf.mxu1 }
 0x9ce   :  { %v2175_v44 = vadd.f32 %v2174_v32, %v8134_v2  ;;  %v8268_v32 = vpop.permute.xlu1 %2800 }
 0x9cf   :  { %v8136_v3 = vpop.f32.mrf.mxu0  ;;  %v6826_v33 = vpop.f32.mrf.mxu1 }
 0x9d0   :  { %v2190_v47 = vadd.f32 %v6826_v33, %v8136_v3 }
 0x9d1   :  { %v8138_v4 = vpop.f32.mrf.mxu0  ;;  %v2184_v34 = vpop.f32.mrf.mxu1 }
 0x9d2   :  { %v2185_v56 = vadd.f32 %v2184_v34, %v8138_v4  ;;  %v8270_v33 = vpop.permute.xlu1 %2856 }
 0x9d3   :  { %v8140_v5 = vpop.f32.mrf.mxu0  ;;  %v6829_v35 = vpop.f32.mrf.mxu1 }
 0x9d4   :  { %v2200_v0 = vadd.f32 %v6829_v35, %v8140_v5  ;;  %v8274_v35 = vpop.permute.xlu0 %2805 }
 0x9d5   :  { %v8142_v6 = vpop.f32.mrf.mxu0  ;;  %v2194_v36 = vpop.f32.mrf.mxu1 }
 0x9d6   :  { %v2195_v61 = vadd.f32 %v2194_v36, %v8142_v6  ;;  %v8272_v34 = vpop.permute.xlu1 %2861 }
 0x9d7   :  { %v8144_v7 = vpop.f32.mrf.mxu0  ;;  %v6832_v37 = vpop.f32.mrf.mxu1 }
 0x9d9   :  { %v8146_v8 = vpop.f32.mrf.mxu0  ;;  %v2204_v38 = vpop.f32.mrf.mxu1 }
 0x9da   :  { %v8276_v36 = vpop.permute.xlu1 %2815 }
 0x9db   :  { %v6843_v9 = vpop.f32.mrf.mxu0 }
 0x9dd   :  { %v2284_v10 = vpop.f32.mrf.mxu0 }
 0x9df   :  { %v6846_v11 = vpop.f32.mrf.mxu0 }
 0x9e0   :  { %6847 = vmatprep.subr.mxu1 %v6846_v11 }
 0x9e1   :  { %v2294_v12 = vpop.f32.mrf.mxu0  ;;  %6848 = vmatpush3.msra.mxu1 %v6846_v11 }
 0x9e2   :  { %6849 = vmatprep.subr.mxu1 %v2294_v12 }
 0x9e3   :  { %6850 = vmatpush3.msra.mxu1 %v2294_v12  ;;  %v6877_v13 = vpop.f32.mrf.mxu0 }
 0x9e4   :  { %6851 = vmatprep.subr.mxu1 %v6843_v9 }
 0x9e5   :  { %6852 = vmatpush3.msra.mxu1 %v6843_v9  ;;  %v2520_v14 = vpop.f32.mrf.mxu0 }
 0x9e6   :  { %6853 = vmatprep.subr.mxu1 %v2284_v10 }
 0x9e7   :  { %6854 = vmatpush3.msra.mxu1 %v2284_v10  ;;  %v6880_v17 = vpop.f32.mrf.mxu0 }
 0x9e8   :  { %6856 = vmatmul.mubr.msk.f32.vlgmr.msra.gmra.mxu1 %vm1625_vm7, %v5787_v15  ;;  %6881 = vmatprep.subr.mxu0 %v6880_v17 }
 0x9e9   :  { %v2530_v19 = vpop.f32.mrf.mxu0  ;;  %6882 = vmatpush3.msra.mxu0 %v6880_v17  ;;  %6858 = vmatprep.mubr.msk.f32.mxu1 %vm1625_vm7, %v5788_v16 }
 0x9ea   :  { %6883 = vmatprep.subr.mxu0 %v2530_v19 }
 0x9eb   :  { %6884 = vmatpush3.msra.mxu0 %v2530_v19 }
 0x9ec   :  { %6859 = vmatmul.mubr.msk.f32.gmra.mxu1 %vm1625_vm7, %v5789_v20  ;;  %6885 = vmatprep.subr.mxu0 %v6877_v13  ;;  %v2849_v20 = vld [vmem:[%s9284_s11 + $0x18] sm:$0xff] }
 0x9ed   :  { %6886 = vmatpush3.msra.mxu0 %v6877_v13  ;;  %6861 = vmatprep.mubr.msk.f32.mxu1 %vm1625_vm7, %v5790_v18  ;;  %v2210_v13 = vadd.f32 %v6832_v37, %v8144_v7  ;;  %v2848_v18 = vld [vmem:[%s9284_s11 + $0x10] sm:$0xff]  ;;  %v8278_v37 = vpop.permute.xlu0 %2810 }
 0x9ee   :  { %6887 = vmatprep.subr.mxu0 %v2520_v14 }
 0x9ef   :  { %6888 = vmatpush3.msra.mxu0 %v2520_v14 }
 0x9f0   :  { %6862 = vmatmul.mubr.msk.f32.gmra.mxu1 %vm1625_vm7, %v5791_v21  ;;  %6890 = vmatmul.mubr.msk.f32.vlgmr.msra.gmra.mxu0 %vm1625_vm7, %v5807_v22  ;;  %v2794_v21 = vld [vmem:[%s9283_s10 + $0x20] sm:$0xff] }
 0x9f1   :  { %6864 = vmatprep.mubr.msk.f32.mxu1 %vm1625_vm7, %v5792_v23  ;;  %6892 = vmatprep.mubr.msk.f32.mxu0 %vm1625_vm7, %v5808_v24  ;;  %v2850_v22 = vld [vmem:[%s9284_s11 + $0x20] sm:$0xff]  ;;  %v2796_v23 = vld [vmem:[%s9283_s10 + $0x30] sm:$0xff] }
 0x9f4   :  { %6865 = vmatmul.mubr.msk.f32.gmra.mxu1 %vm1625_vm7, %v5793_v25  ;;  %6893 = vmatmul.mubr.msk.f32.gmra.mxu0 %vm1625_vm7, %v5809_v26  ;;  %v2205_v25 = vadd.f32 %v2204_v38, %v8146_v8  ;;  %v2797_v8 = vld [vmem:[%s9283_s10 + $0x38] sm:$0xff] }
 0x9f5   :  { %6895 = vmatprep.mubr.msk.f32.mxu0 %vm1625_vm7, %v5810_v27 }
 0x9f8   :  { %6896 = vmatmul.mubr.msk.f32.gmra.mxu0 %vm1625_vm7, %v5811_v28 }
 0x9f9   :  { %6898 = vmatprep.mubr.msk.f32.mxu0 %vm1625_vm7, %v5812_v29 }
 0x9fc   :  { %6899 = vmatmul.mubr.msk.f32.gmra.mxu0 %vm1625_vm7, %v5813_v30  ;;  %v2795_v30 = vld [vmem:[%s9283_s10 + $0x28] sm:$0xff] }
 0xaa8   :  { %v6857_v39 = vpop.f32.mrf.mxu1 }
 0xaa9   :  { %v2442_v45 = vadd.f32 %v6857_v39, %v2180_v42 }
 0xaaa   :  { %v2402_v40 = vpop.f32.mrf.mxu1 }
 0xaab   :  { %v2441_v48 = vadd.f32 %v2402_v40, %v2175_v44 }
 0xaac   :  { %v6860_v41 = vpop.f32.mrf.mxu1 }
 0xaad   :  { %v2444_v52 = vadd.f32 %v6860_v41, %v2190_v47 }
 0xaae   :  { %v2412_v43 = vpop.f32.mrf.mxu1 }
 0xaaf   :  { %v2443_v62 = vadd.f32 %v2412_v43, %v2185_v56 }
 0xab0   :  { %v6891_v46 = vpop.f32.mrf.mxu0  ;;  %v6863_v50 = vpop.f32.mrf.mxu1 }
 0xab1   :  { %v8207_v49 = vadd.f32 %v6891_v46, %v2442_v45  ;;  %v2446_v10 = vadd.f32 %v6863_v50, %v2200_v0 }
 0xab2   :  { %v2638_v51 = vpop.f32.mrf.mxu0  ;;  %v2422_v59 = vpop.f32.mrf.mxu1 }
 0xab3   :  { %v8209_v53 = vadd.f32 %v2638_v51, %v2441_v48  ;;  %v2688_v54 = vsel %vm1050_vm6, %v8207_v49, 0.0  ;;  %v2445_v2 = vadd.f32 %v2422_v59, %v2195_v61 }
 0xab4   :  { %v6894_v55 = vpop.f32.mrf.mxu0  ;;  %2689 = vadd.xlane.f32.xlu1 %v2688_v54  ;;  %v6866_v12 = vpop.f32.mrf.mxu1 }
 0xab5   :  { %v8214_v57 = vadd.f32 %v6894_v55, %v2444_v52  ;;  %v2685_v58 = vsel %vm1050_vm6, %v8209_v53, 0.0  ;;  %v2448_v16 = vadd.f32 %v6866_v12, %v2210_v13 }
 0xab6   :  { %v2648_v60 = vpop.f32.mrf.mxu0  ;;  %2686 = vadd.xlane.f32.xlu0 %v2685_v58  ;;  %v2432_v24 = vpop.f32.mrf.mxu1 }
 0xab7   :  { %v8220_v3 = vadd.f32 %v2648_v60, %v2443_v62  ;;  %v2694_v4 = vsel %vm1050_vm6, %v8214_v57, 0.0  ;;  %v2447_v27 = vadd.f32 %v2432_v24, %v2205_v25 }
 0xab8   :  { %v6897_v63 = vpop.f32.mrf.mxu0 }
 0xab9   :  { %v8227_v14 = vadd.f32 %v6897_v63, %v2446_v10  ;;  %v2691_v6 = vsel %vm1050_vm6, %v8220_v3, 0.0 }
 0xaba   :  { %v2658_v9 = vpop.f32.mrf.mxu0  ;;  %2695 = vadd.xlane.f32.xlu0 %v2694_v4 }
 0xabb   :  { %v8224_v11 = vadd.f32 %v2658_v9, %v2445_v2  ;;  %v2700_v19 = vsel %vm1050_vm6, %v8227_v14, 0.0 }
 0xabc   :  { %v6900_v15 = vpop.f32.mrf.mxu0 }
 0xabd   :  { %v2697_v5 = vsel %vm1050_vm6, %v8224_v11, 0.0  ;;  %v8233_v17 = vadd.f32 %v6900_v15, %v2448_v16  ;;  %v3074_v15 = vld [vmem:[#allocation8 + $0x10] sm:$0xff] }
 0xabe   :  { %2692 = vadd.xlane.f32.xlu0 %v2691_v6  ;;  %2698 = vadd.xlane.f32.xlu1 %v2697_v5  ;;  %v2668_v26 = vpop.f32.mrf.mxu0  ;;  %v3075_v6 = vld [vmem:[#allocation8 + $0x18] sm:$0xff]  ;;  %v2926_v5 = vld [vmem:[#allocation8] sm:$0xff]  ;;  %v2852_v16 = vld [vmem:[%s9284_s11 + $0x30] sm:$0xff] }
 0xabf   :  { %v2706_v7 = vsel %vm1050_vm6, %v8233_v17, 0.0  ;;  %v8255_v28 = vadd.f32 %v2668_v26, %v2447_v27  ;;  %6917 = vmatprep.subr.mxu0 %v3075_v6  ;;  %v4576_v26 = vld [vmem:[%s9288_s15 + $0x10] sm:$0xff] }
 0xac0   :  { %6918 = vmatpush3.msra.mxu0 %v3075_v6 }
 0xac1   :  { %v2703_v29 = vsel %vm1050_vm6, %v8255_v28, 0.0  ;;  %6919 = vmatprep.subr.mxu0 %v3074_v15 }
 0xac2   :  { %2701 = vadd.xlane.f32.xlu0 %v2700_v19  ;;  %6920 = vmatpush3.msra.mxu0 %v3074_v15  ;;  %v4574_v19 = vld [vmem:[%s9288_s15] sm:$0xff] }
 0xac6   :  { %2707 = vadd.xlane.f32.xlu0 %v2706_v7  ;;  %v4575_v7 = vld [vmem:[%s9288_s15 + $0x8] sm:$0xff] }
 0xacf   :  { %2871 = vperm.xlu1 %7389, %v2849_v20  }
 0xadc   :  { %2866 = vperm.xlu0 %7388, %v2848_v18   ;;  %v4464_v18 = vld [vmem:[%s9287_s14 + $0x10] sm:$0xff] }
 0xae0   :  { %2820 = vperm.xlu0 %7388, %v2794_v21  }
 0xae4   :  { %2876 = vperm.xlu0 %7388, %v2850_v22  }
 0xae8   :  { %2830 = vperm.xlu0 %7388, %v2796_v23   ;;  %v4465_v23 = vld [vmem:[%s9287_s14 + $0x18] sm:$0xff] }
 0xaf3   :  { %2704 = vadd.xlane.f32.xlu1 %v2703_v29  ;;  %v4577_v29 = vld [vmem:[%s9288_s15 + $0x18] sm:$0xff] }
 0xb04   :  { %2825 = vperm.xlu1 %7389, %v2795_v30   ;;  %v4578_v30 = vld [vmem:[%s9288_s15 + $0x20] sm:$0xff] }
 0xb08   :  { %2881 = vperm.xlu1 %7389, %v2851_v31   ;;  %v4579_v31 = vld [vmem:[%s9288_s15 + $0x28] sm:$0xff] }
 0xb0c   :  { %2835 = vperm.xlu1 %7389, %v2797_v8   ;;  %v2853_v8 = vld [vmem:[%s9284_s11 + $0x38] sm:$0xff] }
 0xb3d   :  { %v2690_v38 = vpop.xlane.xlu1 %2689 }
 0xb3e   :  { %v2711_v39 = vmul.f32 0.0625, %v2690_v38  ;;  %v4468_v38 = vld [vmem:[%s9287_s14 + $0x30] sm:$0xff] }
 0xb3f   :  { %v2687_v40 = vpop.xlane.xlu0 %2686 }
 0xb40   :  { %v8281_v41 = vsub.f32 %v8207_v49, %v2711_v39  ;;  %v2710_v42 = vmul.f32 0.0625, %v2687_v40  ;;  %v4462_v39 = vld [vmem:[%s9287_s14] sm:$0xff]  ;;  %v4469_v40 = vld [vmem:[%s9287_s14 + $0x38] sm:$0xff] }
 0xb42   :  { %v8284_v43 = vsub.f32 %v8209_v53, %v2710_v42  ;;  %v2727_v44 = vmul.f32 %v8281_v41, %v8281_v41  ;;  %v4467_v42 = vld [vmem:[%s9287_s14 + $0x28] sm:$0xff] }
 0xb43   :  { %v2696_v45 = vpop.xlane.xlu0 %2695 }
 0xb44   :  { %v2713_v46 = vmul.f32 0.0625, %v2696_v45  ;;  %v2737_v47 = vsel %vm1050_vm6, %v2727_v44, 0.0  ;;  %v2726_v48 = vmul.f32 %v8284_v43, %v8284_v43  ;;  %v4581_v44 = vld [vmem:[%s9288_s15 + $0x38] sm:$0xff]  ;;  %v4580_v45 = vld [vmem:[%s9288_s15 + $0x30] sm:$0xff] }
 0xb45   :  { %2738 = vadd.xlane.f32.xlu0 %v2737_v47  ;;  %v4470_v47 = vld [vmem:[%s9287_s14 + $0x40] sm:$0xff] }
 0xb46   :  { %v8292_v50 = vsub.f32 %v8214_v57, %v2713_v46  ;;  %v2734_v49 = vsel %vm1050_vm6, %v2726_v48, 0.0  ;;  %v4471_v46 = vld [vmem:[%s9287_s14 + $0x48] sm:$0xff] }
 0xb47   :  { %v2693_v51 = vpop.xlane.xlu0 %2692  ;;  %2735 = vadd.xlane.f32.xlu1 %v2734_v49  ;;  %v2699_v52 = vpop.xlane.xlu1 %2698  ;;  %v4583_v48 = vld [vmem:[%s9288_s15 + $0x48] sm:$0xff]  ;;  %v4582_v49 = vld [vmem:[%s9288_s15 + $0x40] sm:$0xff] }
 0xb48   :  { %v2712_v53 = vmul.f32 0.0625, %v2693_v51  ;;  %v2714_v54 = vmul.f32 0.0625, %v2699_v52  ;;  %v2729_v55 = vmul.f32 %v8292_v50, %v8292_v50  ;;  %v4473_v51 = vld [vmem:[%s9287_s14 + $0x58] sm:$0xff]  ;;  %v4472_v52 = vld [vmem:[%s9287_s14 + $0x50] sm:$0xff] }
 0xb4a   :  { %v8298_v56 = vsub.f32 %v8220_v3, %v2712_v53  ;;  %v8301_v58 = vsub.f32 %v8224_v11, %v2714_v54  ;;  %v2743_v59 = vsel %vm1050_vm6, %v2729_v55, 0.0  ;;  %v4585_v53 = vld [vmem:[%s9288_s15 + $0x58] sm:$0xff]  ;;  %v4584_v54 = vld [vmem:[%s9288_s15 + $0x50] sm:$0xff]  ;;  %v4475_v55 = vld [vmem:[%s9287_s14 + $0x68] sm:$0xff] }
 0xb4b   :  { %v2702_v57 = vpop.xlane.xlu0 %2701  ;;  %2744 = vadd.xlane.f32.xlu0 %v2743_v59  ;;  %v8334_v20 = vpop.permute.xlu1 %2871  ;;  %v4474_v59 = vld [vmem:[%s9287_s14 + $0x60] sm:$0xff] }
 0xb4c   :  { %v2715_v60 = vmul.f32 0.0625, %v2702_v57  ;;  %v2728_v61 = vmul.f32 %v8298_v56, %v8298_v56  ;;  %v2730_v0 = vmul.f32 %v8301_v58, %v8301_v58  ;;  %v4587_v57 = vld [vmem:[%s9288_s15 + $0x68] sm:$0xff] }
 0xb4e   :  { %v8307_v62 = vsub.f32 %v8227_v14, %v2715_v60  ;;  %v2740_v63 = vsel %vm1050_vm6, %v2728_v61, 0.0  ;;  %v2746_v11 = vsel %vm1050_vm6, %v2730_v0, 0.0  ;;  %v2927_v14 = vld [vmem:[#allocation8 + $0x8] sm:$0xff]  ;;  %v4586_v60 = vld [vmem:[%s9288_s15 + $0x60] sm:$0xff] }
 0xb4f   :  { %v2708_v2 = vpop.xlane.xlu0 %2707  ;;  %2741 = vadd.xlane.f32.xlu1 %v2740_v63  ;;  %6901 = vmatprep.subr.mxu1 %v2927_v14 }
 0xb50   :  { %v2717_v3 = vmul.f32 0.0625, %v2708_v2  ;;  %v2731_v4 = vmul.f32 %v8307_v62, %v8307_v62  ;;  %6902 = vmatpush3.msra.mxu1 %v2927_v14 }
 0xb51   :  { %6903 = vmatprep.subr.mxu1 %v2926_v5 }
 0xb52   :  { %v8315_v9 = vsub.f32 %v8233_v17, %v2717_v3  ;;  %v2749_v10 = vsel %vm1050_vm6, %v2731_v4, 0.0  ;;  %6904 = vmatpush3.msra.mxu1 %v2926_v5  ;;  %v4463_v17 = vld [vmem:[%s9287_s14 + $0x8] sm:$0xff] }
 0xb53   :  { %2750 = vadd.xlane.f32.xlu0 %v2749_v10  ;;  %2747 = vadd.xlane.f32.xlu1 %v2746_v11 }
 0xb54   :  { %v2733_v12 = vmul.f32 %v8315_v9, %v8315_v9 }
 0xb56   :  { %v2755_v13 = vsel %vm1050_vm6, %v2733_v12, 0.0 }
 0xb57   :  { %2756 = vadd.xlane.f32.xlu0 %v2755_v13  ;;  %v2867_v61 = vpop.permute.xlu0 %2866 }
 0xb5b   :  { %v8420_v63 = vpop.permute.xlu0 %2820 }
 0xb5f   :  { %v8424_v2 = vpop.permute.xlu0 %2876 }
 0xb63   :  { %v8428_v4 = vpop.permute.xlu0 %2830 }
 0xb6d   :  { %2886 = vperm.xlu0 %7388, %v2852_v16  }
 0xb71   :  { %4485 = vperm.xlu0 %7388, %v4463_v17  }
 0xb75   :  { %4592 = vperm.xlu0 %7388, %v4574_v19  }
 0xb79   :  { %4597 = vperm.xlu0 %7388, %v4575_v7  }
 0xb7c   :  { %v2705_v21 = vpop.xlane.xlu1 %2704 }
 0xb7d   :  { %v2716_v22 = vmul.f32 0.0625, %v2705_v21  ;;  %4490 = vperm.xlu0 %7388, %v4464_v18  }
 0xb7f   :  { %v8343_v24 = vsub.f32 %v8255_v28, %v2716_v22  ;;  %v4466_v28 = vld [vmem:[%s9287_s14 + $0x20] sm:$0xff] }
 0xb80   :  { %v8422_v0 = vpop.permute.xlu1 %2825 }
 0xb81   :  { %4495 = vperm.xlu0 %7388, %v4465_v23   ;;  %v2732_v25 = vmul.f32 %v8343_v24, %v8343_v24 }
 0xb83   :  { %v2752_v27 = vsel %vm1050_vm6, %v2732_v25, 0.0 }
 0xb84   :  { %2753 = vadd.xlane.f32.xlu1 %v2752_v27  ;;  %v8426_v3 = vpop.permute.xlu1 %2881 }
 0xb85   :  { %4602 = vperm.xlu0 %7388, %v4576_v26  }
 0xb88   :  { %v8430_v10 = vpop.permute.xlu1 %2835 }
 0xb89   :  { %4607 = vperm.xlu0 %7388, %v4577_v29  }
 0xb8d   :  { %4500 = vperm.xlu0 %7388, %v4466_v28  }
 0xb91   :  { %4612 = vperm.xlu0 %7388, %v4578_v30  }
 0xb95   :  { %4617 = vperm.xlu0 %7388, %v4579_v31   ;;  %2891 = vperm.xlu1 %7389, %v2853_v8  }
 0xb99   :  { %4510 = vperm.xlu0 %7388, %v4468_v38   ;;  %4480 = vperm.xlu1 %7389, %v4462_v39  }
 0xb9d   :  { %4515 = vperm.xlu0 %7388, %v4469_v40   ;;  %4505 = vperm.xlu1 %7389, %v4467_v42  }
 0xba1   :  { %4627 = vperm.xlu0 %7388, %v4581_v44   ;;  %4622 = vperm.xlu1 %7389, %v4580_v45  }
 0xba5   :  { %4525 = vperm.xlu0 %7388, %v4471_v46   ;;  %4520 = vperm.xlu1 %7389, %v4470_v47  }
 0xba9   :  { %4637 = vperm.xlu0 %7388, %v4583_v48   ;;  %4632 = vperm.xlu1 %7389, %v4582_v49  }
 0xbad   :  { %4535 = vperm.xlu0 %7388, %v4473_v51   ;;  %4530 = vperm.xlu1 %7389, %v4472_v52  }
 0xbb1   :  { %4647 = vperm.xlu0 %7388, %v4585_v53   ;;  %4642 = vperm.xlu1 %7389, %v4584_v54  }
 0xbb5   :  { %4545 = vperm.xlu0 %7388, %v4475_v55   ;;  %4540 = vperm.xlu1 %7389, %v4474_v59  }
 0xbb9   :  { %4657 = vperm.xlu0 %7388, %v4587_v57   ;;  %4652 = vperm.xlu1 %7389, %v4586_v60  }
 0xbce   :  { %v2739_v11 = vpop.xlane.xlu0 %2738 }
 0xbcf   :  { %v2759_v12 = vmul.f32 0.0625, %v2739_v11 }
 0xbd0   :  { %v2736_v13 = vpop.xlane.xlu1 %2735 }
 0xbd1   :  { %v2767_v14 = vadd.f32 1e-05, %v2759_v12  ;;  %v2758_v6 = vmul.f32 0.0625, %v2736_v13 }
 0xbd3   :  { %7398 = vrsqrt.f32 %v2767_v14  ;;  %v2766_v5 = vadd.f32 1e-05, %v2758_v6 }
 0xbd4   :  { %v2745_v15 = vpop.xlane.xlu0 %2744 }
 0xbd5   :  { %7400 = vrsqrt.f32 %v2766_v5  ;;  %v2761_v16 = vmul.f32 0.0625, %v2745_v15 }
 0xbd7   :  { %v2769_v17 = vadd.f32 1e-05, %v2761_v16 }
 0xbd8   :  { %v2742_v19 = vpop.xlane.xlu1 %2741 }
 0xbd9   :  { %7402 = vrsqrt.f32 %v2769_v17  ;;  %v2760_v7 = vmul.f32 0.0625, %v2742_v19 }
 0xbdb   :  { %v2768_v18 = vadd.f32 1e-05, %v2760_v7 }
 0xbdc   :  { %v2751_v21 = vpop.xlane.xlu0 %2750  ;;  %v2748_v22 = vpop.xlane.xlu1 %2747 }
 0xbdd   :  { %7404 = vrsqrt.f32 %v2768_v18  ;;  %v2763_v23 = vmul.f32 0.0625, %v2751_v21  ;;  %v2762_v25 = vmul.f32 0.0625, %v2748_v22 }
 0xbdf   :  { %v2771_v26 = vadd.f32 1e-05, %v2763_v23  ;;  %v2770_v27 = vadd.f32 1e-05, %v2762_v25 }
 0xbe0   :  { %v7399_v29 = vpop.eup %7398 }
 0xbe1   :  { %v2783_v28 = vmul.f32 %v7399_v29, %v8281_v41  ;;  %7406 = vrsqrt.f32 %v2771_v26 }
 0xbe2   :  { %v7401_v30 = vpop.eup %7400  ;;  %7408 = vrsqrt.f32 %v2770_v27 }
 0xbe3   :  { %v2782_v31 = vmul.f32 %v7401_v30, %v8284_v43  ;;  %v2839_v8 = vmul.f32 %v8274_v35, %v2783_v28 }
 0xbe5   :  { %v2838_v38 = vmul.f32 %v8268_v32, %v2782_v31  ;;  %v2895_v39 = vadd.f32 %v8272_v34, %v2839_v8 }
 0xbe6   :  { %v7403_v40 = vpop.eup %7402 }
 0xbe7   :  { %v2894_v42 = vadd.f32 %v8270_v33, %v2838_v38  ;;  %v2785_v44 = vmul.f32 %v7403_v40, %v8292_v50  ;;  %v2911_v45 = vmul.f32 0.2, %v2895_v39  ;;  %vm2903_vm13 = vcmp.ge.f32.partialorder %v2895_v39, 0.0 }
 0xbe9   :  { %vm2902_vm12 = vcmp.ge.f32.partialorder %v2894_v42, 0.0  ;;  %v2910_v46 = vmul.f32 0.2, %v2894_v42  ;;  %v2841_v41 = vmul.f32 %v8276_v36, %v2785_v44  ;;  %v8447_v32 = vsel %vm2903_vm13, %v2895_v39, %v2911_v45 }
 0xbea   :  { %v7405_v47 = vpop.eup %7404 }
 0xbeb   :  { %v8440_v48 = vsel %vm2902_vm12, %v2894_v42, %v2910_v46  ;;  %v2784_v35 = vmul.f32 %v7405_v47, %v8298_v56  ;;  %v2897_v33 = vadd.f32 %v8334_v20, %v2841_v41  ;;  %v3183_v46 = vld [vmem:[#allocation10 + $0x88] sm:$0xff] }
 0xbec   :  { %6905 = vmatprep.mubr.msk.f32.mxu1 %vm1050_vm6, %v8440_v48  ;;  %6921 = vmatprep.mubr.msk.f32.mxu0 %vm1050_vm6, %v8440_v48  ;;  %v3058_v41 = vld [vmem:[#allocation10 + $0x8] sm:$0xff] }
 0xbed   :  { %6906 = vmatmul.mubr.msk.f32.vlgmr.msra.gmra.mxu1 %vm1050_vm6, %v8447_v32  ;;  %6922 = vmatmul.mubr.msk.f32.vlgmr.msra.gmra.mxu0 %vm1050_vm6, %v8447_v32  ;;  %v2840_v34 = vmul.f32 %v8278_v37, %v2784_v35  ;;  %v2913_v49 = vmul.f32 0.2, %v2897_v33  ;;  %vm2905_vm15 = vcmp.ge.f32.partialorder %v2897_v33, 0.0  ;;  %v3586_v47 = vld [vmem:[#allocation8 + $0x28] sm:$0xff]  ;;  %v3184_v35 = vld [vmem:[#allocation10 + $0x90] sm:$0xff] }
 0xbee   :  { %v7407_v36 = vpop.eup %7406 }
 0xbef   :  { %v7409_v43 = vpop.eup %7408  ;;  %v2896_v50 = vadd.f32 %v2867_v61, %v2840_v34  ;;  %v2787_v56 = vmul.f32 %v7407_v36, %v8307_v62  ;;  %v8466_v37 = vsel %vm2905_vm15, %v2897_v33, %v2913_v49  ;;  %v2757_v61 = vpop.xlane.xlu0 %2756  ;;  %v3059_v33 = vld [vmem:[#allocation10 + $0x10] sm:$0xff]  ;;  %v3585_v34 = vld [vmem:[#allocation8 + $0x20] sm:$0xff]  ;;  %v3185_v36 = vld [vmem:[#allocation10 + $0x98] sm:$0xff] }
 0xbf0   :  { %v2786_v51 = vmul.f32 %v7409_v43, %v8301_v58  ;;  %v3060_v43 = vld [vmem:[#allocation10 + $0x18] sm:$0xff] }
 0xbf1   :  { %vm2904_vm14 = vcmp.ge.f32.partialorder %v2896_v50, 0.0  ;;  %v2912_v52 = vmul.f32 0.2, %v2896_v50  ;;  %v2843_v20 = vmul.f32 %v8422_v0, %v2787_v56  ;;  %v3061_v56 = vld [vmem:[#allocation10 + $0x20] sm:$0xff]  ;;  %v3920_v49 = vld [vmem:[#allocation8 + $0x38] sm:$0xff] }
 0xbf2   :  { %v2842_v53 = vmul.f32 %v8420_v63, %v2786_v51  ;;  %v2765_v63 = vmul.f32 0.0625, %v2757_v61  ;;  %v3187_v51 = vld [vmem:[#allocation10 + $0xa8] sm:$0xff] }
 0xbf3   :  { %v8459_v54 = vsel %vm2904_vm14, %v2896_v50, %v2912_v52  ;;  %v2899_v55 = vadd.f32 %v8426_v3, %v2843_v20  ;;  %v2887_v19 = vpop.permute.xlu0 %2886  ;;  %v3186_v50 = vld [vmem:[#allocation10 + $0xa0] sm:$0xff]  ;;  %v3062_v52 = vld [vmem:[#allocation10 + $0x28] sm:$0xff]  ;;  %v3188_v20 = vld [vmem:[#allocation10 + $0xb0] sm:$0xff] }
 0xbf4   :  { %6908 = vmatprep.mubr.msk.f32.mxu1 %vm1050_vm6, %v8459_v54  ;;  %6924 = vmatprep.mubr.msk.f32.mxu0 %vm1050_vm6, %v8459_v54  ;;  %v2898_v58 = vadd.f32 %v8424_v2, %v2842_v53  ;;  %v2773_v0 = vadd.f32 1e-05, %v2765_v63  ;;  %v3063_v53 = vld [vmem:[#allocation10 + $0x30] sm:$0xff]  ;;  %v3191_v61 = vld [vmem:[#allocation10 + $0xc8] sm:$0xff] }
 0xbf5   :  { %6909 = vmatmul.mubr.msk.f32.gmra.mxu1 %vm1050_vm6, %v8466_v37  ;;  %6925 = vmatmul.mubr.msk.f32.gmra.mxu0 %vm1050_vm6, %v8466_v37  ;;  %vm2907_vm1 = vcmp.ge.f32.partialorder %v2899_v55, 0.0  ;;  %v2915_v62 = vmul.f32 0.2, %v2899_v55  ;;  %v3066_v63 = vld [vmem:[#allocation10 + $0x48] sm:$0xff] }
 0xbf6   :  { %vm2906_vm2 = vcmp.ge.f32.partialorder %v2898_v58, 0.0  ;;  %v2914_v59 = vmul.f32 0.2, %v2898_v58  ;;  %7410 = vrsqrt.f32 %v2773_v0  ;;  %v3192_v0 = vld [vmem:[#allocation10 + $0xd0] sm:$0xff] }
 0xbf7   :  { %v8473_v57 = vsel %vm2907_vm1, %v2899_v55, %v2915_v62  ;;  %v3189_v55 = vld [vmem:[#allocation10 + $0xb8] sm:$0xff]  ;;  %v3190_v62 = vld [vmem:[#allocation10 + $0xc0] sm:$0xff] }
 0xbf8   :  { %v8475_v60 = vsel %vm2906_vm2, %v2898_v58, %v2914_v59  ;;  %v3064_v58 = vld [vmem:[#allocation10 + $0x38] sm:$0xff]  ;;  %v3065_v59 = vld [vmem:[#allocation10 + $0x40] sm:$0xff] }
 0xbf9   :  { %6911 = vmatprep.mubr.msk.f32.mxu1 %vm1050_vm6, %v8475_v60  ;;  %6927 = vmatprep.mubr.msk.f32.mxu0 %vm1050_vm6, %v8475_v60 }
 0xbfa   :  { %6912 = vmatmul.mubr.msk.f32.gmra.mxu1 %vm1050_vm6, %v8473_v57  ;;  %6928 = vmatmul.mubr.msk.f32.gmra.mxu0 %vm1050_vm6, %v8473_v57 }
 0xc03   :  { %v7411_v12 = vpop.eup %7410 }
 0xc04   :  { %v2789_v13 = vmul.f32 %v7411_v12, %v8315_v9  ;;  %v3194_v12 = vld [vmem:[#allocation10 + $0xe0] sm:$0xff] }
 0xc06   :  { %v2845_v5 = vmul.f32 %v8430_v10, %v2789_v13  ;;  %v3069_v13 = vld [vmem:[#allocation10 + $0x60] sm:$0xff] }
 0xc0d   :  { %v2754_v2 = vpop.xlane.xlu1 %2753 }
 0xc0e   :  { %v2764_v3 = vmul.f32 0.0625, %v2754_v2  ;;  %v3067_v2 = vld [vmem:[#allocation10 + $0x50] sm:$0xff] }
 0xc10   :  { %v2772_v11 = vadd.f32 1e-05, %v2764_v3  ;;  %v3193_v3 = vld [vmem:[#allocation10 + $0xd8] sm:$0xff] }
 0xc11   :  { %v2892_v14 = vpop.permute.xlu1 %2891 }
 0xc12   :  { %7412 = vrsqrt.f32 %v2772_v11  ;;  %v2901_v16 = vadd.f32 %v2892_v14, %v2845_v5  ;;  %v3068_v11 = vld [vmem:[#allocation10 + $0x58] sm:$0xff]  ;;  %v3195_v14 = vld [vmem:[#allocation10 + $0xe8] sm:$0xff]  ;;  %v3196_v5 = vld [vmem:[#allocation10 + $0xf0] sm:$0xff] }
 0xc14   :  { %v2917_v18 = vmul.f32 0.2, %v2901_v16  ;;  %vm2909_vm3 = vcmp.ge.f32.partialorder %v2901_v16, 0.0 }
 0xc16   :  { %v8495_v9 = vsel %vm2909_vm3, %v2901_v16, %v2917_v18  ;;  %v3197_v16 = vld [vmem:[#allocation10 + $0xf8] sm:$0xff] }
 0xc1f   :  { %v7413_v6 = vpop.eup %7412 }
 0xc20   :  { %v2788_v15 = vmul.f32 %v7413_v6, %v8343_v24  ;;  %v3182_v24 = vld [vmem:[#allocation10 + $0x80] sm:$0xff]  ;;  %v3070_v6 = vld [vmem:[#allocation10 + $0x68] sm:$0xff] }
 0xc22   :  { %v2844_v17 = vmul.f32 %v8428_v4, %v2788_v15  ;;  %v3057_v4 = vld [vmem:[#allocation10] sm:$0xff]  ;;  %v3071_v15 = vld [vmem:[#allocation10 + $0x70] sm:$0xff] }
 0xc24   :  { %v2900_v7 = vadd.f32 %v2887_v19, %v2844_v17  ;;  %v3072_v17 = vld [vmem:[#allocation10 + $0x78] sm:$0xff]  ;;  %v3919_v19 = vld [vmem:[#allocation8 + $0x30] sm:$0xff] }
 0xc26   :  { %vm2908_vm4 = vcmp.ge.f32.partialorder %v2900_v7, 0.0  ;;  %v2916_v21 = vmul.f32 0.2, %v2900_v7 }
 0xc28   :  { %v8489_v22 = vsel %vm2908_vm4, %v2900_v7, %v2916_v21 }
 0xc29   :  { %6914 = vmatprep.mubr.msk.f32.mxu1 %vm1050_vm6, %v8489_v22  ;;  %6930 = vmatprep.mubr.msk.f32.mxu0 %vm1050_vm6, %v8489_v22 }
 0xc2a   :  { %6915 = vmatmul.mubr.msk.f32.gmra.mxu1 %vm1050_vm6, %v8495_v9  ;;  %6931 = vmatmul.mubr.msk.f32.gmra.mxu0 %vm1050_vm6, %v8495_v9 }
 0xc2b   :  { %6949 = vmatprep.mubr.msk.f32.mxu1 %vm875_vm5, %v3182_v24  ;;  %6989 = vmatprep.mubr.msk.f32.mxu0 %vm875_vm5, %v3057_v4 }
 0xcad   :  { %v6907_v10 = vpop.f32.mrf.mxu1  ;;  %v6923_v23 = vpop.f32.mrf.mxu0 }
 0xcaf   :  { %v3018_v25 = vpop.f32.mrf.mxu1  ;;  %v3142_v26 = vpop.f32.mrf.mxu0 }
 0xcb5   :  { %v6910_v27 = vpop.f32.mrf.mxu1  ;;  %v6926_v29 = vpop.f32.mrf.mxu0 }
 0xcb7   :  { %v3028_v28 = vpop.f32.mrf.mxu1  ;;  %v3152_v30 = vpop.f32.mrf.mxu0 }
 0xcba   :  { %v6913_v31 = vpop.f32.mrf.mxu1  ;;  %v6929_v8 = vpop.f32.mrf.mxu0 }
 0xcbc   :  { %v3038_v38 = vpop.f32.mrf.mxu1  ;;  %v3162_v39 = vpop.f32.mrf.mxu0 }
 0xcea   :  { %v6916_v40 = vpop.f32.mrf.mxu1  ;;  %v6932_v42 = vpop.f32.mrf.mxu0 }
 0xceb   :  { %6933 = vmatprep.subr.mxu1 %v6932_v42  ;;  %6973 = vmatprep.subr.mxu0 %v6916_v40 }
 0xcec   :  { %v3048_v44 = vpop.f32.mrf.mxu1  ;;  %v3172_v45 = vpop.f32.mrf.mxu0  ;;  %6934 = vmatpush3.msra.mxu1 %v6932_v42  ;;  %6974 = vmatpush3.msra.mxu0 %v6916_v40 }
 0xced   :  { %6935 = vmatprep.subr.mxu1 %v3172_v45  ;;  %6975 = vmatprep.subr.mxu0 %v3048_v44 }
 0xcee   :  { %6936 = vmatpush3.msra.mxu1 %v3172_v45  ;;  %6976 = vmatpush3.msra.mxu0 %v3048_v44 }
 0xcef   :  { %6937 = vmatprep.subr.mxu1 %v6929_v8  ;;  %6977 = vmatprep.subr.mxu0 %v6913_v31 }
 0xcf0   :  { %6938 = vmatpush3.msra.mxu1 %v6929_v8  ;;  %6978 = vmatpush3.msra.mxu0 %v6913_v31 }
 0xcf1   :  { %6939 = vmatprep.subr.mxu1 %v3162_v39  ;;  %6979 = vmatprep.subr.mxu0 %v3038_v38 }
 0xcf2   :  { %6940 = vmatpush3.msra.mxu1 %v3162_v39  ;;  %6980 = vmatpush3.msra.mxu0 %v3038_v38 }
 0xcf3   :  { %6941 = vmatprep.subr.mxu1 %v6926_v29  ;;  %6981 = vmatprep.subr.mxu0 %v6910_v27 }
 0xcf4   :  { %6942 = vmatpush3.msra.mxu1 %v6926_v29  ;;  %6982 = vmatpush3.msra.mxu0 %v6910_v27 }
 0xcf5   :  { %6943 = vmatprep.subr.mxu1 %v3152_v30  ;;  %6983 = vmatprep.subr.mxu0 %v3028_v28 }
 0xcf6   :  { %6944 = vmatpush3.msra.mxu1 %v3152_v30  ;;  %6984 = vmatpush3.msra.mxu0 %v3028_v28 }
 0xcf7   :  { %6945 = vmatprep.subr.mxu1 %v6923_v23  ;;  %6985 = vmatprep.subr.mxu0 %v6907_v10 }
 0xcf8   :  { %6946 = vmatpush3.msra.mxu1 %v6923_v23  ;;  %6986 = vmatpush3.msra.mxu0 %v6907_v10 }
 0xcf9   :  { %6947 = vmatprep.subr.mxu1 %v3142_v26  ;;  %6987 = vmatprep.subr.mxu0 %v3018_v25 }
 0xcfa   :  { %6948 = vmatpush3.msra.mxu1 %v3142_v26  ;;  %6988 = vmatpush3.msra.mxu0 %v3018_v25 }
 0xcfb   :  { %6950 = vmatmul.mubr.msk.f32.vlgmr.msra.gmra.mxu1 %vm875_vm5, %v3183_v46  ;;  %6990 = vmatmul.mubr.msk.f32.vlgmr.msra.gmra.mxu0 %vm875_vm5, %v3058_v41 }
 0xcfc   :  { %7013 = vmatprep.subr.mxu1 %v3586_v47  ;;  %6952 = vmatprep.mubr.msk.f32.mxu1 %vm875_vm5, %v3184_v35  ;;  %v3694_v35 = vld [vmem:[#allocation10 + $0x108] sm:$0xff] }
 0xcfd   :  { %6992 = vmatprep.mubr.msk.f32.mxu0 %vm875_vm5, %v3059_v33  ;;  %7014 = vmatpush3.msra.mxu1 %v3586_v47  ;;  %v3695_v33 = vld [vmem:[#allocation10 + $0x110] sm:$0xff] }
 0xcfe   :  { %7015 = vmatprep.subr.mxu1 %v3585_v34 }
 0xcff   :  { %6953 = vmatmul.mubr.msk.f32.gmra.mxu1 %vm875_vm5, %v3185_v36  ;;  %6993 = vmatmul.mubr.msk.f32.gmra.mxu0 %vm875_vm5, %v3060_v43  ;;  %v3696_v43 = vld [vmem:[#allocation10 + $0x118] sm:$0xff] }
 0xd00   :  { %6955 = vmatprep.mubr.msk.f32.mxu1 %vm875_vm5, %v3186_v50  ;;  %6995 = vmatprep.mubr.msk.f32.mxu0 %vm875_vm5, %v3061_v56  ;;  %v3697_v50 = vld [vmem:[#allocation10 + $0x120] sm:$0xff]  ;;  %v3698_v56 = vld [vmem:[#allocation10 + $0x128] sm:$0xff] }
 0xd01   :  { %7016 = vmatpush3.msra.mxu1 %v3585_v34 }
 0xd02   :  { %7069 = vmatprep.subr.mxu1 %v3920_v49 }
 0xd03   :  { %6956 = vmatmul.mubr.msk.f32.gmra.mxu1 %vm875_vm5, %v3187_v51  ;;  %6996 = vmatmul.mubr.msk.f32.gmra.mxu0 %vm875_vm5, %v3062_v52  ;;  %v3700_v51 = vld [vmem:[#allocation10 + $0x138] sm:$0xff]  ;;  %v3701_v52 = vld [vmem:[#allocation10 + $0x140] sm:$0xff] }
 0xd04   :  { %6958 = vmatprep.mubr.msk.f32.mxu1 %vm875_vm5, %v3188_v20  ;;  %6998 = vmatprep.mubr.msk.f32.mxu0 %vm875_vm5, %v3063_v53  ;;  %v3702_v20 = vld [vmem:[#allocation10 + $0x148] sm:$0xff] }
 0xd05   :  { %v4028_v53 = vld [vmem:[#allocation10 + $0x188] sm:$0xff] }
 0xd07   :  { %6959 = vmatmul.mubr.msk.f32.gmra.mxu1 %vm875_vm5, %v3189_v55  ;;  %6999 = vmatmul.mubr.msk.f32.gmra.mxu0 %vm875_vm5, %v3064_v58  ;;  %v3703_v55 = vld [vmem:[#allocation10 + $0x150] sm:$0xff] }
 0xd08   :  { %6961 = vmatprep.mubr.msk.f32.mxu1 %vm875_vm5, %v3190_v62  ;;  %7001 = vmatprep.mubr.msk.f32.mxu0 %vm875_vm5, %v3065_v59  ;;  %v4029_v58 = vld [vmem:[#allocation10 + $0x190] sm:$0xff]  ;;  %v3704_v62 = vld [vmem:[#allocation10 + $0x158] sm:$0xff] }
 0xd09   :  { %v4030_v59 = vld [vmem:[#allocation10 + $0x198] sm:$0xff] }
 0xd0b   :  { %6962 = vmatmul.mubr.msk.f32.gmra.mxu1 %vm875_vm5, %v3191_v61  ;;  %7002 = vmatmul.mubr.msk.f32.gmra.mxu0 %vm875_vm5, %v3066_v63  ;;  %v3705_v61 = vld [vmem:[#allocation10 + $0x160] sm:$0xff] }
 0xd0c   :  { %6964 = vmatprep.mubr.msk.f32.mxu1 %vm875_vm5, %v3192_v0  ;;  %7004 = vmatprep.mubr.msk.f32.mxu0 %vm875_vm5, %v3067_v2  ;;  %v4031_v63 = vld [vmem:[#allocation10 + $0x1a0] sm:$0xff]  ;;  %v3706_v0 = vld [vmem:[#allocation10 + $0x168] sm:$0xff] }
 0xd0d   :  { %v4032_v2 = vld [vmem:[#allocation10 + $0x1a8] sm:$0xff] }
 0xd0f   :  { %6965 = vmatmul.mubr.msk.f32.gmra.mxu1 %vm875_vm5, %v3193_v3  ;;  %7005 = vmatmul.mubr.msk.f32.gmra.mxu0 %vm875_vm5, %v3068_v11  ;;  %v3707_v3 = vld [vmem:[#allocation10 + $0x170] sm:$0xff] }
 0xd10   :  { %6967 = vmatprep.mubr.msk.f32.mxu1 %vm875_vm5, %v3194_v12  ;;  %7007 = vmatprep.mubr.msk.f32.mxu0 %vm875_vm5, %v3069_v13  ;;  %v4033_v11 = vld [vmem:[#allocation10 + $0x1b0] sm:$0xff]  ;;  %v3708_v12 = vld [vmem:[#allocation10 + $0x178] sm:$0xff] }
 0xd11   :  { %v4034_v13 = vld [vmem:[#allocation10 + $0x1b8] sm:$0xff] }
 0xd13   :  { %6968 = vmatmul.mubr.msk.f32.gmra.mxu1 %vm875_vm5, %v3195_v14  ;;  %7008 = vmatmul.mubr.msk.f32.gmra.mxu0 %vm875_vm5, %v3070_v6  ;;  %v4035_v14 = vld [vmem:[#allocation10 + $0x1c0] sm:$0xff]  ;;  %v4036_v6 = vld [vmem:[#allocation10 + $0x1c8] sm:$0xff] }
 0xd14   :  { %6970 = vmatprep.mubr.msk.f32.mxu1 %vm875_vm5, %v3196_v5  ;;  %7010 = vmatprep.mubr.msk.f32.mxu0 %vm875_vm5, %v3071_v15  ;;  %v4037_v5 = vld [vmem:[#allocation10 + $0x1d0] sm:$0xff]  ;;  %v4038_v15 = vld [vmem:[#allocation10 + $0x1d8] sm:$0xff] }
 0xd17   :  { %6971 = vmatmul.mubr.msk.f32.gmra.mxu1 %vm875_vm5, %v3197_v16  ;;  %7011 = vmatmul.mubr.msk.f32.gmra.mxu0 %vm875_vm5, %v3072_v17  ;;  %v4039_v16 = vld [vmem:[#allocation10 + $0x1e0] sm:$0xff]  ;;  %v4040_v17 = vld [vmem:[#allocation10 + $0x1e8] sm:$0xff] }
 0xd18   :  { %7017 = vmatprep.mubr.msk.f32.mxu1 %vm1050_vm6, %v8440_v48 }
 0xd1b   :  { %7018 = vmatmul.mubr.msk.f32.vlgmr.msra.gmra.mxu1 %vm1050_vm6, %v8447_v32 }
 0xd1c   :  { %7020 = vmatprep.mubr.msk.f32.mxu1 %vm1050_vm6, %v8459_v54  ;;  %7070 = vmatpush3.msra.mxu1 %v3920_v49  ;;  %v3699_v49 = vld [vmem:[#allocation10 + $0x130] sm:$0xff] }
 0xd1d   :  { %7071 = vmatprep.subr.mxu1 %v3919_v19 }
 0xd1e   :  { %7072 = vmatpush3.msra.mxu1 %v3919_v19  ;;  %v4041_v19 = vld [vmem:[#allocation10 + $0x1f0] sm:$0xff] }
 0xd1f   :  { %7021 = vmatmul.mubr.msk.f32.gmra.mxu1 %vm1050_vm6, %v8466_v37 }
 0xd20   :  { %7023 = vmatprep.mubr.msk.f32.mxu1 %vm1050_vm6, %v8475_v60 }
 0xd23   :  { %7024 = vmatmul.mubr.msk.f32.gmra.mxu1 %vm1050_vm6, %v8473_v57 }
 0xd24   :  { %7026 = vmatprep.mubr.msk.f32.mxu1 %vm1050_vm6, %v8489_v22 }
 0xd27   :  { %7027 = vmatmul.mubr.msk.f32.gmra.mxu1 %vm1050_vm6, %v8495_v9 }
 0xd28   :  { %7073 = vmatprep.mubr.msk.f32.mxu1 %vm1050_vm6, %v8440_v48  ;;  %v3693_v48 = vld [vmem:[#allocation10 + $0x100] sm:$0xff] }
 0xd29   :  { %7045 = vmatprep.mubr.msk.f32.mxu0 %vm875_vm5, %v3693_v48  ;;  %v4042_v48 = vld [vmem:[#allocation10 + $0x1f8] sm:$0xff] }
 0xd2b   :  { %7074 = vmatmul.mubr.msk.f32.vlgmr.msra.gmra.mxu1 %vm1050_vm6, %v8447_v32  ;;  %v4027_v32 = vld [vmem:[#allocation10 + $0x180] sm:$0xff] }
 0xd2c   :  { %7076 = vmatprep.mubr.msk.f32.mxu1 %vm1050_vm6, %v8459_v54 }
 0xd2f   :  { %7077 = vmatmul.mubr.msk.f32.gmra.mxu1 %vm1050_vm6, %v8466_v37 }
 0xd30   :  { %7079 = vmatprep.mubr.msk.f32.mxu1 %vm1050_vm6, %v8475_v60 }
 0xd33   :  { %7080 = vmatmul.mubr.msk.f32.gmra.mxu1 %vm1050_vm6, %v8473_v57 }
 0xd34   :  { %7082 = vmatprep.mubr.msk.f32.mxu1 %vm1050_vm6, %v8489_v22 }
 0xd37   :  { %7083 = vmatmul.mubr.msk.f32.gmra.mxu1 %vm1050_vm6, %v8495_v9  ;;  %vm4784_vm6 = vcmask 1045504  }
 0xd38   :  { %7101 = vmatprep.mubr.msk.f32.mxu1 %vm875_vm5, %v4027_v32 }
 0xdbb   :  { %v8567_v54 = vpop.f32.mrf.mxu1  ;;  %v6991_v32 = vpop.f32.mrf.mxu0 }
 0xdbd   :  { %v8569_v37 = vpop.f32.mrf.mxu1 }
 0xdbf   :  { %v8571_v60 = vpop.f32.mrf.mxu1 }
 0xdc1   :  { %v8573_v7 = vpop.f32.mrf.mxu1 }
 0xdc3   :  { %v8575_v57 = vpop.f32.mrf.mxu1 }
 0xdc5   :  { %v8577_v18 = vpop.f32.mrf.mxu1 }
 0xdc7   :  { %v8579_v21 = vpop.f32.mrf.mxu1 }
 0xdc9   :  { %v8581_v22 = vpop.f32.mrf.mxu1 }
 0xdcb   :  { %v8583_v9 = vpop.f32.mrf.mxu1 }
 0xdcd   :  { %v8585_v24 = vpop.f32.mrf.mxu1 }
 0xdcf   :  { %v8587_v4 = vpop.f32.mrf.mxu1 }
 0xdd1   :  { %v8589_v10 = vpop.f32.mrf.mxu1 }
 0xdd3   :  { %v8591_v23 = vpop.f32.mrf.mxu1 }
 0xdd5   :  { %v8593_v25 = vpop.f32.mrf.mxu1 }
 0xdd7   :  { %v8595_v26 = vpop.f32.mrf.mxu1 }
 0xdd9   :  { %v8597_v27 = vpop.f32.mrf.mxu1 }
 0xddb   :  { %v7019_v29 = vpop.f32.mrf.mxu1 }
 0xddd   :  { %v3653_v28 = vpop.f32.mrf.mxu1 }
 0xddf   :  { %v7022_v30 = vpop.f32.mrf.mxu1 }
 0xde1   :  { %v3663_v31 = vpop.f32.mrf.mxu1 }
 0xde3   :  { %v7025_v8 = vpop.f32.mrf.mxu1 }
 0xde5   :  { %v3673_v38 = vpop.f32.mrf.mxu1 }
 0xde7   :  { %v7028_v39 = vpop.f32.mrf.mxu1 }
 0xde8   :  { %7029 = vmatprep.subr.mxu0 %v7028_v39 }
 0xde9   :  { %v3683_v40 = vpop.f32.mrf.mxu1  ;;  %7030 = vmatpush3.msra.mxu0 %v7028_v39 }
 0xdea   :  { %7031 = vmatprep.subr.mxu0 %v3683_v40 }
 0xdeb   :  { %7032 = vmatpush3.msra.mxu0 %v3683_v40  ;;  %v7075_v42 = vpop.f32.mrf.mxu1 }
 0xdec   :  { %7033 = vmatprep.subr.mxu0 %v7025_v8 }
 0xded   :  { %7034 = vmatpush3.msra.mxu0 %v7025_v8  ;;  %v3987_v44 = vpop.f32.mrf.mxu1 }
 0xdee   :  { %7035 = vmatprep.subr.mxu0 %v3673_v38 }
 0xdef   :  { %7036 = vmatpush3.msra.mxu0 %v3673_v38  ;;  %v7078_v45 = vpop.f32.mrf.mxu1 }
 0xdf0   :  { %7037 = vmatprep.subr.mxu0 %v7022_v30 }
 0xdf1   :  { %7038 = vmatpush3.msra.mxu0 %v7022_v30  ;;  %v3997_v46 = vpop.f32.mrf.mxu1 }
 0xdf2   :  { %7039 = vmatprep.subr.mxu0 %v3663_v31 }
 0xdf3   :  { %7040 = vmatpush3.msra.mxu0 %v3663_v31  ;;  %v7081_v41 = vpop.f32.mrf.mxu1 }
 0xdf4   :  { %7041 = vmatprep.subr.mxu0 %v7019_v29 }
 0xdf5   :  { %7042 = vmatpush3.msra.mxu0 %v7019_v29  ;;  %v4007_v47 = vpop.f32.mrf.mxu1  ;;  %v3505_v29 = vpop.f32.mrf.mxu0 }
 0xdf6   :  { %7043 = vmatprep.subr.mxu0 %v3653_v28 }
 0xdf7   :  { %7044 = vmatpush3.msra.mxu0 %v3653_v28  ;;  %v7084_v34 = vpop.f32.mrf.mxu1  ;;  %v6994_v28 = vpop.f32.mrf.mxu0 }
 0xdf8   :  { %7046 = vmatmul.mubr.msk.f32.vlgmr.msra.gmra.mxu0 %vm875_vm5, %v3694_v35  ;;  %7085 = vmatprep.subr.mxu1 %v7084_v34 }
 0xdf9   :  { %v4017_v36 = vpop.f32.mrf.mxu1  ;;  %7086 = vmatpush3.msra.mxu1 %v7084_v34  ;;  %7048 = vmatprep.mubr.msk.f32.mxu0 %vm875_vm5, %v3695_v33  ;;  %v3515_v30 = vpop.f32.mrf.mxu0 }
 0xdfa   :  { %7087 = vmatprep.subr.mxu1 %v4017_v36 }
 0xdfb   :  { %7088 = vmatpush3.msra.mxu1 %v4017_v36  ;;  %v6997_v31 = vpop.f32.mrf.mxu0 }
 0xdfc   :  { %7049 = vmatmul.mubr.msk.f32.gmra.mxu0 %vm875_vm5, %v3696_v43  ;;  %7089 = vmatprep.subr.mxu1 %v7081_v41 }
 0xdfd   :  { %7090 = vmatpush3.msra.mxu1 %v7081_v41  ;;  %7051 = vmatprep.mubr.msk.f32.mxu0 %vm875_vm5, %v3697_v50  ;;  %v3525_v8 = vpop.f32.mrf.mxu0 }
 0xdfe   :  { %7091 = vmatprep.subr.mxu1 %v4007_v47 }
 0xdff   :  { %7092 = vmatpush3.msra.mxu1 %v4007_v47  ;;  %v7000_v38 = vpop.f32.mrf.mxu0 }
 0xe00   :  { %7052 = vmatmul.mubr.msk.f32.gmra.mxu0 %vm875_vm5, %v3698_v56  ;;  %7093 = vmatprep.subr.mxu1 %v7078_v45 }
 0xe01   :  { %7094 = vmatpush3.msra.mxu1 %v7078_v45  ;;  %7054 = vmatprep.mubr.msk.f32.mxu0 %vm875_vm5, %v3699_v49  ;;  %v3535_v39 = vpop.f32.mrf.mxu0 }
 0xe02   :  { %7095 = vmatprep.subr.mxu1 %v3997_v46 }
 0xe03   :  { %7096 = vmatpush3.msra.mxu1 %v3997_v46  ;;  %v8629_v40 = vpop.f32.mrf.mxu0 }
 0xe04   :  { %7055 = vmatmul.mubr.msk.f32.gmra.mxu0 %vm875_vm5, %v3700_v51  ;;  %7097 = vmatprep.subr.mxu1 %v7075_v42  ;;  %v3511_v51 = vadd.f32 %v6991_v32, %v8567_v54 }
 0xe05   :  { %7098 = vmatpush3.msra.mxu1 %v7075_v42  ;;  %7057 = vmatprep.mubr.msk.f32.mxu0 %vm875_vm5, %v3701_v52  ;;  %v3545_v42 = vpop.f32.mrf.mxu0 }
 0xe06   :  { %7099 = vmatprep.subr.mxu1 %v3987_v44 }
 0xe07   :  { %7100 = vmatpush3.msra.mxu1 %v3987_v44  ;;  %v8631_v44 = vpop.f32.mrf.mxu0 }
 0xe08   :  { %7058 = vmatmul.mubr.msk.f32.gmra.mxu0 %vm875_vm5, %v3702_v20  ;;  %7102 = vmatmul.mubr.msk.f32.vlgmr.msra.gmra.mxu1 %vm875_vm5, %v4028_v53  ;;  %v3506_v20 = vadd.f32 %v3505_v29, %v8569_v37  ;;  %v3516_v37 = vadd.f32 %v3515_v30, %v8573_v7  ;;  %v3536_v29 = vadd.f32 %v3535_v39, %v8581_v22 }
 0xe09   :  { %7060 = vmatprep.mubr.msk.f32.mxu0 %vm875_vm5, %v3703_v55  ;;  %7104 = vmatprep.mubr.msk.f32.mxu1 %vm875_vm5, %v4029_v58  ;;  %v8633_v45 = vpop.f32.mrf.mxu0  ;;  %v3546_v22 = vadd.f32 %v3545_v42, %v8585_v24 }
 0xe0a   :  { %v3556_v24 = vadd.f32 %v8633_v45, %v8589_v10 }
 0xe0b   :  { %v8635_v46 = vpop.f32.mrf.mxu0 }
 0xe0c   :  { %7061 = vmatmul.mubr.msk.f32.gmra.mxu0 %vm875_vm5, %v3704_v62  ;;  %7105 = vmatmul.mubr.msk.f32.gmra.mxu1 %vm875_vm5, %v4030_v59  ;;  %v3521_v62 = vadd.f32 %v6994_v28, %v8571_v60 }
 0xe0d   :  { %7063 = vmatprep.mubr.msk.f32.mxu0 %vm875_vm5, %v3705_v61  ;;  %7107 = vmatprep.mubr.msk.f32.mxu1 %vm875_vm5, %v4031_v63  ;;  %v8637_v41 = vpop.f32.mrf.mxu0 }
 0xe0e   :  { %v3566_v10 = vadd.f32 %v8637_v41, %v8593_v25 }
 0xe0f   :  { %v8639_v47 = vpop.f32.mrf.mxu0 }
 0xe10   :  { %7064 = vmatmul.mubr.msk.f32.gmra.mxu0 %vm875_vm5, %v3706_v0  ;;  %7108 = vmatmul.mubr.msk.f32.gmra.mxu1 %vm875_vm5, %v4032_v2 }
 0xe11   :  { %7066 = vmatprep.mubr.msk.f32.mxu0 %vm875_vm5, %v3707_v3  ;;  %7110 = vmatprep.mubr.msk.f32.mxu1 %vm875_vm5, %v4033_v11  ;;  %v8641_v35 = vpop.f32.mrf.mxu0 }
 0xe12   :  { %v3576_v25 = vadd.f32 %v8641_v35, %v8597_v27  ;;  %v8720_v27 = vpop.permute.xlu0 %4485 }
 0xe14   :  { %7067 = vmatmul.mubr.msk.f32.gmra.mxu0 %vm875_vm5, %v3708_v12  ;;  %7111 = vmatmul.mubr.msk.f32.gmra.mxu1 %vm875_vm5, %v4034_v13 }
 0xe15   :  { %7113 = vmatprep.mubr.msk.f32.mxu1 %vm875_vm5, %v4035_v14 }
 0xe18   :  { %7114 = vmatmul.mubr.msk.f32.gmra.mxu1 %vm875_vm5, %v4036_v6  ;;  %v3526_v6 = vadd.f32 %v3525_v8, %v8577_v18  ;;  %v3541_v18 = vadd.f32 %v7000_v38, %v8579_v21  ;;  %v3551_v21 = vadd.f32 %v8629_v40, %v8583_v9  ;;  %v3561_v9 = vadd.f32 %v8631_v44, %v8587_v4 }
 0xe19   :  { %7116 = vmatprep.mubr.msk.f32.mxu1 %vm875_vm5, %v4037_v5  ;;  %v3571_v4 = vadd.f32 %v8635_v46, %v8591_v23  ;;  %v3581_v23 = vadd.f32 %v8639_v47, %v8595_v26 }
 0xe1c   :  { %7117 = vmatmul.mubr.msk.f32.gmra.mxu1 %vm875_vm5, %v4038_v15 }
 0xe1d   :  { %7119 = vmatprep.mubr.msk.f32.mxu1 %vm875_vm5, %v4039_v16  ;;  %v3531_v16 = vadd.f32 %v6997_v31, %v8575_v57 }
 0xe20   :  { %7120 = vmatmul.mubr.msk.f32.gmra.mxu1 %vm875_vm5, %v4040_v17 }
 0xe21   :  { %7122 = vmatprep.mubr.msk.f32.mxu1 %vm875_vm5, %v4041_v19 }
 0xe24   :  { %7123 = vmatmul.mubr.msk.f32.gmra.mxu1 %vm875_vm5, %v4042_v48  ;;  %vm4252_vm5 = vcmask 113664  }
 0xeb8   :  { %v7047_v33 = vpop.f32.mrf.mxu0 }
 0xeb9   :  { %v3903_v53 = vadd.f32 %v7047_v33, %v3511_v51 }
 0xeba   :  { %v3823_v34 = vpop.f32.mrf.mxu0 }
 0xebb   :  { %v3902_v59 = vadd.f32 %v3823_v34, %v3506_v20 }
 0xebc   :  { %v7050_v36 = vpop.f32.mrf.mxu0 }
 0xebd   :  { %v3905_v2 = vadd.f32 %v7050_v36, %v3521_v62 }
 0xebe   :  { %v3833_v43 = vpop.f32.mrf.mxu0 }
 0xebf   :  { %v3904_v5 = vadd.f32 %v3833_v43, %v3516_v37 }
 0xec0   :  { %v7053_v50 = vpop.f32.mrf.mxu0 }
 0xec1   :  { %v3907_v28 = vadd.f32 %v7053_v50, %v3531_v16 }
 0xec2   :  { %v3843_v56 = vpop.f32.mrf.mxu0 }
 0xec3   :  { %v3906_v17 = vadd.f32 %v3843_v56, %v3526_v6 }
 0xec4   :  { %v7056_v49 = vpop.f32.mrf.mxu0 }
 0xec5   :  { %v3909_v39 = vadd.f32 %v7056_v49, %v3541_v18 }
 0xec6   :  { %v3853_v52 = vpop.f32.mrf.mxu0 }
 0xec7   :  { %v3908_v33 = vadd.f32 %v3853_v52, %v3536_v29 }
 0xec8   :  { %v7059_v55 = vpop.f32.mrf.mxu0  ;;  %v7103_v58 = vpop.f32.mrf.mxu1 }
 0xec9   :  { %v8646_v61 = vadd.f32 %v7103_v58, %v3903_v53  ;;  %v3911_v42 = vadd.f32 %v7059_v55, %v3551_v21 }
 0xeca   :  { %v3863_v63 = vpop.f32.mrf.mxu0  ;;  %v4157_v0 = vpop.f32.mrf.mxu1 }
 0xecb   :  { %v8648_v3 = vadd.f32 %v4157_v0, %v3902_v59  ;;  %v4256_v54 = vsel %vm4252_vm5, %v8646_v61, 0.0  ;;  %v3910_v56 = vadd.f32 %v3863_v63, %v3546_v22 }
 0xecc   :  { %v7106_v11 = vpop.f32.mrf.mxu1  ;;  %4257 = vadd.xlane.f32.xlu1 %v4256_v54  ;;  %v7062_v13 = vpop.f32.mrf.mxu0 }
 0xecd   :  { %v8653_v12 = vadd.f32 %v7106_v11, %v3905_v2  ;;  %v4253_v60 = vsel %vm4252_vm5, %v8648_v3, 0.0  ;;  %v3913_v45 = vadd.f32 %v7062_v13, %v3561_v9 }
 0xece   :  { %v4167_v14 = vpop.f32.mrf.mxu1  ;;  %4254 = vadd.xlane.f32.xlu0 %v4253_v60  ;;  %v3873_v48 = vpop.f32.mrf.mxu0 }
 0xecf   :  { %v8659_v19 = vadd.f32 %v4167_v14, %v3904_v5  ;;  %v4262_v7 = vsel %vm4252_vm5, %v8653_v12, 0.0  ;;  %v3912_v62 = vadd.f32 %v3873_v48, %v3556_v24 }
 0xed0   :  { %v7109_v15 = vpop.f32.mrf.mxu1  ;;  %v7065_v36 = vpop.f32.mrf.mxu0 }
 0xed1   :  { %v8667_v34 = vadd.f32 %v7109_v15, %v3907_v28  ;;  %v4259_v57 = vsel %vm4252_vm5, %v8659_v19, 0.0  ;;  %v3915_v41 = vadd.f32 %v7065_v36, %v3571_v4  ;;  %v8730_v28 = vpop.permute.xlu0 %4592  ;;  %v4477_v36 = vld [vmem:[%s9287_s14 + $0x78] sm:$0xff] }
 0xed2   :  { %v4177_v32 = vpop.f32.mrf.mxu1  ;;  %4263 = vadd.xlane.f32.xlu0 %v4262_v7  ;;  %v3883_v53 = vpop.f32.mrf.mxu0 }
 0xed3   :  { %v8664_v30 = vadd.f32 %v4177_v32, %v3906_v17  ;;  %v4268_v52 = vsel %vm4252_vm5, %v8667_v34, 0.0  ;;  %v3914_v11 = vadd.f32 %v3883_v53, %v3566_v10 }
 0xed4   :  { %v7112_v8 = vpop.f32.mrf.mxu1  ;;  %v7068_v2 = vpop.f32.mrf.mxu0 }
 0xed5   :  { %v4265_v31 = vsel %vm4252_vm5, %v8664_v30, 0.0  ;;  %v8678_v51 = vadd.f32 %v7112_v8, %v3909_v39  ;;  %v3917_v35 = vadd.f32 %v7068_v2, %v3581_v23  ;;  %v8734_v8 = vpop.permute.xlu0 %4597 }
 0xed6   :  { %v4187_v43 = vpop.f32.mrf.mxu1  ;;  %4260 = vadd.xlane.f32.xlu0 %v4259_v57  ;;  %4266 = vadd.xlane.f32.xlu1 %v4265_v31  ;;  %v3893_v6 = vpop.f32.mrf.mxu0 }
 0xed7   :  { %v8674_v50 = vadd.f32 %v4187_v43, %v3908_v33  ;;  %v4274_v63 = vsel %vm4252_vm5, %v8678_v51, 0.0  ;;  %v3916_v15 = vadd.f32 %v3893_v6, %v3576_v25  ;;  %v4476_v33 = vld [vmem:[%s9287_s14 + $0x70] sm:$0xff] }
 0xed8   :  { %v7115_v38 = vpop.f32.mrf.mxu1 }
 0xed9   :  { %v4271_v20 = vsel %vm4252_vm5, %v8674_v50, 0.0  ;;  %v8690_v59 = vadd.f32 %v7115_v38, %v3911_v42  ;;  %v8739_v57 = vpop.permute.xlu0 %4490 }
 0xeda   :  { %v4197_v58 = vpop.f32.mrf.mxu1  ;;  %4269 = vadd.xlane.f32.xlu0 %v4268_v52  ;;  %4272 = vadd.xlane.f32.xlu1 %v4271_v20 }
 0xedb   :  { %v8686_v49 = vadd.f32 %v4197_v58, %v3910_v56  ;;  %v4280_v60 = vsel %vm4252_vm5, %v8690_v59, 0.0  ;;  %v8756_v56 = vpop.permute.xlu1 %4480 }
 0xedc   :  { %v7118_v40 = vpop.f32.mrf.mxu1 }
 0xedd   :  { %v4277_v0 = vsel %vm4252_vm5, %v8686_v49, 0.0  ;;  %v8702_v37 = vadd.f32 %v7118_v40, %v3913_v45  ;;  %v8741_v31 = vpop.permute.xlu0 %4495 }
 0xede   :  { %v4207_v54 = vpop.f32.mrf.mxu1  ;;  %4275 = vadd.xlane.f32.xlu0 %v4274_v63  ;;  %4278 = vadd.xlane.f32.xlu1 %v4277_v0 }
 0xedf   :  { %v8698_v55 = vadd.f32 %v4207_v54, %v3912_v62  ;;  %v4286_v17 = vsel %vm4252_vm5, %v8702_v37, 0.0  ;;  %v8760_v20 = vpop.permute.xlu1 %4505 }
 0xee0   :  { %v7121_v44 = vpop.f32.mrf.mxu1 }
 0xee1   :  { %v4283_v14 = vsel %vm4252_vm5, %v8698_v55, 0.0  ;;  %v8714_v16 = vadd.f32 %v7121_v44, %v3915_v41  ;;  %v8746_v43 = vpop.permute.xlu0 %4602 }
 0xee2   :  { %v4217_v5 = vpop.f32.mrf.mxu1  ;;  %4281 = vadd.xlane.f32.xlu0 %v4280_v60  ;;  %4284 = vadd.xlane.f32.xlu1 %v4283_v14 }
 0xee3   :  { %v8710_v13 = vadd.f32 %v4217_v5, %v3914_v11  ;;  %v4292_v26 = vsel %vm4252_vm5, %v8714_v16, 0.0  ;;  %v8764_v58 = vpop.permute.xlu1 %4622 }
 0xee4   :  { %v7124_v46 = vpop.f32.mrf.mxu1 }
 0xee5   :  { %v4289_v7 = vsel %vm4252_vm5, %v8710_v13, 0.0  ;;  %v8724_v29 = vadd.f32 %v7124_v46, %v3917_v35  ;;  %v8748_v22 = vpop.permute.xlu0 %4607 }
 0xee6   :  { %v4227_v48 = vpop.f32.mrf.mxu1  ;;  %4287 = vadd.xlane.f32.xlu0 %v4286_v17  ;;  %4290 = vadd.xlane.f32.xlu1 %v4289_v7 }
 0xee7   :  { %v8722_v32 = vadd.f32 %v4227_v48, %v3916_v15  ;;  %v4298_v18 = vsel %vm4252_vm5, %v8724_v29, 0.0  ;;  %v8768_v42 = vpop.permute.xlu1 %4520 }
 0xee9   :  { %v4295_v47 = vsel %vm4252_vm5, %v8722_v32, 0.0  ;;  %v8750_v39 = vpop.permute.xlu0 %4500 }
 0xeea   :  { %4293 = vadd.xlane.f32.xlu0 %v4292_v26  ;;  %4296 = vadd.xlane.f32.xlu1 %v4295_v47 }
 0xeeb   :  { %v8772_v40 = vpop.permute.xlu1 %4632 }
 0xeed   :  { %v8752_v21 = vpop.permute.xlu0 %4612 }
 0xeee   :  { %4299 = vadd.xlane.f32.xlu0 %v4298_v18 }
 0xeef   :  { %v8776_v63 = vpop.permute.xlu1 %4530 }
 0xef1   :  { %v8754_v38 = vpop.permute.xlu0 %4617 }
 0xef3   :  { %v8780_v2 = vpop.permute.xlu1 %4642 }
 0xef5   :  { %v8758_v52 = vpop.permute.xlu0 %4510 }
 0xef7   :  { %v8784_v10 = vpop.permute.xlu1 %4540 }
 0xef9   :  { %v8762_v53 = vpop.permute.xlu0 %4515 }
 0xefb   :  { %4550 = vperm.xlu1 %7389, %v4476_v33   ;;  %v8788_v4 = vpop.permute.xlu1 %4652 }
 0xefd   :  { %v8766_v24 = vpop.permute.xlu0 %4627 }
 0xf01   :  { %v8770_v9 = vpop.permute.xlu0 %4525 }
 0xf04   :  { %4555 = vperm.xlu0 %7388, %v4477_v36  }
 0xf05   :  { %v8774_v62 = vpop.permute.xlu0 %4637 }
 0xf09   :  { %v8778_v0 = vpop.permute.xlu0 %4535 }
 0xf0d   :  { %v8782_v54 = vpop.permute.xlu0 %4647 }
 0xf11   :  { %v8786_v45 = vpop.permute.xlu0 %4545 }
 0xf15   :  { %v8790_v44 = vpop.permute.xlu0 %4657 }
 0xf55   :  { %v4258_v11 = vpop.xlane.xlu1 %4257 }
 0xf56   :  { %v4303_v60 = vmul.f32 0.071428575, %v4258_v11 }
 0xf57   :  { %v4255_v14 = vpop.xlane.xlu0 %4254 }
 0xf58   :  { %v8793_v6 = vsub.f32 %v8646_v61, %v4303_v60  ;;  %v4302_v5 = vmul.f32 0.071428575, %v4255_v14 }
 0xf5a   :  { %v8796_v25 = vsub.f32 %v8648_v3, %v4302_v5  ;;  %v4335_v41 = vmul.f32 %v8793_v6, %v8793_v6 }
 0xf5b   :  { %v4264_v23 = vpop.xlane.xlu0 %4263 }
 0xf5c   :  { %v4305_v46 = vmul.f32 0.071428575, %v4264_v23  ;;  %v4353_v15 = vsel %vm4252_vm5, %v4335_v41, 0.0  ;;  %v4334_v17 = vmul.f32 %v8796_v25, %v8796_v25 }
 0xf5d   :  { %4354 = vadd.xlane.f32.xlu0 %v4353_v15 }
 0xf5e   :  { %v8804_v7 = vsub.f32 %v8653_v12, %v4305_v46  ;;  %v4350_v61 = vsel %vm4252_vm5, %v4334_v17, 0.0 }
 0xf5f   :  { %v4261_v48 = vpop.xlane.xlu0 %4260  ;;  %4351 = vadd.xlane.f32.xlu1 %v4350_v61  ;;  %v4267_v3 = vpop.xlane.xlu1 %4266 }
 0xf60   :  { %v4304_v35 = vmul.f32 0.071428575, %v4261_v48  ;;  %v4306_v26 = vmul.f32 0.071428575, %v4267_v3  ;;  %v4337_v47 = vmul.f32 %v8804_v7, %v8804_v7 }
 0xf62   :  { %v8810_v18 = vsub.f32 %v8659_v19, %v4304_v35  ;;  %v8813_v33 = vsub.f32 %v8664_v30, %v4306_v26  ;;  %v4359_v36 = vsel %vm4252_vm5, %v4337_v47, 0.0 }
 0xf63   :  { %v4270_v12 = vpop.xlane.xlu0 %4269  ;;  %4360 = vadd.xlane.f32.xlu0 %v4359_v36  ;;  %v4273_v11 = vpop.xlane.xlu1 %4272 }
 0xf64   :  { %v4307_v60 = vmul.f32 0.071428575, %v4270_v12  ;;  %v4308_v14 = vmul.f32 0.071428575, %v4273_v11  ;;  %v4336_v5 = vmul.f32 %v8810_v18, %v8810_v18  ;;  %v4338_v30 = vmul.f32 %v8813_v33, %v8813_v33 }
 0xf66   :  { %v8819_v41 = vsub.f32 %v8667_v34, %v4307_v60  ;;  %v8822_v23 = vsub.f32 %v8674_v50, %v4308_v14  ;;  %v4356_v19 = vsel %vm4252_vm5, %v4336_v5, 0.0  ;;  %v4362_v26 = vsel %vm4252_vm5, %v4338_v30, 0.0 }
 0xf67   :  { %v4276_v46 = vpop.xlane.xlu0 %4275  ;;  %4357 = vadd.xlane.f32.xlu1 %v4356_v19  ;;  %v4279_v15 = vpop.xlane.xlu1 %4278 }
 0xf68   :  { %v4309_v17 = vmul.f32 0.071428575, %v4276_v46  ;;  %v4310_v61 = vmul.f32 0.071428575, %v4279_v15  ;;  %v4339_v48 = vmul.f32 %v8819_v41, %v8819_v41  ;;  %v4340_v34 = vmul.f32 %v8822_v23, %v8822_v23 }
 0xf6a   :  { %v8832_v3 = vsub.f32 %v8678_v51, %v4309_v17  ;;  %v8835_v50 = vsub.f32 %v8686_v49, %v4310_v61  ;;  %v4365_v35 = vsel %vm4252_vm5, %v4339_v48, 0.0  ;;  %v4368_v14 = vsel %vm4252_vm5, %v4340_v34, 0.0 }
 0xf6b   :  { %v4282_v47 = vpop.xlane.xlu0 %4281  ;;  %4366 = vadd.xlane.f32.xlu0 %v4365_v35  ;;  %4363 = vadd.xlane.f32.xlu1 %v4362_v26  ;;  %v4285_v36 = vpop.xlane.xlu1 %4284 }
 0xf6c   :  { %v4311_v12 = vmul.f32 0.071428575, %v4282_v47  ;;  %v4312_v11 = vmul.f32 0.071428575, %v4285_v36  ;;  %v4341_v60 = vmul.f32 %v8832_v3, %v8832_v3  ;;  %v4342_v19 = vmul.f32 %v8835_v50, %v8835_v50 }
 0xf6e   :  { %v8843_v51 = vsub.f32 %v8690_v59, %v4311_v12  ;;  %v8846_v49 = vsub.f32 %v8698_v55, %v4312_v11  ;;  %v4371_v5 = vsel %vm4252_vm5, %v4341_v60, 0.0  ;;  %v4374_v35 = vsel %vm4252_vm5, %v4342_v19, 0.0 }
 0xf6f   :  { %v4288_v30 = vpop.xlane.xlu0 %4287  ;;  %4372 = vadd.xlane.f32.xlu0 %v4371_v5  ;;  %4369 = vadd.xlane.f32.xlu1 %v4368_v14  ;;  %v4291_v46 = vpop.xlane.xlu1 %4290 }
 0xf70   :  { %v4313_v15 = vmul.f32 0.071428575, %v4288_v30  ;;  %v4314_v17 = vmul.f32 0.071428575, %v4291_v46  ;;  %v4343_v61 = vmul.f32 %v8843_v51, %v8843_v51  ;;  %v4344_v59 = vmul.f32 %v8846_v49, %v8846_v49 }
 0xf72   :  { %v8856_v55 = vsub.f32 %v8702_v37, %v4313_v15  ;;  %v8859_v48 = vsub.f32 %v8710_v13, %v4314_v17  ;;  %v4377_v34 = vsel %vm4252_vm5, %v4343_v61, 0.0  ;;  %v4380_v60 = vsel %vm4252_vm5, %v4344_v59, 0.0  ;;  %v4936_v15 = vld [vmem:[#allocation11 + $0x18] sm:$0x3f]  ;;  %v4735_v17 = vld [vmem:[#allocation11 + $0x8] sm:$0x3f] }
 0xf73   :  { %v4294_v26 = vpop.xlane.xlu0 %4293  ;;  %4378 = vadd.xlane.f32.xlu0 %v4377_v34  ;;  %4375 = vadd.xlane.f32.xlu1 %v4374_v35  ;;  %v4297_v47 = vpop.xlane.xlu1 %4296 }
 0xf74   :  { %v4315_v36 = vmul.f32 0.071428575, %v4294_v26  ;;  %v4316_v12 = vmul.f32 0.071428575, %v4297_v47  ;;  %v4345_v11 = vmul.f32 %v8856_v55, %v8856_v55  ;;  %v4346_v5 = vmul.f32 %v8859_v48, %v8859_v48  ;;  %7153 = vmatprep.subr.msk.mxu1 %vm4784_vm6, %v4936_v15  ;;  %7125 = vmatprep.subr.msk.mxu0 %vm4784_vm6, %v4735_v17  ;;  %v4935_v26 = vld [vmem:[#allocation11 + $0x10] sm:$0xff]  ;;  %v4734_v47 = vld [vmem:[#allocation11] sm:$0xff] }
 0xf75   :  { %7154 = vmatpush3.msk.msra.mxu1 %vm4784_vm6, %v4936_v15  ;;  %7126 = vmatpush3.msk.msra.mxu0 %vm4784_vm6, %v4735_v17 }
 0xf76   :  { %v8867_v37 = vsub.f32 %v8714_v16, %v4315_v36  ;;  %v8870_v13 = vsub.f32 %v8722_v32, %v4316_v12  ;;  %v4383_v14 = vsel %vm4252_vm5, %v4345_v11, 0.0  ;;  %v4386_v61 = vsel %vm4252_vm5, %v4346_v5, 0.0  ;;  %7155 = vmatprep.subr.mxu1 %v4935_v26  ;;  %7127 = vmatprep.subr.mxu0 %v4734_v47  ;;  %v4588_v36 = vld [vmem:[%s9288_s15 + $0x70] sm:$0xff]  ;;  %v5675_v12 = vld [vmem:[#allocation2] sm:$0x1]  ;;  %v4589_v11 = vld [vmem:[%s9288_s15 + $0x78] sm:$0xff] }
 0xf77   :  { %v4300_v19 = vpop.xlane.xlu0 %4299  ;;  %4384 = vadd.xlane.f32.xlu0 %v4383_v14  ;;  %4381 = vadd.xlane.f32.xlu1 %v4380_v60  ;;  %v8902_v14 = vpop.permute.xlu1 %4550 }
 0xf78   :  { %v4317_v30 = vmul.f32 0.071428575, %v4300_v19  ;;  %v4347_v46 = vmul.f32 %v8867_v37, %v8867_v37  ;;  %v4348_v59 = vmul.f32 %v8870_v13, %v8870_v13  ;;  %7156 = vmatpush3.msra.mxu1 %v4935_v26  ;;  %7128 = vmatpush3.msra.mxu0 %v4734_v47 }
 0xf79   :  { %7216 = vmatprep.subr.mxu1 %v9295_v1  ;;  %7181 = vmatprep.subr.mxu0 %v9295_v1 }
 0xf7a   :  { %v8878_v16 = vsub.f32 %v8724_v29, %v4317_v30  ;;  %v4389_v32 = vsel %vm4252_vm5, %v4347_v46, 0.0  ;;  %v4392_v35 = vsel %vm4252_vm5, %v4348_v59, 0.0 }
 0xf7b   :  { %4390 = vadd.xlane.f32.xlu0 %v4389_v32  ;;  %4387 = vadd.xlane.f32.xlu1 %v4386_v61 }
 0xf7c   :  { %v4349_v34 = vmul.f32 %v8878_v16, %v8878_v16 }
 0xf7e   :  { %v4395_v29 = vsel %vm4252_vm5, %v4349_v34, 0.0 }
 0xf7f   :  { %4396 = vadd.xlane.f32.xlu1 %v4395_v29  ;;  %4393 = vadd.xlane.f32.xlu0 %v4392_v35  ;;  %v8900_v60 = vpop.permute.xlu0 %4555 }
 0xf80   :  { %9305 = vst [vmem:[#allocation17_spill] sm:$0xff] %v8900_v60 }
 0xf90   :  { %4662 = vperm.xlu1 %7389, %v4588_v36  }
 0xf94   :  { %5678 = vperm.xlu1 %7389, %v5675_v12  }
 0xf95   :  { %4667 = vperm.xlu0 %7388, %v4589_v11  }
 0xfe6   :  { %v4355_v5 = vpop.xlane.xlu0 %4354 }
 0xfe7   :  { %v4399_v19 = vmul.f32 0.071428575, %v4355_v5 }
 0xfe8   :  { %v4352_v30 = vpop.xlane.xlu1 %4351 }
 0xfe9   :  { %v4415_v46 = vadd.f32 1e-05, %v4399_v19  ;;  %v4398_v15 = vmul.f32 0.071428575, %v4352_v30 }
 0xfeb   :  { %7414 = vrsqrt.f32 %v4415_v46  ;;  %v4414_v17 = vadd.f32 1e-05, %v4398_v15 }
 0xfec   :  { %v4361_v32 = vpop.xlane.xlu0 %4360 }
 0xfed   :  { %7416 = vrsqrt.f32 %v4414_v17  ;;  %v4401_v61 = vmul.f32 0.071428575, %v4361_v32 }
 0xfef   :  { %v4417_v59 = vadd.f32 1e-05, %v4401_v61 }
 0xff0   :  { %v4358_v34 = vpop.xlane.xlu1 %4357 }
 0xff1   :  { %7418 = vrsqrt.f32 %v4417_v59  ;;  %v4400_v29 = vmul.f32 0.071428575, %v4358_v34 }
 0xff3   :  { %v4416_v35 = vadd.f32 1e-05, %v4400_v29 }
 0xff4   :  { %v4367_v26 = vpop.xlane.xlu0 %4366  ;;  %v4364_v47 = vpop.xlane.xlu1 %4363 }
 0xff5   :  { %7420 = vrsqrt.f32 %v4416_v35  ;;  %v4403_v36 = vmul.f32 0.071428575, %v4367_v26  ;;  %v4402_v12 = vmul.f32 0.071428575, %v4364_v47 }
 0xff7   :  { %v4419_v11 = vadd.f32 1e-05, %v4403_v36  ;;  %v4418_v5 = vadd.f32 1e-05, %v4402_v12 }
 0xff8   :  { %v7415_v1 = vpop.eup %7414  ;;  %v4373_v19 = vpop.xlane.xlu0 %4372 }
 0xff9   :  { %v4370_v30 = vpop.xlane.xlu1 %4369  ;;  %v4447_v46 = vmul.f32 %v7415_v1, %v8793_v6  ;;  %7422 = vrsqrt.f32 %v4419_v11  ;;  %v4405_v15 = vmul.f32 0.071428575, %v4373_v19 }
 0xffa   :  { %v4404_v17 = vmul.f32 0.071428575, %v4370_v30  ;;  %v7417_v32 = vpop.eup %7416  ;;  %7424 = vrsqrt.f32 %v4418_v5 }
 0xffb   :  { %v4421_v61 = vadd.f32 1e-05, %v4405_v15  ;;  %v4446_v34 = vmul.f32 %v7417_v32, %v8796_v25  ;;  %v4559_v29 = vmul.f32 %v8720_v27, %v4447_v46 }
 0xffc   :  { %v4420_v59 = vadd.f32 1e-05, %v4404_v17  ;;  %v4379_v35 = vpop.xlane.xlu0 %4378 }
 0xffd   :  { %v4376_v26 = vpop.xlane.xlu1 %4375  ;;  %7426 = vrsqrt.f32 %v4421_v61  ;;  %v4407_v47 = vmul.f32 0.071428575, %v4379_v35  ;;  %v4558_v12 = vmul.f32 %v8756_v56, %v4446_v34  ;;  %v4671_v1 = vadd.f32 %v8734_v8, %v4559_v29 }
 0xffe   :  { %v4406_v36 = vmul.f32 0.071428575, %v4376_v26  ;;  %v7419_v60 = vpop.eup %7418  ;;  %7428 = vrsqrt.f32 %v4420_v59 }
 0xfff   :  { %v4423_v6 = vadd.f32 1e-05, %v4407_v47  ;;  %v4670_v5 = vadd.f32 %v8730_v28, %v4558_v12  ;;  %v4449_v19 = vmul.f32 %v7419_v60, %v8804_v7  ;;  %vm4687_vm7 = vcmp.ge.f32.partialorder %v4671_v1, 0.0 }
0x1000   :  { %v4422_v11 = vadd.f32 1e-05, %v4406_v36  ;;  %v4385_v25 = vpop.xlane.xlu0 %4384  ;;  %v4703_v27 = vmul.f32 0.2, %v4671_v1 }
0x1001   :  { %v4382_v30 = vpop.xlane.xlu1 %4381  ;;  %7430 = vrsqrt.f32 %v4423_v6  ;;  %v4409_v46 = vmul.f32 0.071428575, %v4385_v25  ;;  %vm4686_vm8 = vcmp.ge.f32.partialorder %v4670_v5, 0.0  ;;  %v4702_v56 = vmul.f32 0.2, %v4670_v5 }
0x1002   :  { %v4408_v15 = vmul.f32 0.071428575, %v4382_v30  ;;  %v7421_v17 = vpop.eup %7420  ;;  %7432 = vrsqrt.f32 %v4422_v11  ;;  %v4561_v32 = vmul.f32 %v8741_v31, %v4449_v19  ;;  %v8916_v60 = vsel %vm4687_vm7, %v4671_v1, %v4703_v27 }
0x1003   :  { %v4425_v8 = vadd.f32 1e-05, %v4409_v46  ;;  %v4448_v59 = vmul.f32 %v7421_v17, %v8810_v18  ;;  %v8913_v34 = vsel %vm4686_vm8, %v4670_v5, %v4702_v56 }
0x1004   :  { %v4424_v61 = vadd.f32 1e-05, %v4408_v15  ;;  %v4391_v28 = vpop.xlane.xlu0 %4390  ;;  %v4673_v29 = vadd.f32 %v8748_v22, %v4561_v32  ;;  %7129 = vmatprep.mubr.msk.f32.mxu0 %vm4252_vm5, %v8913_v34  ;;  %7157 = vmatprep.mubr.msk.f32.mxu1 %vm4252_vm5, %v8913_v34 }
0x1005   :  { %v4388_v7 = vpop.xlane.xlu1 %4387  ;;  %7434 = vrsqrt.f32 %v4425_v8  ;;  %v4411_v35 = vmul.f32 0.071428575, %v4391_v28  ;;  %v4560_v18 = vmul.f32 %v8739_v57, %v4448_v59  ;;  %7130 = vmatmul.mubr.msk.f32.vlgmr.msra.gmra.mxu0 %vm4252_vm5, %v8916_v60  ;;  %7158 = vmatmul.mubr.msk.f32.vlgmr.msra.gmra.mxu1 %vm4252_vm5, %v8916_v60 }
0x1006   :  { %v4410_v31 = vmul.f32 0.071428575, %v4388_v7  ;;  %v7423_v26 = vpop.eup %7422  ;;  %7436 = vrsqrt.f32 %v4424_v61  ;;  %vm4689_vm9 = vcmp.ge.f32.partialorder %v4673_v29, 0.0  ;;  %v4705_v5 = vmul.f32 0.2, %v4673_v29 }
0x1007   :  { %v7425_v22 = vpop.eup %7424  ;;  %v4427_v47 = vadd.f32 1e-05, %v4411_v35  ;;  %v4672_v12 = vadd.f32 %v8746_v43, %v4560_v18  ;;  %v4451_v1 = vmul.f32 %v7423_v26, %v8819_v41 }
0x1008   :  { %v4426_v36 = vadd.f32 1e-05, %v4410_v31  ;;  %v4394_v6 = vpop.xlane.xlu0 %4393  ;;  %v4450_v57 = vmul.f32 %v7425_v22, %v8813_v33 }
0x1009   :  { %v4397_v11 = vpop.xlane.xlu1 %4396  ;;  %7438 = vrsqrt.f32 %v4427_v47  ;;  %v4412_v19 = vmul.f32 0.071428575, %v4394_v6  ;;  %vm4688_vm10 = vcmp.ge.f32.partialorder %v4672_v12, 0.0  ;;  %v4704_v27 = vmul.f32 0.2, %v4672_v12 }
0x100a   :  { %v4413_v25 = vmul.f32 0.071428575, %v4397_v11  ;;  %v7427_v30 = vpop.eup %7426  ;;  %7440 = vrsqrt.f32 %v4426_v36  ;;  %v4562_v46 = vmul.f32 %v8750_v39, %v4450_v57  ;;  %v4563_v15 = vmul.f32 %v8760_v20, %v4451_v1 }
0x100b   :  { %v7429_v43 = vpop.eup %7428  ;;  %v4428_v17 = vadd.f32 1e-05, %v4412_v19  ;;  %v4453_v56 = vmul.f32 %v7427_v30, %v8832_v3  ;;  %v8934_v32 = vsel %vm4688_vm10, %v4672_v12, %v4704_v27  ;;  %v8944_v39 = vsel %vm4689_vm9, %v4673_v29, %v4705_v5 }
0x100c   :  { %v4429_v41 = vadd.f32 1e-05, %v4413_v25  ;;  %v4674_v33 = vadd.f32 %v8752_v21, %v4562_v46  ;;  %v4675_v8 = vadd.f32 %v8754_v38, %v4563_v15  ;;  %v4452_v61 = vmul.f32 %v7429_v43, %v8822_v23  ;;  %7132 = vmatprep.mubr.msk.f32.mxu0 %vm4252_vm5, %v8934_v32  ;;  %7160 = vmatprep.mubr.msk.f32.mxu1 %vm4252_vm5, %v8934_v32 }
0x100d   :  { %7442 = vrsqrt.f32 %v4428_v17  ;;  %v4565_v20 = vmul.f32 %v8762_v53, %v4453_v56  ;;  %7133 = vmatmul.mubr.msk.f32.gmra.mxu0 %vm4252_vm5, %v8944_v39  ;;  %7161 = vmatmul.mubr.msk.f32.gmra.mxu1 %vm4252_vm5, %v8944_v39  ;;  %v9306_v17 = vld [vmem:[#allocation17_spill] sm:$0xff] }
0x100e   :  { %v7431_v3 = vpop.eup %7430  ;;  %7444 = vrsqrt.f32 %v4429_v41  ;;  %vm4690_vm11 = vcmp.ge.f32.partialorder %v4674_v33, 0.0  ;;  %v4706_v21 = vmul.f32 0.2, %v4674_v33  ;;  %vm4691_vm12 = vcmp.ge.f32.partialorder %v4675_v8, 0.0 }
0x100f   :  { %v7433_v38 = vpop.eup %7432  ;;  %v4707_v23 = vmul.f32 0.2, %v4675_v8  ;;  %v4564_v59 = vmul.f32 %v8758_v52, %v4452_v61  ;;  %v4677_v28 = vadd.f32 %v8766_v24, %v4565_v20  ;;  %v4455_v7 = vmul.f32 %v7431_v3, %v8843_v51 }
0x1010   :  { %v8954_v53 = vsel %vm4690_vm11, %v4674_v33, %v4706_v21  ;;  %v4454_v29 = vmul.f32 %v7433_v38, %v8835_v50  ;;  %v9307_v38 = vmov 0.0  }
0x1011   :  { %7135 = vmatprep.mubr.msk.f32.mxu0 %vm4252_vm5, %v8954_v53  ;;  %7163 = vmatprep.mubr.msk.f32.mxu1 %vm4252_vm5, %v8954_v53  ;;  %v8961_v35 = vsel %vm4691_vm12, %v4675_v8, %v4707_v23  ;;  %v4676_v31 = vadd.f32 %v8764_v58, %v4564_v59  ;;  %vm4693_vm13 = vcmp.ge.f32.partialorder %v4677_v28, 0.0  ;;  %v4709_v24 = vmul.f32 0.2, %v4677_v28 }
0x1012   :  { %v7435_v52 = vpop.eup %7434  ;;  %7136 = vmatmul.mubr.msk.f32.gmra.mxu0 %vm4252_vm5, %v8961_v35  ;;  %7164 = vmatmul.mubr.msk.f32.gmra.mxu1 %vm4252_vm5, %v8961_v35  ;;  %v4566_v50 = vmul.f32 %v8768_v42, %v4454_v29  ;;  %v4567_v51 = vmul.f32 %v8770_v9, %v4455_v7 }
0x1013   :  { %v7437_v18 = vpop.eup %7436  ;;  %vm4692_vm14 = vcmp.ge.f32.partialorder %v4676_v31, 0.0  ;;  %v4708_v26 = vmul.f32 0.2, %v4676_v31  ;;  %v4457_v22 = vmul.f32 %v7435_v52, %v8856_v55  ;;  %v8971_v47 = vsel %vm4693_vm13, %v4677_v28, %v4709_v24 }
0x1014   :  { %v4678_v58 = vadd.f32 %v8772_v40, %v4566_v50  ;;  %v4679_v36 = vadd.f32 %v8774_v62, %v4567_v51  ;;  %v4456_v12 = vmul.f32 %v7437_v18, %v8846_v49 }
0x1015   :  { %v8976_v1 = vsel %vm4692_vm14, %v4676_v31, %v4708_v26  ;;  %v4569_v6 = vmul.f32 %v8778_v0, %v4457_v22 }
0x1016   :  { %v7439_v42 = vpop.eup %7438  ;;  %7138 = vmatprep.mubr.msk.f32.mxu0 %vm4252_vm5, %v8976_v1  ;;  %7166 = vmatprep.mubr.msk.f32.mxu1 %vm4252_vm5, %v8976_v1  ;;  %vm4694_vm15 = vcmp.ge.f32.partialorder %v4678_v58, 0.0  ;;  %v4710_v9 = vmul.f32 0.2, %v4678_v58  ;;  %vm4695_vm1 = vcmp.ge.f32.partialorder %v4679_v36, 0.0  ;;  %v4711_v55 = vmul.f32 0.2, %v4679_v36 }
0x1017   :  { %v7441_v40 = vpop.eup %7440  ;;  %7139 = vmatmul.mubr.msk.f32.gmra.mxu0 %vm4252_vm5, %v8971_v47  ;;  %7167 = vmatmul.mubr.msk.f32.gmra.mxu1 %vm4252_vm5, %v8971_v47  ;;  %v4568_v62 = vmul.f32 %v8776_v63, %v4456_v12  ;;  %v4681_v0 = vadd.f32 %v8782_v54, %v4569_v6  ;;  %v4459_v49 = vmul.f32 %v7439_v42, %v8867_v37 }
0x1018   :  { %v8990_v11 = vsel %vm4694_vm15, %v4678_v58, %v4710_v9  ;;  %v8992_v5 = vsel %vm4695_vm1, %v4679_v36, %v4711_v55  ;;  %v4458_v57 = vmul.f32 %v7441_v40, %v8859_v48 }
0x1019   :  { %7141 = vmatprep.mubr.msk.f32.mxu0 %vm4252_vm5, %v8990_v11  ;;  %7169 = vmatprep.mubr.msk.f32.mxu1 %vm4252_vm5, %v8990_v11  ;;  %v4680_v19 = vadd.f32 %v8780_v2, %v4568_v62  ;;  %vm4697_vm2 = vcmp.ge.f32.partialorder %v4681_v0, 0.0  ;;  %v4713_v63 = vmul.f32 0.2, %v4681_v0  ;;  %v4571_v54 = vmul.f32 %v8786_v45, %v4459_v49 }
0x101a   :  { %v7443_v25 = vpop.eup %7442  ;;  %v4570_v37 = vmul.f32 %v8784_v10, %v4458_v57 }
0x101b   :  { %v7445_v30 = vpop.eup %7444  ;;  %v4460_v27 = vmul.f32 %v7443_v25, %v8870_v13  ;;  %7142 = vmatmul.mubr.msk.f32.gmra.mxu0 %vm4252_vm5, %v8992_v5  ;;  %7170 = vmatmul.mubr.msk.f32.gmra.mxu1 %vm4252_vm5, %v8992_v5  ;;  %vm4696_vm3 = vcmp.ge.f32.partialorder %v4680_v19, 0.0  ;;  %v4712_v48 = vmul.f32 0.2, %v4680_v19  ;;  %v9008_v46 = vsel %vm4697_vm2, %v4681_v0, %v4713_v63  ;;  %v4663_v13 = vpop.permute.xlu1 %4662 }
0x101c   :  { %v4461_v2 = vmul.f32 %v7445_v30, %v8878_v16  ;;  %v4682_v45 = vadd.f32 %v8788_v4, %v4570_v37  ;;  %v4683_v15 = vadd.f32 %v8790_v44, %v4571_v54  ;;  %v4668_v4 = vpop.permute.xlu0 %4667 }
0x101d   :  { %v4572_v10 = vmul.f32 %v8902_v14, %v4460_v27  ;;  %v9013_v43 = vsel %vm4696_vm3, %v4680_v19, %v4712_v48  ;;  %v5952_v48 = vld [vmem:[%s9290_s17 + $0x1] sm:$0x1] }
0x101e   :  { %v4573_v41 = vmul.f32 %v9306_v17, %v4461_v2  ;;  %7144 = vmatprep.mubr.msk.f32.mxu0 %vm4252_vm5, %v9013_v43  ;;  %7172 = vmatprep.mubr.msk.f32.mxu1 %vm4252_vm5, %v9013_v43  ;;  %vm4698_vm4 = vcmp.ge.f32.partialorder %v4682_v45, 0.0  ;;  %v4714_v16 = vmul.f32 0.2, %v4682_v45  ;;  %vm4699_vm7 = vcmp.ge.f32.partialorder %v4683_v15, 0.0  ;;  %v4933_v2 = vld [vmem:[%s9290_s17] sm:$0x1] }
0x101f   :  { %v4684_v56 = vadd.f32 %v4663_v13, %v4572_v10  ;;  %7145 = vmatmul.mubr.msk.f32.gmra.mxu0 %vm4252_vm5, %v9008_v46  ;;  %7173 = vmatmul.mubr.msk.f32.gmra.mxu1 %vm4252_vm5, %v9008_v46  ;;  %v4715_v44 = vmul.f32 0.2, %v4683_v15  ;;  %v5228_v10 = vld [vmem:[#allocation11 + $0x20] sm:$0xff]  ;;  %v5452_v13 = vld [vmem:[#allocation11 + $0x30] sm:$0xff] }
0x1020   :  { %v4685_v14 = vadd.f32 %v4668_v4, %v4573_v41  ;;  %v9024_v33 = vsel %vm4698_vm4, %v4682_v45, %v4714_v16  ;;  %v5229_v45 = vld [vmem:[#allocation11 + $0x28] sm:$0x3f] }
0x1021   :  { %vm4700_vm8 = vcmp.ge.f32.partialorder %v4684_v56, 0.0  ;;  %v4716_v8 = vmul.f32 0.2, %v4684_v56  ;;  %7147 = vmatprep.mubr.msk.f32.mxu0 %vm4252_vm5, %v9024_v33  ;;  %7175 = vmatprep.mubr.msk.f32.mxu1 %vm4252_vm5, %v9024_v33  ;;  %v9030_v61 = vsel %vm4699_vm7, %v4683_v15, %v4715_v44  ;;  %v5453_v15 = vld [vmem:[#allocation11 + $0x38] sm:$0x3f] }
0x1022   :  { %vm4701_vm9 = vcmp.ge.f32.partialorder %v4685_v14, 0.0  ;;  %v4717_v20 = vmul.f32 0.2, %v4685_v14 }
0x1023   :  { %7148 = vmatmul.mubr.msk.f32.gmra.mxu0 %vm4252_vm5, %v9030_v61  ;;  %7176 = vmatmul.mubr.msk.f32.gmra.mxu1 %vm4252_vm5, %v9030_v61  ;;  %v9036_v3 = vsel %vm4700_vm8, %v4684_v56, %v4716_v8 }
0x1024   :  { %7150 = vmatprep.mubr.msk.f32.mxu0 %vm4252_vm5, %v9036_v3  ;;  %7178 = vmatprep.mubr.msk.f32.mxu1 %vm4252_vm5, %v9036_v3  ;;  %v9042_v21 = vsel %vm4701_vm9, %v4685_v14, %v4717_v20 }
0x1027   :  { %7151 = vmatmul.mubr.msk.f32.gmra.mxu0 %vm4252_vm5, %v9042_v21  ;;  %7179 = vmatmul.mubr.msk.f32.gmra.mxu1 %vm4252_vm5, %v9042_v21 }
0x1028   :  { %7213 = vmatprep.mubr.msk.f32.mxu0 %vm7583_vm0, %v9307_v38  ;;  %7248 = vmatprep.mubr.msk.f32.mxu1 %vm7583_vm0, %v9307_v38 }
0x10c5   :  { %v9052_v23 = vpop.f32.mrf.mxu0  ;;  %v9054_v59 = vpop.f32.mrf.mxu1 }
0x10c7   :  { %v9056_v28 = vpop.f32.mrf.mxu0  ;;  %v9058_v7 = vpop.f32.mrf.mxu1 }
0x10cd   :  { %v9060_v29 = vpop.f32.mrf.mxu0  ;;  %v9062_v31 = vpop.f32.mrf.mxu1 }
0x10cf   :  { %v9064_v52 = vpop.f32.mrf.mxu0  ;;  %v9066_v24 = vpop.f32.mrf.mxu1 }
0x10d2   :  { %v9068_v50 = vpop.f32.mrf.mxu0  ;;  %v7165_v51 = vpop.f32.mrf.mxu1 }
0x10d4   :  { %v9070_v18 = vpop.f32.mrf.mxu0  ;;  %v9072_v26 = vpop.f32.mrf.mxu1 }
0x10d7   :  { %v7140_v22 = vpop.f32.mrf.mxu0  ;;  %v7168_v58 = vpop.f32.mrf.mxu1 }
0x10d9   :  { %v4884_v36 = vpop.f32.mrf.mxu0  ;;  %v5036_v12 = vpop.f32.mrf.mxu1 }
0x10db   :  { %v7143_v6 = vpop.f32.mrf.mxu0  ;;  %v7171_v42 = vpop.f32.mrf.mxu1 }
0x10dd   :  { %v4894_v9 = vpop.f32.mrf.mxu0  ;;  %v5046_v55 = vpop.f32.mrf.mxu1 }
0x10df   :  { %v7146_v40 = vpop.f32.mrf.mxu0  ;;  %v7174_v62 = vpop.f32.mrf.mxu1 }
0x10e1   :  { %v4904_v0 = vpop.f32.mrf.mxu0  ;;  %v5056_v49 = vpop.f32.mrf.mxu1 }
0x10e3   :  { %v7149_v57 = vpop.f32.mrf.mxu0  ;;  %v7177_v19 = vpop.f32.mrf.mxu1 }
0x10e5   :  { %v4914_v63 = vpop.f32.mrf.mxu0  ;;  %v5066_v54 = vpop.f32.mrf.mxu1 }
0x10e7   :  { %v7152_v25 = vpop.f32.mrf.mxu0  ;;  %v7180_v37 = vpop.f32.mrf.mxu1 }
0x10e8   :  { %7182 = vmatpush3.msra.mxu0 %v7180_v37  ;;  %7217 = vmatpush3.msra.mxu1 %v7152_v25 }
0x10e9   :  { %v4924_v30 = vpop.f32.mrf.mxu0  ;;  %v5076_v27 = vpop.f32.mrf.mxu1  ;;  %7183 = vmatprep.subr.mxu0 %v9307_v38  ;;  %7218 = vmatprep.subr.mxu1 %v9307_v38 }
0x10ea   :  { %7184 = vmatpush3.msra.mxu0 %v5076_v27  ;;  %7219 = vmatpush3.msra.mxu1 %v4924_v30 }
0x10eb   :  { %7185 = vmatprep.subr.mxu0 %v9307_v38  ;;  %7220 = vmatprep.subr.mxu1 %v9307_v38 }
0x10ec   :  { %7186 = vmatpush3.msra.mxu0 %v7177_v19  ;;  %7221 = vmatpush3.msra.mxu1 %v7149_v57 }
0x10ed   :  { %7187 = vmatprep.subr.mxu0 %v9307_v38  ;;  %7222 = vmatprep.subr.mxu1 %v9307_v38 }
0x10ee   :  { %7188 = vmatpush3.msra.mxu0 %v5066_v54  ;;  %7223 = vmatpush3.msra.mxu1 %v4914_v63 }
0x10ef   :  { %7189 = vmatprep.subr.mxu0 %v9307_v38  ;;  %7224 = vmatprep.subr.mxu1 %v9307_v38 }
0x10f0   :  { %7190 = vmatpush3.msra.mxu0 %v7174_v62  ;;  %7225 = vmatpush3.msra.mxu1 %v7146_v40 }
0x10f1   :  { %7191 = vmatprep.subr.mxu0 %v9307_v38  ;;  %7226 = vmatprep.subr.mxu1 %v9307_v38 }
0x10f2   :  { %7192 = vmatpush3.msra.mxu0 %v5056_v49  ;;  %7227 = vmatpush3.msra.mxu1 %v4904_v0 }
0x10f3   :  { %7193 = vmatprep.subr.mxu0 %v9307_v38  ;;  %7228 = vmatprep.subr.mxu1 %v9307_v38 }
0x10f4   :  { %7194 = vmatpush3.msra.mxu0 %v7171_v42  ;;  %7229 = vmatpush3.msra.mxu1 %v7143_v6  ;;  %v5679_v42 = vpop.permute.xlu1 %5678 }
0x10f5   :  { %7195 = vmatprep.subr.mxu0 %v9307_v38  ;;  %7230 = vmatprep.subr.mxu1 %v9307_v38 }
0x10f6   :  { %7196 = vmatpush3.msra.mxu0 %v5046_v55  ;;  %7231 = vmatpush3.msra.mxu1 %v4894_v9 }
0x10f7   :  { %7197 = vmatprep.subr.mxu0 %v9307_v38  ;;  %7232 = vmatprep.subr.mxu1 %v9307_v38 }
0x10f8   :  { %7198 = vmatpush3.msra.mxu0 %v7168_v58  ;;  %7233 = vmatpush3.msra.mxu1 %v7140_v22  ;;  %v5970_v22 = vld [vmem:[%s9290_s17 + $0x2] sm:$0x1]  ;;  %v5988_v58 = vld [vmem:[%s9290_s17 + $0x3] sm:$0x1] }
0x10f9   :  { %7199 = vmatprep.subr.mxu0 %v9307_v38  ;;  %7234 = vmatprep.subr.mxu1 %v9307_v38 }
0x10fa   :  { %7200 = vmatpush3.msra.mxu0 %v5036_v12  ;;  %7235 = vmatpush3.msra.mxu1 %v4884_v36  ;;  %v5681_v36 = vlaneseq }
0x10fb   :  { %7201 = vmatprep.subr.mxu0 %v9307_v38  ;;  %7236 = vmatprep.subr.mxu1 %v9307_v38 }
0x10fc   :  { %7202 = vmatpush3.msra.mxu0 %v7165_v51  ;;  %7237 = vmatpush3.msra.mxu1 %v9068_v50  ;;  %v5682_v12 = vshrl.u32 %v5681_v36, 7 }
0x10fd   :  { %7203 = vmatprep.subr.mxu0 %v9307_v38  ;;  %7238 = vmatprep.subr.mxu1 %v9307_v38 }
0x10fe   :  { %7204 = vmatpush3.msra.mxu0 %v9072_v26  ;;  %7239 = vmatpush3.msra.mxu1 %v9070_v18  ;;  %v5683_v6 = vsub.s32 0, %v5682_v12 }
0x10ff   :  { %7205 = vmatprep.subr.mxu0 %v9307_v38  ;;  %7240 = vmatprep.subr.mxu1 %v9307_v38 }
0x1100   :  { %7206 = vmatpush3.msra.mxu0 %v9062_v31  ;;  %7241 = vmatpush3.msra.mxu1 %v9060_v29  ;;  %v5684_v49 = vrot.slane %v5679_v42, %v5683_v6 }
0x1101   :  { %7207 = vmatprep.subr.mxu0 %v9307_v38  ;;  %7242 = vmatprep.subr.mxu1 %v9307_v38 }
0x1102   :  { %7208 = vmatpush3.msra.mxu0 %v9066_v24  ;;  %7243 = vmatpush3.msra.mxu1 %v9064_v52 }
0x1103   :  { %7209 = vmatprep.subr.mxu0 %v9307_v38  ;;  %7244 = vmatprep.subr.mxu1 %v9307_v38 }
0x1104   :  { %7210 = vmatpush3.msra.mxu0 %v9054_v59  ;;  %7245 = vmatpush3.msra.mxu1 %v9052_v23 }
0x1105   :  { %7211 = vmatprep.subr.mxu0 %v9307_v38  ;;  %7246 = vmatprep.subr.mxu1 %v9307_v38 }
0x1106   :  { %7212 = vmatpush3.msra.mxu0 %v9058_v7  ;;  %7247 = vmatpush3.msra.mxu1 %v9056_v28 }
0x1107   :  { %7214 = vmatmul.mubr.f32.vlgmr.msra.gmra.mxu0 %v5952_v48  ;;  %7249 = vmatmul.mubr.f32.vlgmr.msra.gmra.mxu1 %v4933_v2 }
0x1108   :  { %7251 = vmatprep.subr.msk.mxu0 %vm4784_vm6, %v5229_v45  ;;  %7314 = vmatprep.subr.msk.mxu1 %vm4784_vm6, %v5453_v15 }
0x1109   :  { %7252 = vmatpush3.msk.msra.mxu0 %vm4784_vm6, %v5229_v45  ;;  %7255 = vmatprep.mubr.msk.f32.mxu0 %vm4252_vm5, %v8913_v34 }
0x110a   :  { %7315 = vmatpush3.msk.msra.mxu1 %vm4784_vm6, %v5453_v15  ;;  %7318 = vmatprep.mubr.msk.f32.mxu1 %vm4252_vm5, %v8913_v34 }
0x110b   :  { %7253 = vmatprep.subr.mxu0 %v5228_v10  ;;  %7316 = vmatprep.subr.mxu1 %v5452_v13 }
0x110c   :  { %7254 = vmatpush3.msra.mxu0 %v5228_v10  ;;  %7317 = vmatpush3.msra.mxu1 %v5452_v13 }
0x110d   :  { %7256 = vmatmul.mubr.msk.f32.vlgmr.msra.gmra.mxu0 %vm4252_vm5, %v8916_v60  ;;  %7319 = vmatmul.mubr.msk.f32.vlgmr.msra.gmra.mxu1 %vm4252_vm5, %v8916_v60 }
0x110e   :  { %7258 = vmatprep.mubr.msk.f32.mxu0 %vm4252_vm5, %v8934_v32  ;;  %7321 = vmatprep.mubr.msk.f32.mxu1 %vm4252_vm5, %v8934_v32 }
0x110f   :  { %7279 = vmatprep.subr.mxu0 %v9307_v38  ;;  %7342 = vmatprep.subr.mxu1 %v9307_v38 }
0x1111   :  { %7259 = vmatmul.mubr.msk.f32.gmra.mxu0 %vm4252_vm5, %v8944_v39  ;;  %7322 = vmatmul.mubr.msk.f32.gmra.mxu1 %vm4252_vm5, %v8944_v39 }
0x1112   :  { %7261 = vmatprep.mubr.msk.f32.mxu0 %vm4252_vm5, %v8954_v53  ;;  %7324 = vmatprep.mubr.msk.f32.mxu1 %vm4252_vm5, %v8954_v53 }
0x1115   :  { %7262 = vmatmul.mubr.msk.f32.gmra.mxu0 %vm4252_vm5, %v8961_v35  ;;  %7325 = vmatmul.mubr.msk.f32.gmra.mxu1 %vm4252_vm5, %v8961_v35 }
0x1116   :  { %7264 = vmatprep.mubr.msk.f32.mxu0 %vm4252_vm5, %v8976_v1  ;;  %7327 = vmatprep.mubr.msk.f32.mxu1 %vm4252_vm5, %v8976_v1 }
0x1119   :  { %7265 = vmatmul.mubr.msk.f32.gmra.mxu0 %vm4252_vm5, %v8971_v47  ;;  %7328 = vmatmul.mubr.msk.f32.gmra.mxu1 %vm4252_vm5, %v8971_v47 }
0x111a   :  { %7267 = vmatprep.mubr.msk.f32.mxu0 %vm4252_vm5, %v8990_v11  ;;  %7330 = vmatprep.mubr.msk.f32.mxu1 %vm4252_vm5, %v8990_v11 }
0x111d   :  { %7268 = vmatmul.mubr.msk.f32.gmra.mxu0 %vm4252_vm5, %v8992_v5  ;;  %7331 = vmatmul.mubr.msk.f32.gmra.mxu1 %vm4252_vm5, %v8992_v5 }
0x111e   :  { %7270 = vmatprep.mubr.msk.f32.mxu0 %vm4252_vm5, %v9013_v43  ;;  %7333 = vmatprep.mubr.msk.f32.mxu1 %vm4252_vm5, %v9013_v43 }
0x1121   :  { %7271 = vmatmul.mubr.msk.f32.gmra.mxu0 %vm4252_vm5, %v9008_v46  ;;  %7334 = vmatmul.mubr.msk.f32.gmra.mxu1 %vm4252_vm5, %v9008_v46 }
0x1122   :  { %7273 = vmatprep.mubr.msk.f32.mxu0 %vm4252_vm5, %v9024_v33  ;;  %7336 = vmatprep.mubr.msk.f32.mxu1 %vm4252_vm5, %v9024_v33 }
0x1125   :  { %7274 = vmatmul.mubr.msk.f32.gmra.mxu0 %vm4252_vm5, %v9030_v61  ;;  %7337 = vmatmul.mubr.msk.f32.gmra.mxu1 %vm4252_vm5, %v9030_v61 }
0x1126   :  { %7276 = vmatprep.mubr.msk.f32.mxu0 %vm4252_vm5, %v9036_v3  ;;  %7339 = vmatprep.mubr.msk.f32.mxu1 %vm4252_vm5, %v9036_v3 }
0x1129   :  { %7277 = vmatmul.mubr.msk.f32.gmra.mxu0 %vm4252_vm5, %v9042_v21  ;;  %7340 = vmatmul.mubr.msk.f32.gmra.mxu1 %vm4252_vm5, %v9042_v21 }
0x112a   :  { %7311 = vmatprep.mubr.msk.f32.mxu0 %vm7583_vm0, %v9307_v38  ;;  %7374 = vmatprep.mubr.msk.f32.mxu1 %vm7583_vm0, %v9307_v38  ;;  %vm5686_vm0 = vcmask 90112  }
0x11c7   :  { %v5153_v34 = vpop.f32.mrf.mxu0  ;;  %v5223_v60 = vpop.f32.mrf.mxu1 }
0x11c8   :  { %v9195_v32 = vadd.f32 %v5223_v60, %v5153_v34 }
0x11c9   :  { %v7215_v39 = vpop.f32.mrf.mxu0  ;;  %v7250_v53 = vpop.f32.mrf.mxu1 }
0x11cd   :  { %v9197_v35 = vpop.f32.mrf.mxu0  ;;  %v9199_v47 = vpop.f32.mrf.mxu1 }
0x11cf   :  { %v9201_v1 = vpop.f32.mrf.mxu0  ;;  %v9203_v11 = vpop.f32.mrf.mxu1 }
0x11d1   :  { %v9205_v5 = vpop.f32.mrf.mxu0  ;;  %v9207_v46 = vpop.f32.mrf.mxu1 }
0x11d3   :  { %v9209_v43 = vpop.f32.mrf.mxu0  ;;  %v9211_v17 = vpop.f32.mrf.mxu1 }
0x11d5   :  { %v9213_v41 = vpop.f32.mrf.mxu0  ;;  %v9215_v16 = vpop.f32.mrf.mxu1 }
0x11d7   :  { %v9217_v56 = vpop.f32.mrf.mxu0  ;;  %v9219_v4 = vpop.f32.mrf.mxu1 }
0x11d9   :  { %v7266_v44 = vpop.f32.mrf.mxu0  ;;  %v7329_v14 = vpop.f32.mrf.mxu1 }
0x11db   :  { %v5329_v33 = vpop.f32.mrf.mxu0  ;;  %v5553_v8 = vpop.f32.mrf.mxu1 }
0x11dd   :  { %v7269_v61 = vpop.f32.mrf.mxu0  ;;  %v7332_v20 = vpop.f32.mrf.mxu1 }
0x11df   :  { %v5339_v3 = vpop.f32.mrf.mxu0  ;;  %v5563_v21 = vpop.f32.mrf.mxu1 }
0x11e1   :  { %v7272_v23 = vpop.f32.mrf.mxu0  ;;  %v7335_v59 = vpop.f32.mrf.mxu1 }
0x11e3   :  { %v5349_v28 = vpop.f32.mrf.mxu0  ;;  %v5573_v7 = vpop.f32.mrf.mxu1 }
0x11e5   :  { %v7275_v29 = vpop.f32.mrf.mxu0  ;;  %v7338_v31 = vpop.f32.mrf.mxu1 }
0x11e7   :  { %v5359_v52 = vpop.f32.mrf.mxu0  ;;  %v5583_v24 = vpop.f32.mrf.mxu1 }
0x11e9   :  { %v7278_v50 = vpop.f32.mrf.mxu0  ;;  %v7341_v51 = vpop.f32.mrf.mxu1 }
0x11ea   :  { %7280 = vmatpush3.msra.mxu0 %v7278_v50  ;;  %7343 = vmatpush3.msra.mxu1 %v7341_v51 }
0x11eb   :  { %v5369_v18 = vpop.f32.mrf.mxu0  ;;  %7281 = vmatprep.subr.mxu0 %v9307_v38  ;;  %v5593_v26 = vpop.f32.mrf.mxu1  ;;  %7344 = vmatprep.subr.mxu1 %v9307_v38 }
0x11ec   :  { %7282 = vmatpush3.msra.mxu0 %v5369_v18  ;;  %7345 = vmatpush3.msra.mxu1 %v5593_v26 }
0x11ed   :  { %7283 = vmatprep.subr.mxu0 %v9307_v38  ;;  %7346 = vmatprep.subr.mxu1 %v9307_v38 }
0x11ee   :  { %7284 = vmatpush3.msra.mxu0 %v7275_v29  ;;  %7347 = vmatpush3.msra.mxu1 %v7338_v31 }
0x11ef   :  { %7285 = vmatprep.subr.mxu0 %v9307_v38  ;;  %7348 = vmatprep.subr.mxu1 %v9307_v38 }
0x11f0   :  { %7286 = vmatpush3.msra.mxu0 %v5359_v52  ;;  %7349 = vmatpush3.msra.mxu1 %v5583_v24 }
0x11f1   :  { %7287 = vmatprep.subr.mxu0 %v9307_v38  ;;  %7350 = vmatprep.subr.mxu1 %v9307_v38 }
0x11f2   :  { %7288 = vmatpush3.msra.mxu0 %v7272_v23  ;;  %7351 = vmatpush3.msra.mxu1 %v7335_v59 }
0x11f3   :  { %7289 = vmatprep.subr.mxu0 %v9307_v38  ;;  %7352 = vmatprep.subr.mxu1 %v9307_v38 }
0x11f4   :  { %7290 = vmatpush3.msra.mxu0 %v5349_v28  ;;  %7353 = vmatpush3.msra.mxu1 %v5573_v7 }
0x11f5   :  { %7291 = vmatprep.subr.mxu0 %v9307_v38  ;;  %7354 = vmatprep.subr.mxu1 %v9307_v38 }
0x11f6   :  { %7292 = vmatpush3.msra.mxu0 %v7269_v61  ;;  %7355 = vmatpush3.msra.mxu1 %v7332_v20 }
0x11f7   :  { %7293 = vmatprep.subr.mxu0 %v9307_v38  ;;  %7356 = vmatprep.subr.mxu1 %v9307_v38 }
0x11f8   :  { %7294 = vmatpush3.msra.mxu0 %v5339_v3  ;;  %7357 = vmatpush3.msra.mxu1 %v5563_v21 }
0x11f9   :  { %7295 = vmatprep.subr.mxu0 %v9307_v38  ;;  %7358 = vmatprep.subr.mxu1 %v9307_v38 }
0x11fa   :  { %7296 = vmatpush3.msra.mxu0 %v7266_v44  ;;  %7359 = vmatpush3.msra.mxu1 %v7329_v14 }
0x11fb   :  { %7297 = vmatprep.subr.mxu0 %v9307_v38  ;;  %7360 = vmatprep.subr.mxu1 %v9307_v38 }
0x11fc   :  { %7298 = vmatpush3.msra.mxu0 %v5329_v33  ;;  %7361 = vmatpush3.msra.mxu1 %v5553_v8 }
0x11fd   :  { %7299 = vmatprep.subr.mxu0 %v9307_v38  ;;  %7362 = vmatprep.subr.mxu1 %v9307_v38 }
0x11fe   :  { %7300 = vmatpush3.msra.mxu0 %v9213_v41  ;;  %7363 = vmatpush3.msra.mxu1 %v9215_v16 }
0x11ff   :  { %7301 = vmatprep.subr.mxu0 %v9307_v38  ;;  %7364 = vmatprep.subr.mxu1 %v9307_v38 }
0x1200   :  { %7302 = vmatpush3.msra.mxu0 %v9217_v56  ;;  %7365 = vmatpush3.msra.mxu1 %v9219_v4 }
0x1201   :  { %7303 = vmatprep.subr.mxu0 %v9307_v38  ;;  %7366 = vmatprep.subr.mxu1 %v9307_v38 }
0x1202   :  { %7304 = vmatpush3.msra.mxu0 %v9205_v5  ;;  %7367 = vmatpush3.msra.mxu1 %v9207_v46 }
0x1203   :  { %7305 = vmatprep.subr.mxu0 %v9307_v38  ;;  %7368 = vmatprep.subr.mxu1 %v9307_v38 }
0x1204   :  { %7306 = vmatpush3.msra.mxu0 %v9209_v43  ;;  %7369 = vmatpush3.msra.mxu1 %v9211_v17 }
0x1205   :  { %7307 = vmatprep.subr.mxu0 %v9307_v38  ;;  %7370 = vmatprep.subr.mxu1 %v9307_v38 }
0x1206   :  { %7308 = vmatpush3.msra.mxu0 %v9197_v35  ;;  %7371 = vmatpush3.msra.mxu1 %v9199_v47 }
0x1207   :  { %7309 = vmatprep.subr.mxu0 %v9307_v38  ;;  %7372 = vmatprep.subr.mxu1 %v9307_v38 }
0x1208   :  { %7310 = vmatpush3.msra.mxu0 %v9201_v1  ;;  %7373 = vmatpush3.msra.mxu1 %v9203_v11 }
0x1209   :  { %7312 = vmatmul.mubr.f32.vlgmr.msra.gmra.mxu0 %v5970_v22  ;;  %7375 = vmatmul.mubr.f32.vlgmr.msra.gmra.mxu1 %v5988_v58 }
0x12c9   :  { %v5446_v9 = vpop.f32.mrf.mxu0  ;;  %v5670_v55 = vpop.f32.mrf.mxu1 }
0x12ca   :  { %v5450_v40 = vadd.f32 %v5446_v9, %v9195_v32 }
0x12cb   :  { %v7313_v62 = vpop.f32.mrf.mxu0  ;;  %v7376_v0 = vpop.f32.mrf.mxu1 }
0x12cc   :  { %v5674_v57 = vadd.f32 %v5670_v55, %v5450_v40 }
0x12ce   :  { %v5685_v38 = vadd.f32 %v5684_v49, %v5674_v57 }
0x12d0   :  { %5687 = vst.msk [vmem:[%s9292_s19] sm:$0x1] %vm5686_vm0, %v5685_v38 }
0x12d1   :  { %5692 = vsyncpa [#allocation4], 1 }
0x12d2   :  { %5693 = vsyncpa [#allocation6], 1 }
0x12d3   :  { %5694 = vsyncpa [#allocation9], 1 }
0x12d4   :  { %5695 = vsyncpa [#allocation12], 1 }

</bundles_post_ra>
